<compile_context>
chip_gen: v7x
topology: tpu7x:2x2x1
jax: 0.10.0
libtpu: 0.0.40
codegen_flags: <defaults>
</compile_context>

<pallas_src>
import math
from functools import partial

import numpy as np
import jax
import jax.numpy as jnp
from jax.experimental import pallas as pl
from jax.experimental.pallas import tpu as pltpu


# ----------------------------------------------------------------------------
# In-kernel helpers
# ----------------------------------------------------------------------------
def _gelu(x):
    # tanh-form GELU: the tanh lowers to the EUP slot; only a handful of VALU
    # ops remain.  Max deviation from exact-erf GELU ~1e-3.
    c = 0.7978845608028654  # sqrt(2/pi)
    return 0.5 * x * (1.0 + jnp.tanh(c * (x + 0.044715 * x * x * x)))


def _round_up(v, m):
    return ((v + m - 1) // m) * m


# ----------------------------------------------------------------------------
# Pallas kernels
# ----------------------------------------------------------------------------
def _conv_mm_kernel(x_ref, w_ref, b_ref, o_ref, *, act):
    """One (TM, N) tile of: act(x @ w + b).  BN already folded into w, b."""
    y = jnp.dot(x_ref[...], w_ref[...], preferred_element_type=jnp.float32)
    y = y + b_ref[...]
    if act == "gelu":
        y = _gelu(y)
    elif act == "relu":
        y = jnp.maximum(y, 0.0)
    o_ref[...] = y.astype(o_ref.dtype)


def _pool_conv1x1_kernel(p_ref, w_ref, b_ref, o_ref):
    """max_pool2d(3,2) fused with the following 1x1 conv + folded BN + GELU.

    p_ref: (k*k, M, Cin) pooling patches (window axis leading, lane-dense
           [M, Cin] slabs); w_ref: (Cin, Cout); b_ref: (1, Cout).
    """
    m = p_ref[0]
    for t in range(1, p_ref.shape[0]):
        m = jnp.maximum(m, p_ref[t])
    y = jnp.dot(m, w_ref[...], preferred_element_type=jnp.float32)
    y = _gelu(y + b_ref[...])
    o_ref[...] = y.astype(o_ref.dtype)


def _pool_fc_kernel(p_ref, w1_ref, b1_ref, w2_ref, b2_ref, o_ref, *, num_pos, taps):
    """max_pool2d(3,2) + flatten + fc1(+ReLU) + fc2 fused in one kernel.

    p_ref : (num_pos*taps, N, C) pooling patches, grouped per pooled spatial
            position (NHWC flatten order; fc1 weight rows were permuted at
            init to match).
    w1_ref: (num_pos*C, F1) bf16,  b1_ref: (1, F1)
    w2_ref: (F1, F2_padded) f32,   b2_ref: (1, F2_padded)
    o_ref : (N, F2_padded) f32 (lane-dense; sliced to size_out in wrapper)
    """
    n = p_ref.shape[1]
    c = p_ref.shape[2]
    h = jnp.zeros((n, w1_ref.shape[-1]), jnp.float32)
    for p in range(num_pos):
        m = p_ref[p * taps]
        for t in range(1, taps):
            m = jnp.maximum(m, p_ref[p * taps + t])
        h = h + jnp.dot(m, w1_ref[pl.ds(p * c, c), :],
                        preferred_element_type=jnp.float32)
    h = jnp.maximum(h + b1_ref[...], 0.0)                      # fc1 bias + ReLU
    y = jnp.dot(h, w2_ref[...], preferred_element_type=jnp.float32)
    o_ref[...] = (y + b2_ref[...]).astype(o_ref.dtype)


# ----------------------------------------------------------------------------
# Wrappers
# ----------------------------------------------------------------------------
def fused_matmul(x, w, b, act, out_dtype=jnp.bfloat16, tm=128):
    """x:[M,K](bf16) @ w:[K,N](bf16) + b(f32), activation, f32 accumulation."""
    M, K = x.shape
    N = w.shape[1]
    tm = min(tm, _round_up(M, 8))
    Mp = _round_up(M, tm)
    if Mp != M:
        x = jnp.pad(x, ((0, Mp - M), (0, 0)))

    out = pl.pallas_call(
        partial(_conv_mm_kernel, act=act),
        out_shape=jax.ShapeDtypeStruct((Mp, N), out_dtype),
        grid=(Mp // tm,),
        in_specs=[
            pl.BlockSpec((tm, K), lambda i: (i, 0)),
            pl.BlockSpec((K, N), lambda i: (0, 0)),
            pl.BlockSpec((1, N), lambda i: (0, 0)),
        ],
        out_specs=pl.BlockSpec((tm, N), lambda i: (i, 0)),
        compiler_params=pltpu.CompilerParams(dimension_semantics=("parallel",)),
    )(x, w, b.reshape(1, N))
    return out[:M] if Mp != M else out


def im2col(x, kh, kw, stride, pad):
    """x: NHWC -> patches [N, OH, OW, KH*KW, C] (window index ordered (kh, kw))."""
    if pad:
        x = jnp.pad(x, ((0, 0), (pad, pad), (pad, pad), (0, 0)))
    n, h, w, c = x.shape
    oh = (h - kh) // stride + 1
    ow = (w - kw) // stride + 1
    cols = []
    for i in range(kh):
        for j in range(kw):
            cols.append(
                x[:, i:i + stride * (oh - 1) + 1:stride,
                     j:j + stride * (ow - 1) + 1:stride, :]
            )
    patches = jnp.stack(cols, axis=3)  # [n, oh, ow, kh*kw, c]
    return patches, (n, oh, ow)


def pool_patches(x, k, stride):
    """x: NHWC -> pooling patches [K*K, N, OH, OW, C] (window axis leading)."""
    n, h, w, c = x.shape
    oh = (h - k) // stride + 1
    ow = (w - k) // stride + 1
    cols = []
    for i in range(k):
        for j in range(k):
            cols.append(
                x[:, i:i + stride * (oh - 1) + 1:stride,
                     j:j + stride * (ow - 1) + 1:stride, :]
            )
    return jnp.stack(cols, axis=0), (n, oh, ow)


def conv_bn_gelu(x, layer, kh, kw, stride, pad):
    patches, (n, oh, ow) = im2col(x, kh, kw, stride, pad)
    cin = x.shape[-1]
    cols = patches.reshape(n * oh * ow, kh * kw * cin)
    out = fused_matmul(cols, layer["w"], layer["b"], act="gelu")
    return out.reshape(n, oh, ow, -1)


def pool_conv1x1(x, layer):
    """max_pool2d(3,2) + Conv2d_3b_1x1 + folded BN + GELU in one pallas_call."""
    p, (n, oh, ow) = pool_patches(x, 3, 2)
    c = x.shape[-1]
    m = n * oh * ow
    p = p.reshape(9, m, c)
    cout = layer["w"].shape[1]
    out = pl.pallas_call(
        _pool_conv1x1_kernel,
        out_shape=jax.ShapeDtypeStruct((m, cout), jnp.bfloat16),
    )(p, layer["w"], layer["b"].reshape(1, cout))
    return out.reshape(n, oh, ow, cout)


def pool_fc(x, fc1, fc2):
    """max_pool2d(3,2) + flatten + fc1(ReLU) + fc2 in one pallas_call."""
    n, _, _, c = x.shape
    p, (_, oh, ow) = pool_patches(x, 3, 2)               # (9, n, oh, ow, c)
    # Group patches per pooled spatial position: (oh*ow*9, n, c).
    p = jnp.transpose(p, (2, 3, 0, 1, 4)).reshape(oh * ow * 9, n, c)
    npad = fc2["w"].shape[1]                             # lane-dense padded N
    out = pl.pallas_call(
        partial(_pool_fc_kernel, num_pos=oh * ow, taps=9),
        out_shape=jax.ShapeDtypeStruct((n, npad), jnp.float32),
    )(p, fc1["w"], fc1["b"].reshape(1, -1), fc2["w"], fc2["b"].reshape(1, -1))
    return out[:, :fc2["nout"]]


# ----------------------------------------------------------------------------
# Parameters (deterministic synthetic init; BN folded into conv weights/bias)
# ----------------------------------------------------------------------------
def _init_conv_bn(key, kh, kw, cin, cout, eps=1e-5):
    k1, k2, k3, k4 = jax.random.split(key, 4)
    w = jax.random.normal(k1, (kh, kw, cin, cout), jnp.float32) / math.sqrt(kh * kw * cin)
    b = 0.01 * jax.random.normal(k2, (cout,), jnp.float32)
    gamma = 1.0 + 0.1 * jax.random.normal(k3, (cout,), jnp.float32)
    beta = 0.1 * jax.random.normal(k4, (cout,), jnp.float32)
    run_mean = jnp.zeros((cout,), jnp.float32)
    run_var = jnp.ones((cout,), jnp.float32)
    scale = gamma / jnp.sqrt(run_var + eps)      # inference-mode BatchNorm fold
    shift = beta - run_mean * scale
    w_f = (w * scale).reshape(kh * kw * cin, cout)
    b_f = b * scale + shift
    return dict(w=w_f.astype(jnp.bfloat16), b=b_f)


def _init_fc1(key, fin, fout, perm):
    k1, k2 = jax.random.split(key, 2)
    w = jax.random.normal(k1, (fin, fout), jnp.float32) / math.sqrt(fin)
    b = 0.01 * jax.random.normal(k2, (fout,), jnp.float32)
    # Permute rows once so fc1 consumes the NHWC-flattened pooled activations
    # while remaining equivalent to the PyTorch NCHW `x.view(-1, flat_size)`.
    w = w[perm]
    return dict(w=w.astype(jnp.bfloat16), b=b)


def _init_fc2(key, fin, fout, pad_to=128):
    k1, k2 = jax.random.split(key, 2)
    w = jax.random.normal(k1, (fin, fout), jnp.float32) / math.sqrt(fin)
    b = 0.01 * jax.random.normal(k2, (fout,), jnp.float32)
    # Zero-pad N to 128 so the kernel's stores are lane-dense; sliced in wrapper.
    w = jnp.pad(w, ((0, 0), (0, pad_to - fout)))
    b = jnp.pad(b, (0, pad_to - fout))
    return dict(w=w, b=b, nout=fout)


def _conv_out(h, k, s, p=0):
    return (h + 2 * p - k) // s + 1


def init_params(key, size_in=(1, 48, 48), size_out=4):
    cin, H, _ = size_in
    ks = jax.random.split(key, 7)
    params = {
        "c1": _init_conv_bn(ks[0], 5, 5, cin, 32),
        "c2": _init_conv_bn(ks[1], 5, 5, 32, 32),
        "c3": _init_conv_bn(ks[2], 3, 3, 32, 64),
        "c4": _init_conv_bn(ks[3], 1, 1, 64, 80),
        "c5": _init_conv_bn(ks[4], 3, 3, 80, 192),
    }
    # Trace spatial shape like _get_conv_ouput does.
    h = _conv_out(H, 5, 2)          # Conv2d_1a_3x3
    h = _conv_out(h, 5, 1)          # Conv2d_2a_3x3
    h = _conv_out(h, 3, 1, 1)       # Conv2d_2b_3x3
    h = _conv_out(h, 3, 2)          # max_pool2d
    h = _conv_out(h, 1, 1)          # Conv2d_3b_1x1
    h = _conv_out(h, 3, 1)          # Conv2d_4a_3x3
    h = _conv_out(h, 3, 2)          # max_pool2d
    c_final = 192
    flat_size = c_final * h * h
    # Permutation mapping NHWC-flatten index -> NCHW-flatten index.
    perm = np.arange(flat_size).reshape(c_final, h, h).transpose(1, 2, 0).reshape(flat_size)
    params["fc1"] = _init_fc1(ks[5], flat_size, 400, perm)
    params["fc2"] = _init_fc2(ks[6], 400, size_out)
    params["flat_size"] = flat_size
    return params


# ----------------------------------------------------------------------------
# Forward pass
# ----------------------------------------------------------------------------
def regresion_forward(params, x_nchw):
    x = jnp.transpose(x_nchw, (0, 2, 3, 1)).astype(jnp.bfloat16)  # NCHW -> NHWC bf16

    x = conv_bn_gelu(x, params["c1"], 5, 5, 2, 0)   # Conv2d_1a_3x3 + BN + (dropout2d=id) + gelu
    x = conv_bn_gelu(x, params["c2"], 5, 5, 1, 0)   # Conv2d_2a_3x3 + BN + gelu
    x = conv_bn_gelu(x, params["c3"], 3, 3, 1, 1)   # Conv2d_2b_3x3 + BN + gelu
    x = pool_conv1x1(x, params["c4"])               # max_pool2d(3,2) + Conv2d_3b_1x1 + BN + gelu
    x = conv_bn_gelu(x, params["c5"], 3, 3, 1, 0)   # Conv2d_4a_3x3 + BN + gelu
    out = pool_fc(x, params["fc1"], params["fc2"])  # max_pool2d(3,2) + flatten + fc1(ReLU) + fc2
    return out


# ----------------------------------------------------------------------------
if __name__ == "__main__":
    key = jax.random.PRNGKey(0)
    kx, kp = jax.random.split(key)

    # Small input consistent with the module: (N, C, H, W) = (2, 1, 48, 48).
    x = jax.random.normal(kx, (2, 1, 48, 48), jnp.float32)
    params = init_params(kp, size_in=(1, 48, 48), size_out=4)

    fwd = jax.jit(lambda xx: regresion_forward(params, xx))
    out = jax.block_until_ready(fwd(x))

    assert out.shape == (2, 4), out.shape
    assert np.isfinite(np.asarray(out)).all()
    print("KERNEL_OK")
</pallas_src>

<mosaic_0001>
module attributes {stable_mosaic.version = 11 : i64} {
  func.func @_conv_mm_kernel(%arg0: i32, %arg1: memref<128x25xbf16, #tpu.memory_space<vmem>>, %arg2: memref<25x32xbf16, #tpu.memory_space<vmem>>, %arg3: memref<1x32xf32, #tpu.memory_space<vmem>>, %arg4: memref<128x32xbf16, #tpu.memory_space<vmem>>) attributes {dimension_semantics = [#tpu.dimension_semantics<parallel>], iteration_bounds = array<i64: 8>, scalar_prefetch = 0 : i64, scratch_operands = 0 : i64, tpu.core_type = #tpu.core_type<tc>, window_params = [{transform_indices = @transform_0, window_bounds = array<i64: 128, 25>}, {pipeline_mode = #tpu.pipeline_mode<synchronous>, transform_indices = @transform_1, window_bounds = array<i64: 25, 32>}, {pipeline_mode = #tpu.pipeline_mode<synchronous>, transform_indices = @transform_2, window_bounds = array<i64: 1, 32>}, {transform_indices = @transform_3, window_bounds = array<i64: 128, 32>}]} {
    %c0 = arith.constant 0 : index
    %c0_0 = arith.constant 0 : index
    %0 = vector.load %arg1[%c0, %c0_0] : memref<128x25xbf16, #tpu.memory_space<vmem>>, vector<128x25xbf16>
    %c0_1 = arith.constant 0 : index
    %c0_2 = arith.constant 0 : index
    %1 = vector.load %arg2[%c0_1, %c0_2] : memref<25x32xbf16, #tpu.memory_space<vmem>>, vector<25x32xbf16>
    %cst = arith.constant dense<0.000000e+00> : vector<128x32xf32>
    %2 = tpu.matmul %0, %1, %cst {dimension_numbers = #tpu.dot_dimension_numbers<[1], [0], [0], [1], [0, 0, 1, 1], [], []>} : vector<128x25xbf16>, vector<25x32xbf16>, vector<128x32xf32> -> vector<128x32xf32>
    %c0_3 = arith.constant 0 : index
    %c0_4 = arith.constant 0 : index
    %3 = vector.load %arg3[%c0_3, %c0_4] : memref<1x32xf32, #tpu.memory_space<vmem>>, vector<1x32xf32>
    %4 = vector.broadcast %3 : vector<1x32xf32> to vector<128x32xf32>
    %5 = arith.addf %2, %4 : vector<128x32xf32>
    %cst_5 = arith.constant 5.000000e-01 : f32
    %6 = vector.broadcast %cst_5 : f32 to vector<128x32xf32>
    %7 = arith.mulf %6, %5 : vector<128x32xf32>
    %cst_6 = arith.constant 4.471500e-02 : f32
    %8 = vector.broadcast %cst_6 : f32 to vector<128x32xf32>
    %9 = arith.mulf %8, %5 : vector<128x32xf32>
    %10 = arith.mulf %9, %5 : vector<128x32xf32>
    %11 = arith.mulf %10, %5 : vector<128x32xf32>
    %12 = arith.addf %5, %11 : vector<128x32xf32>
    %cst_7 = arith.constant 0.797884583 : f32
    %13 = vector.broadcast %cst_7 : f32 to vector<128x32xf32>
    %14 = arith.mulf %13, %12 : vector<128x32xf32>
    %15 = math.tanh %14 : vector<128x32xf32>
    %cst_8 = arith.constant 1.000000e+00 : f32
    %16 = vector.broadcast %cst_8 : f32 to vector<128x32xf32>
    %17 = arith.addf %16, %15 : vector<128x32xf32>
    %18 = arith.mulf %7, %17 : vector<128x32xf32>
    %19 = arith.truncf %18 : vector<128x32xf32> to vector<128x32xbf16>
    %c0_9 = arith.constant 0 : index
    %c0_10 = arith.constant 0 : index
    %20 = vector.load %arg4[%c0_9, %c0_10] : memref<128x32xbf16, #tpu.memory_space<vmem>>, vector<128x32xbf16>
    tpu.vector_store %arg4[%c0_9, %c0_10], %19 {strides = array<i32>} : memref<128x32xbf16, #tpu.memory_space<vmem>>, vector<128x32xbf16>,
    return
  }
  func.func @transform_0(%arg0: i32) -> (i32, i32) {
    %c0_i32 = arith.constant 0 : i32
    %c0_i32_0 = arith.constant 0 : i32
    return %arg0, %c0_i32 : i32, i32
  }
  func.func @transform_1(%arg0: i32) -> (i32, i32) {
    %c0_i32 = arith.constant 0 : i32
    %c0_i32_0 = arith.constant 0 : i32
    %c0_i32_1 = arith.constant 0 : i32
    return %c0_i32, %c0_i32_0 : i32, i32
  }
  func.func @transform_2(%arg0: i32) -> (i32, i32) {
    %c0_i32 = arith.constant 0 : i32
    %c0_i32_0 = arith.constant 0 : i32
    %c0_i32_1 = arith.constant 0 : i32
    return %c0_i32, %c0_i32_0 : i32, i32
  }
  func.func @transform_3(%arg0: i32) -> (i32, i32) {
    %c0_i32 = arith.constant 0 : i32
    %c0_i32_0 = arith.constant 0 : i32
    return %arg0, %c0_i32 : i32, i32
  }
}

module attributes {stable_mosaic.version = 11 : i64} {
  func.func @_conv_mm_kernel(%arg0: i32, %arg1: memref<128x800xbf16, #tpu.memory_space<vmem>>, %arg2: memref<800x32xbf16, #tpu.memory_space<vmem>>, %arg3: memref<1x32xf32, #tpu.memory_space<vmem>>, %arg4: memref<128x32xbf16, #tpu.memory_space<vmem>>) attributes {dimension_semantics = [#tpu.dimension_semantics<parallel>], iteration_bounds = array<i64: 6>, scalar_prefetch = 0 : i64, scratch_operands = 0 : i64, tpu.core_type = #tpu.core_type<tc>, window_params = [{transform_indices = @transform_0, window_bounds = array<i64: 128, 800>}, {pipeline_mode = #tpu.pipeline_mode<synchronous>, transform_indices = @transform_1, window_bounds = array<i64: 800, 32>}, {pipeline_mode = #tpu.pipeline_mode<synchronous>, transform_indices = @transform_2, window_bounds = array<i64: 1, 32>}, {transform_indices = @transform_3, window_bounds = array<i64: 128, 32>}]} {
    %c0 = arith.constant 0 : index
    %c0_0 = arith.constant 0 : index
    %0 = vector.load %arg1[%c0, %c0_0] : memref<128x800xbf16, #tpu.memory_space<vmem>>, vector<128x800xbf16>
    %c0_1 = arith.constant 0 : index
    %c0_2 = arith.constant 0 : index
    %1 = vector.load %arg2[%c0_1, %c0_2] : memref<800x32xbf16, #tpu.memory_space<vmem>>, vector<800x32xbf16>
    %cst = arith.constant dense<0.000000e+00> : vector<128x32xf32>
    %2 = tpu.matmul %0, %1, %cst {dimension_numbers = #tpu.dot_dimension_numbers<[1], [0], [0], [1], [0, 0, 1, 1], [], []>} : vector<128x800xbf16>, vector<800x32xbf16>, vector<128x32xf32> -> vector<128x32xf32>
    %c0_3 = arith.constant 0 : index
    %c0_4 = arith.constant 0 : index
    %3 = vector.load %arg3[%c0_3, %c0_4] : memref<1x32xf32, #tpu.memory_space<vmem>>, vector<1x32xf32>
    %4 = vector.broadcast %3 : vector<1x32xf32> to vector<128x32xf32>
    %5 = arith.addf %2, %4 : vector<128x32xf32>
    %cst_5 = arith.constant 5.000000e-01 : f32
    %6 = vector.broadcast %cst_5 : f32 to vector<128x32xf32>
    %7 = arith.mulf %6, %5 : vector<128x32xf32>
    %cst_6 = arith.constant 4.471500e-02 : f32
    %8 = vector.broadcast %cst_6 : f32 to vector<128x32xf32>
    %9 = arith.mulf %8, %5 : vector<128x32xf32>
    %10 = arith.mulf %9, %5 : vector<128x32xf32>
    %11 = arith.mulf %10, %5 : vector<128x32xf32>
    %12 = arith.addf %5, %11 : vector<128x32xf32>
    %cst_7 = arith.constant 0.797884583 : f32
    %13 = vector.broadcast %cst_7 : f32 to vector<128x32xf32>
    %14 = arith.mulf %13, %12 : vector<128x32xf32>
    %15 = math.tanh %14 : vector<128x32xf32>
    %cst_8 = arith.constant 1.000000e+00 : f32
    %16 = vector.broadcast %cst_8 : f32 to vector<128x32xf32>
    %17 = arith.addf %16, %15 : vector<128x32xf32>
    %18 = arith.mulf %7, %17 : vector<128x32xf32>
    %19 = arith.truncf %18 : vector<128x32xf32> to vector<128x32xbf16>
    %c0_9 = arith.constant 0 : index
    %c0_10 = arith.constant 0 : index
    %20 = vector.load %arg4[%c0_9, %c0_10] : memref<128x32xbf16, #tpu.memory_space<vmem>>, vector<128x32xbf16>
    tpu.vector_store %arg4[%c0_9, %c0_10], %19 {strides = array<i32>} : memref<128x32xbf16, #tpu.memory_space<vmem>>, vector<128x32xbf16>,
    return
  }
  func.func @transform_0(%arg0: i32) -> (i32, i32) {
    %c0_i32 = arith.constant 0 : i32
    %c0_i32_0 = arith.constant 0 : i32
    return %arg0, %c0_i32 : i32, i32
  }
  func.func @transform_1(%arg0: i32) -> (i32, i32) {
    %c0_i32 = arith.constant 0 : i32
    %c0_i32_0 = arith.constant 0 : i32
    %c0_i32_1 = arith.constant 0 : i32
    return %c0_i32, %c0_i32_0 : i32, i32
  }
  func.func @transform_2(%arg0: i32) -> (i32, i32) {
    %c0_i32 = arith.constant 0 : i32
    %c0_i32_0 = arith.constant 0 : i32
    %c0_i32_1 = arith.constant 0 : i32
    return %c0_i32, %c0_i32_0 : i32, i32
  }
  func.func @transform_3(%arg0: i32) -> (i32, i32) {
    %c0_i32 = arith.constant 0 : i32
    %c0_i32_0 = arith.constant 0 : i32
    return %arg0, %c0_i32 : i32, i32
  }
}

module attributes {stable_mosaic.version = 11 : i64} {
  func.func @_conv_mm_kernel(%arg0: i32, %arg1: memref<128x288xbf16, #tpu.memory_space<vmem>>, %arg2: memref<288x64xbf16, #tpu.memory_space<vmem>>, %arg3: memref<1x64xf32, #tpu.memory_space<vmem>>, %arg4: memref<128x64xbf16, #tpu.memory_space<vmem>>) attributes {dimension_semantics = [#tpu.dimension_semantics<parallel>], iteration_bounds = array<i64: 6>, scalar_prefetch = 0 : i64, scratch_operands = 0 : i64, tpu.core_type = #tpu.core_type<tc>, window_params = [{transform_indices = @transform_0, window_bounds = array<i64: 128, 288>}, {pipeline_mode = #tpu.pipeline_mode<synchronous>, transform_indices = @transform_1, window_bounds = array<i64: 288, 64>}, {pipeline_mode = #tpu.pipeline_mode<synchronous>, transform_indices = @transform_2, window_bounds = array<i64: 1, 64>}, {transform_indices = @transform_3, window_bounds = array<i64: 128, 64>}]} {
    %c0 = arith.constant 0 : index
    %c0_0 = arith.constant 0 : index
    %0 = vector.load %arg1[%c0, %c0_0] : memref<128x288xbf16, #tpu.memory_space<vmem>>, vector<128x288xbf16>
    %c0_1 = arith.constant 0 : index
    %c0_2 = arith.constant 0 : index
    %1 = vector.load %arg2[%c0_1, %c0_2] : memref<288x64xbf16, #tpu.memory_space<vmem>>, vector<288x64xbf16>
    %cst = arith.constant dense<0.000000e+00> : vector<128x64xf32>
    %2 = tpu.matmul %0, %1, %cst {dimension_numbers = #tpu.dot_dimension_numbers<[1], [0], [0], [1], [0, 0, 1, 1], [], []>} : vector<128x288xbf16>, vector<288x64xbf16>, vector<128x64xf32> -> vector<128x64xf32>
    %c0_3 = arith.constant 0 : index
    %c0_4 = arith.constant 0 : index
    %3 = vector.load %arg3[%c0_3, %c0_4] : memref<1x64xf32, #tpu.memory_space<vmem>>, vector<1x64xf32>
    %4 = vector.broadcast %3 : vector<1x64xf32> to vector<128x64xf32>
    %5 = arith.addf %2, %4 : vector<128x64xf32>
    %cst_5 = arith.constant 5.000000e-01 : f32
    %6 = vector.broadcast %cst_5 : f32 to vector<128x64xf32>
    %7 = arith.mulf %6, %5 : vector<128x64xf32>
    %cst_6 = arith.constant 4.471500e-02 : f32
    %8 = vector.broadcast %cst_6 : f32 to vector<128x64xf32>
    %9 = arith.mulf %8, %5 : vector<128x64xf32>
    %10 = arith.mulf %9, %5 : vector<128x64xf32>
    %11 = arith.mulf %10, %5 : vector<128x64xf32>
    %12 = arith.addf %5, %11 : vector<128x64xf32>
    %cst_7 = arith.constant 0.797884583 : f32
    %13 = vector.broadcast %cst_7 : f32 to vector<128x64xf32>
    %14 = arith.mulf %13, %12 : vector<128x64xf32>
    %15 = math.tanh %14 : vector<128x64xf32>
    %cst_8 = arith.constant 1.000000e+00 : f32
    %16 = vector.broadcast %cst_8 : f32 to vector<128x64xf32>
    %17 = arith.addf %16, %15 : vector<128x64xf32>
    %18 = arith.mulf %7, %17 : vector<128x64xf32>
    %19 = arith.truncf %18 : vector<128x64xf32> to vector<128x64xbf16>
    %c0_9 = arith.constant 0 : index
    %c0_10 = arith.constant 0 : index
    %20 = vector.load %arg4[%c0_9, %c0_10] : memref<128x64xbf16, #tpu.memory_space<vmem>>, vector<128x64xbf16>
    tpu.vector_store %arg4[%c0_9, %c0_10], %19 {strides = array<i32>} : memref<128x64xbf16, #tpu.memory_space<vmem>>, vector<128x64xbf16>,
    return
  }
  func.func @transform_0(%arg0: i32) -> (i32, i32) {
    %c0_i32 = arith.constant 0 : i32
    %c0_i32_0 = arith.constant 0 : i32
    return %arg0, %c0_i32 : i32, i32
  }
  func.func @transform_1(%arg0: i32) -> (i32, i32) {
    %c0_i32 = arith.constant 0 : i32
    %c0_i32_0 = arith.constant 0 : i32
    %c0_i32_1 = arith.constant 0 : i32
    return %c0_i32, %c0_i32_0 : i32, i32
  }
  func.func @transform_2(%arg0: i32) -> (i32, i32) {
    %c0_i32 = arith.constant 0 : i32
    %c0_i32_0 = arith.constant 0 : i32
    %c0_i32_1 = arith.constant 0 : i32
    return %c0_i32, %c0_i32_0 : i32, i32
  }
  func.func @transform_3(%arg0: i32) -> (i32, i32) {
    %c0_i32 = arith.constant 0 : i32
    %c0_i32_0 = arith.constant 0 : i32
    return %arg0, %c0_i32 : i32, i32
  }
}

module attributes {stable_mosaic.version = 11 : i64} {
  func.func @_pool_conv1x1_kernel(%arg0: memref<9x128x64xbf16, #tpu.memory_space<vmem>>, %arg1: memref<64x80xbf16, #tpu.memory_space<vmem>>, %arg2: memref<1x80xf32, #tpu.memory_space<vmem>>, %arg3: memref<128x80xbf16, #tpu.memory_space<vmem>>) attributes {dimension_semantics = [], scalar_prefetch = 0 : i64, scratch_operands = 0 : i64, tpu.core_type = #tpu.core_type<tc>} {
    %c0 = arith.constant 0 : index
    %c0_0 = arith.constant 0 : index
    %c0_1 = arith.constant 0 : index
    %0 = vector.load %arg0[%c0, %c0_0, %c0_1] : memref<9x128x64xbf16, #tpu.memory_space<vmem>>, vector<1x128x64xbf16>
    %1 = vector.shape_cast %0 : vector<1x128x64xbf16> to vector<128x64xbf16>
    %c1 = arith.constant 1 : index
    %c0_2 = arith.constant 0 : index
    %c0_3 = arith.constant 0 : index
    %2 = vector.load %arg0[%c1, %c0_2, %c0_3] : memref<9x128x64xbf16, #tpu.memory_space<vmem>>, vector<1x128x64xbf16>
    %3 = vector.shape_cast %2 : vector<1x128x64xbf16> to vector<128x64xbf16>
    %4 = arith.maximumf %1, %3 : vector<128x64xbf16>
    %c2 = arith.constant 2 : index
    %c0_4 = arith.constant 0 : index
    %c0_5 = arith.constant 0 : index
    %5 = vector.load %arg0[%c2, %c0_4, %c0_5] : memref<9x128x64xbf16, #tpu.memory_space<vmem>>, vector<1x128x64xbf16>
    %6 = vector.shape_cast %5 : vector<1x128x64xbf16> to vector<128x64xbf16>
    %7 = arith.maximumf %4, %6 : vector<128x64xbf16>
    %c3 = arith.constant 3 : index
    %c0_6 = arith.constant 0 : index
    %c0_7 = arith.constant 0 : index
    %8 = vector.load %arg0[%c3, %c0_6, %c0_7] : memref<9x128x64xbf16, #tpu.memory_space<vmem>>, vector<1x128x64xbf16>
    %9 = vector.shape_cast %8 : vector<1x128x64xbf16> to vector<128x64xbf16>
    %10 = arith.maximumf %7, %9 : vector<128x64xbf16>
    %c4 = arith.constant 4 : index
    %c0_8 = arith.constant 0 : index
    %c0_9 = arith.constant 0 : index
    %11 = vector.load %arg0[%c4, %c0_8, %c0_9] : memref<9x128x64xbf16, #tpu.memory_space<vmem>>, vector<1x128x64xbf16>
    %12 = vector.shape_cast %11 : vector<1x128x64xbf16> to vector<128x64xbf16>
    %13 = arith.maximumf %10, %12 : vector<128x64xbf16>
    %c5 = arith.constant 5 : index
    %c0_10 = arith.constant 0 : index
    %c0_11 = arith.constant 0 : index
    %14 = vector.load %arg0[%c5, %c0_10, %c0_11] : memref<9x128x64xbf16, #tpu.memory_space<vmem>>, vector<1x128x64xbf16>
    %15 = vector.shape_cast %14 : vector<1x128x64xbf16> to vector<128x64xbf16>
    %16 = arith.maximumf %13, %15 : vector<128x64xbf16>
    %c6 = arith.constant 6 : index
    %c0_12 = arith.constant 0 : index
    %c0_13 = arith.constant 0 : index
    %17 = vector.load %arg0[%c6, %c0_12, %c0_13] : memref<9x128x64xbf16, #tpu.memory_space<vmem>>, vector<1x128x64xbf16>
    %18 = vector.shape_cast %17 : vector<1x128x64xbf16> to vector<128x64xbf16>
    %19 = arith.maximumf %16, %18 : vector<128x64xbf16>
    %c7 = arith.constant 7 : index
    %c0_14 = arith.constant 0 : index
    %c0_15 = arith.constant 0 : index
    %20 = vector.load %arg0[%c7, %c0_14, %c0_15] : memref<9x128x64xbf16, #tpu.memory_space<vmem>>, vector<1x128x64xbf16>
    %21 = vector.shape_cast %20 : vector<1x128x64xbf16> to vector<128x64xbf16>
    %22 = arith.maximumf %19, %21 : vector<128x64xbf16>
    %c8 = arith.constant 8 : index
    %c0_16 = arith.constant 0 : index
    %c0_17 = arith.constant 0 : index
    %23 = vector.load %arg0[%c8, %c0_16, %c0_17] : memref<9x128x64xbf16, #tpu.memory_space<vmem>>, vector<1x128x64xbf16>
    %24 = vector.shape_cast %23 : vector<1x128x64xbf16> to vector<128x64xbf16>
    %25 = arith.maximumf %22, %24 : vector<128x64xbf16>
    %c0_18 = arith.constant 0 : index
    %c0_19 = arith.constant 0 : index
    %26 = vector.load %arg1[%c0_18, %c0_19] : memref<64x80xbf16, #tpu.memory_space<vmem>>, vector<64x80xbf16>
    %cst = arith.constant dense<0.000000e+00> : vector<128x80xf32>
    %27 = tpu.matmul %25, %26, %cst {dimension_numbers = #tpu.dot_dimension_numbers<[1], [0], [0], [1], [0, 0, 1, 1], [], []>} : vector<128x64xbf16>, vector<64x80xbf16>, vector<128x80xf32> -> vector<128x80xf32>
    %c0_20 = arith.constant 0 : index
    %c0_21 = arith.constant 0 : index
    %28 = vector.load %arg2[%c0_20, %c0_21] : memref<1x80xf32, #tpu.memory_space<vmem>>, vector<1x80xf32>
    %29 = vector.broadcast %28 : vector<1x80xf32> to vector<128x80xf32>
    %30 = arith.addf %27, %29 : vector<128x80xf32>
    %cst_22 = arith.constant 5.000000e-01 : f32
    %31 = vector.broadcast %cst_22 : f32 to vector<128x80xf32>
    %32 = arith.mulf %31, %30 : vector<128x80xf32>
    %cst_23 = arith.constant 4.471500e-02 : f32
    %33 = vector.broadcast %cst_23 : f32 to vector<128x80xf32>
    %34 = arith.mulf %33, %30 : vector<128x80xf32>
    %35 = arith.mulf %34, %30 : vector<128x80xf32>
    %36 = arith.mulf %35, %30 : vector<128x80xf32>
    %37 = arith.addf %30, %36 : vector<128x80xf32>
    %cst_24 = arith.constant 0.797884583 : f32
    %38 = vector.broadcast %cst_24 : f32 to vector<128x80xf32>
    %39 = arith.mulf %38, %37 : vector<128x80xf32>
    %40 = math.tanh %39 : vector<128x80xf32>
    %cst_25 = arith.constant 1.000000e+00 : f32
    %41 = vector.broadcast %cst_25 : f32 to vector<128x80xf32>
    %42 = arith.addf %41, %40 : vector<128x80xf32>
    %43 = arith.mulf %32, %42 : vector<128x80xf32>
    %44 = arith.truncf %43 : vector<128x80xf32> to vector<128x80xbf16>
    %c0_26 = arith.constant 0 : index
    %c0_27 = arith.constant 0 : index
    %45 = vector.load %arg3[%c0_26, %c0_27] : memref<128x80xbf16, #tpu.memory_space<vmem>>, vector<128x80xbf16>
    tpu.vector_store %arg3[%c0_26, %c0_27], %44 {strides = array<i32>} : memref<128x80xbf16, #tpu.memory_space<vmem>>, vector<128x80xbf16>,
    return
  }
}

module attributes {stable_mosaic.version = 11 : i64} {
  func.func @_conv_mm_kernel(%arg0: i32, %arg1: memref<72x720xbf16, #tpu.memory_space<vmem>>, %arg2: memref<720x192xbf16, #tpu.memory_space<vmem>>, %arg3: memref<1x192xf32, #tpu.memory_space<vmem>>, %arg4: memref<72x192xbf16, #tpu.memory_space<vmem>>) attributes {dimension_semantics = [#tpu.dimension_semantics<parallel>], iteration_bounds = array<i64: 1>, scalar_prefetch = 0 : i64, scratch_operands = 0 : i64, tpu.core_type = #tpu.core_type<tc>, window_params = [{transform_indices = @transform_0, window_bounds = array<i64: 72, 720>}, {pipeline_mode = #tpu.pipeline_mode<synchronous>, transform_indices = @transform_1, window_bounds = array<i64: 720, 192>}, {pipeline_mode = #tpu.pipeline_mode<synchronous>, transform_indices = @transform_2, window_bounds = array<i64: 1, 192>}, {transform_indices = @transform_3, window_bounds = array<i64: 72, 192>}]} {
    %c0 = arith.constant 0 : index
    %c0_0 = arith.constant 0 : index
    %0 = vector.load %arg1[%c0, %c0_0] : memref<72x720xbf16, #tpu.memory_space<vmem>>, vector<72x720xbf16>
    %c0_1 = arith.constant 0 : index
    %c0_2 = arith.constant 0 : index
    %1 = vector.load %arg2[%c0_1, %c0_2] : memref<720x192xbf16, #tpu.memory_space<vmem>>, vector<720x192xbf16>
    %cst = arith.constant dense<0.000000e+00> : vector<72x192xf32>
    %2 = tpu.matmul %0, %1, %cst {dimension_numbers = #tpu.dot_dimension_numbers<[1], [0], [0], [1], [0, 0, 1, 1], [], []>} : vector<72x720xbf16>, vector<720x192xbf16>, vector<72x192xf32> -> vector<72x192xf32>
    %c0_3 = arith.constant 0 : index
    %c0_4 = arith.constant 0 : index
    %3 = vector.load %arg3[%c0_3, %c0_4] : memref<1x192xf32, #tpu.memory_space<vmem>>, vector<1x192xf32>
    %4 = vector.broadcast %3 : vector<1x192xf32> to vector<72x192xf32>
    %5 = arith.addf %2, %4 : vector<72x192xf32>
    %cst_5 = arith.constant 5.000000e-01 : f32
    %6 = vector.broadcast %cst_5 : f32 to vector<72x192xf32>
    %7 = arith.mulf %6, %5 : vector<72x192xf32>
    %cst_6 = arith.constant 4.471500e-02 : f32
    %8 = vector.broadcast %cst_6 : f32 to vector<72x192xf32>
    %9 = arith.mulf %8, %5 : vector<72x192xf32>
    %10 = arith.mulf %9, %5 : vector<72x192xf32>
    %11 = arith.mulf %10, %5 : vector<72x192xf32>
    %12 = arith.addf %5, %11 : vector<72x192xf32>
    %cst_7 = arith.constant 0.797884583 : f32
    %13 = vector.broadcast %cst_7 : f32 to vector<72x192xf32>
    %14 = arith.mulf %13, %12 : vector<72x192xf32>
    %15 = math.tanh %14 : vector<72x192xf32>
    %cst_8 = arith.constant 1.000000e+00 : f32
    %16 = vector.broadcast %cst_8 : f32 to vector<72x192xf32>
    %17 = arith.addf %16, %15 : vector<72x192xf32>
    %18 = arith.mulf %7, %17 : vector<72x192xf32>
    %19 = arith.truncf %18 : vector<72x192xf32> to vector<72x192xbf16>
    %c0_9 = arith.constant 0 : index
    %c0_10 = arith.constant 0 : index
    %20 = vector.load %arg4[%c0_9, %c0_10] : memref<72x192xbf16, #tpu.memory_space<vmem>>, vector<72x192xbf16>
    tpu.vector_store %arg4[%c0_9, %c0_10], %19 {strides = array<i32>} : memref<72x192xbf16, #tpu.memory_space<vmem>>, vector<72x192xbf16>,
    return
  }
  func.func @transform_0(%arg0: i32) -> (i32, i32) {
    %c0_i32 = arith.constant 0 : i32
    %c0_i32_0 = arith.constant 0 : i32
    return %arg0, %c0_i32 : i32, i32
  }
  func.func @transform_1(%arg0: i32) -> (i32, i32) {
    %c0_i32 = arith.constant 0 : i32
    %c0_i32_0 = arith.constant 0 : i32
    %c0_i32_1 = arith.constant 0 : i32
    return %c0_i32, %c0_i32_0 : i32, i32
  }
  func.func @transform_2(%arg0: i32) -> (i32, i32) {
    %c0_i32 = arith.constant 0 : i32
    %c0_i32_0 = arith.constant 0 : i32
    %c0_i32_1 = arith.constant 0 : i32
    return %c0_i32, %c0_i32_0 : i32, i32
  }
  func.func @transform_3(%arg0: i32) -> (i32, i32) {
    %c0_i32 = arith.constant 0 : i32
    %c0_i32_0 = arith.constant 0 : i32
    return %arg0, %c0_i32 : i32, i32
  }
}

module attributes {stable_mosaic.version = 11 : i64} {
  func.func @_pool_fc_kernel(%arg0: memref<36x2x192xbf16, #tpu.memory_space<vmem>>, %arg1: memref<768x400xbf16, #tpu.memory_space<vmem>>, %arg2: memref<1x400xf32, #tpu.memory_space<vmem>>, %arg3: memref<400x128xf32, #tpu.memory_space<vmem>>, %arg4: memref<1x128xf32, #tpu.memory_space<vmem>>, %arg5: memref<2x128xf32, #tpu.memory_space<vmem>>) attributes {dimension_semantics = [], scalar_prefetch = 0 : i64, scratch_operands = 0 : i64, tpu.core_type = #tpu.core_type<tc>} {
    %cst = arith.constant 0.000000e+00 : f32
    %0 = vector.broadcast %cst : f32 to vector<2x400xf32>
    %c0 = arith.constant 0 : index
    %c0_0 = arith.constant 0 : index
    %c0_1 = arith.constant 0 : index
    %1 = vector.load %arg0[%c0, %c0_0, %c0_1] : memref<36x2x192xbf16, #tpu.memory_space<vmem>>, vector<1x2x192xbf16>
    %2 = vector.shape_cast %1 : vector<1x2x192xbf16> to vector<2x192xbf16>
    %c1 = arith.constant 1 : index
    %c0_2 = arith.constant 0 : index
    %c0_3 = arith.constant 0 : index
    %3 = vector.load %arg0[%c1, %c0_2, %c0_3] : memref<36x2x192xbf16, #tpu.memory_space<vmem>>, vector<1x2x192xbf16>
    %4 = vector.shape_cast %3 : vector<1x2x192xbf16> to vector<2x192xbf16>
    %5 = arith.maximumf %2, %4 : vector<2x192xbf16>
    %c2 = arith.constant 2 : index
    %c0_4 = arith.constant 0 : index
    %c0_5 = arith.constant 0 : index
    %6 = vector.load %arg0[%c2, %c0_4, %c0_5] : memref<36x2x192xbf16, #tpu.memory_space<vmem>>, vector<1x2x192xbf16>
    %7 = vector.shape_cast %6 : vector<1x2x192xbf16> to vector<2x192xbf16>
    %8 = arith.maximumf %5, %7 : vector<2x192xbf16>
    %c3 = arith.constant 3 : index
    %c0_6 = arith.constant 0 : index
    %c0_7 = arith.constant 0 : index
    %9 = vector.load %arg0[%c3, %c0_6, %c0_7] : memref<36x2x192xbf16, #tpu.memory_space<vmem>>, vector<1x2x192xbf16>
    %10 = vector.shape_cast %9 : vector<1x2x192xbf16> to vector<2x192xbf16>
    %11 = arith.maximumf %8, %10 : vector<2x192xbf16>
    %c4 = arith.constant 4 : index
    %c0_8 = arith.constant 0 : index
    %c0_9 = arith.constant 0 : index
    %12 = vector.load %arg0[%c4, %c0_8, %c0_9] : memref<36x2x192xbf16, #tpu.memory_space<vmem>>, vector<1x2x192xbf16>
    %13 = vector.shape_cast %12 : vector<1x2x192xbf16> to vector<2x192xbf16>
    %14 = arith.maximumf %11, %13 : vector<2x192xbf16>
    %c5 = arith.constant 5 : index
    %c0_10 = arith.constant 0 : index
    %c0_11 = arith.constant 0 : index
    %15 = vector.load %arg0[%c5, %c0_10, %c0_11] : memref<36x2x192xbf16, #tpu.memory_space<vmem>>, vector<1x2x192xbf16>
    %16 = vector.shape_cast %15 : vector<1x2x192xbf16> to vector<2x192xbf16>
    %17 = arith.maximumf %14, %16 : vector<2x192xbf16>
    %c6 = arith.constant 6 : index
    %c0_12 = arith.constant 0 : index
    %c0_13 = arith.constant 0 : index
    %18 = vector.load %arg0[%c6, %c0_12, %c0_13] : memref<36x2x192xbf16, #tpu.memory_space<vmem>>, vector<1x2x192xbf16>
    %19 = vector.shape_cast %18 : vector<1x2x192xbf16> to vector<2x192xbf16>
    %20 = arith.maximumf %17, %19 : vector<2x192xbf16>
    %c7 = arith.constant 7 : index
    %c0_14 = arith.constant 0 : index
    %c0_15 = arith.constant 0 : index
    %21 = vector.load %arg0[%c7, %c0_14, %c0_15] : memref<36x2x192xbf16, #tpu.memory_space<vmem>>, vector<1x2x192xbf16>
    %22 = vector.shape_cast %21 : vector<1x2x192xbf16> to vector<2x192xbf16>
    %23 = arith.maximumf %20, %22 : vector<2x192xbf16>
    %c8 = arith.constant 8 : index
    %c0_16 = arith.constant 0 : index
    %c0_17 = arith.constant 0 : index
    %24 = vector.load %arg0[%c8, %c0_16, %c0_17] : memref<36x2x192xbf16, #tpu.memory_space<vmem>>, vector<1x2x192xbf16>
    %25 = vector.shape_cast %24 : vector<1x2x192xbf16> to vector<2x192xbf16>
    %26 = arith.maximumf %23, %25 : vector<2x192xbf16>
    %c0_18 = arith.constant 0 : index
    %c0_19 = arith.constant 0 : index
    %27 = vector.load %arg1[%c0_18, %c0_19] : memref<768x400xbf16, #tpu.memory_space<vmem>>, vector<192x400xbf16>
    %cst_20 = arith.constant dense<0.000000e+00> : vector<2x400xf32>
    %28 = tpu.matmul %26, %27, %cst_20 {dimension_numbers = #tpu.dot_dimension_numbers<[1], [0], [0], [1], [0, 0, 1, 1], [], []>} : vector<2x192xbf16>, vector<192x400xbf16>, vector<2x400xf32> -> vector<2x400xf32>
    %29 = arith.addf %0, %28 : vector<2x400xf32>
    %c9 = arith.constant 9 : index
    %c0_21 = arith.constant 0 : index
    %c0_22 = arith.constant 0 : index
    %30 = vector.load %arg0[%c9, %c0_21, %c0_22] : memref<36x2x192xbf16, #tpu.memory_space<vmem>>, vector<1x2x192xbf16>
    %31 = vector.shape_cast %30 : vector<1x2x192xbf16> to vector<2x192xbf16>
    %c10 = arith.constant 10 : index
    %c0_23 = arith.constant 0 : index
    %c0_24 = arith.constant 0 : index
    %32 = vector.load %arg0[%c10, %c0_23, %c0_24] : memref<36x2x192xbf16, #tpu.memory_space<vmem>>, vector<1x2x192xbf16>
    %33 = vector.shape_cast %32 : vector<1x2x192xbf16> to vector<2x192xbf16>
    %34 = arith.maximumf %31, %33 : vector<2x192xbf16>
    %c11 = arith.constant 11 : index
    %c0_25 = arith.constant 0 : index
    %c0_26 = arith.constant 0 : index
    %35 = vector.load %arg0[%c11, %c0_25, %c0_26] : memref<36x2x192xbf16, #tpu.memory_space<vmem>>, vector<1x2x192xbf16>
    %36 = vector.shape_cast %35 : vector<1x2x192xbf16> to vector<2x192xbf16>
    %37 = arith.maximumf %34, %36 : vector<2x192xbf16>
    %c12 = arith.constant 12 : index
    %c0_27 = arith.constant 0 : index
    %c0_28 = arith.constant 0 : index
    %38 = vector.load %arg0[%c12, %c0_27, %c0_28] : memref<36x2x192xbf16, #tpu.memory_space<vmem>>, vector<1x2x192xbf16>
    %39 = vector.shape_cast %38 : vector<1x2x192xbf16> to vector<2x192xbf16>
    %40 = arith.maximumf %37, %39 : vector<2x192xbf16>
    %c13 = arith.constant 13 : index
    %c0_29 = arith.constant 0 : index
    %c0_30 = arith.constant 0 : index
    %41 = vector.load %arg0[%c13, %c0_29, %c0_30] : memref<36x2x192xbf16, #tpu.memory_space<vmem>>, vector<1x2x192xbf16>
    %42 = vector.shape_cast %41 : vector<1x2x192xbf16> to vector<2x192xbf16>
    %43 = arith.maximumf %40, %42 : vector<2x192xbf16>
    %c14 = arith.constant 14 : index
    %c0_31 = arith.constant 0 : index
    %c0_32 = arith.constant 0 : index
    %44 = vector.load %arg0[%c14, %c0_31, %c0_32] : memref<36x2x192xbf16, #tpu.memory_space<vmem>>, vector<1x2x192xbf16>
    %45 = vector.shape_cast %44 : vector<1x2x192xbf16> to vector<2x192xbf16>
    %46 = arith.maximumf %43, %45 : vector<2x192xbf16>
    %c15 = arith.constant 15 : index
    %c0_33 = arith.constant 0 : index
    %c0_34 = arith.constant 0 : index
    %47 = vector.load %arg0[%c15, %c0_33, %c0_34] : memref<36x2x192xbf16, #tpu.memory_space<vmem>>, vector<1x2x192xbf16>
    %48 = vector.shape_cast %47 : vector<1x2x192xbf16> to vector<2x192xbf16>
    %49 = arith.maximumf %46, %48 : vector<2x192xbf16>
    %c16 = arith.constant 16 : index
    %c0_35 = arith.constant 0 : index
    %c0_36 = arith.constant 0 : index
    %50 = vector.load %arg0[%c16, %c0_35, %c0_36] : memref<36x2x192xbf16, #tpu.memory_space<vmem>>, vector<1x2x192xbf16>
    %51 = vector.shape_cast %50 : vector<1x2x192xbf16> to vector<2x192xbf16>
    %52 = arith.maximumf %49, %51 : vector<2x192xbf16>
    %c17 = arith.constant 17 : index
    %c0_37 = arith.constant 0 : index
    %c0_38 = arith.constant 0 : index
    %53 = vector.load %arg0[%c17, %c0_37, %c0_38] : memref<36x2x192xbf16, #tpu.memory_space<vmem>>, vector<1x2x192xbf16>
    %54 = vector.shape_cast %53 : vector<1x2x192xbf16> to vector<2x192xbf16>
    %55 = arith.maximumf %52, %54 : vector<2x192xbf16>
    %c192 = arith.constant 192 : index
    %c0_39 = arith.constant 0 : index
    %56 = vector.load %arg1[%c192, %c0_39] : memref<768x400xbf16, #tpu.memory_space<vmem>>, vector<192x400xbf16>
    %cst_40 = arith.constant dense<0.000000e+00> : vector<2x400xf32>
    %57 = tpu.matmul %55, %56, %cst_40 {dimension_numbers = #tpu.dot_dimension_numbers<[1], [0], [0], [1], [0, 0, 1, 1], [], []>} : vector<2x192xbf16>, vector<192x400xbf16>, vector<2x400xf32> -> vector<2x400xf32>
    %58 = arith.addf %29, %57 : vector<2x400xf32>
    %c18 = arith.constant 18 : index
    %c0_41 = arith.constant 0 : index
    %c0_42 = arith.constant 0 : index
    %59 = vector.load %arg0[%c18, %c0_41, %c0_42] : memref<36x2x192xbf16, #tpu.memory_space<vmem>>, vector<1x2x192xbf16>
    %60 = vector.shape_cast %59 : vector<1x2x192xbf16> to vector<2x192xbf16>
    %c19 = arith.constant 19 : index
    %c0_43 = arith.constant 0 : index
    %c0_44 = arith.constant 0 : index
    %61 = vector.load %arg0[%c19, %c0_43, %c0_44] : memref<36x2x192xbf16, #tpu.memory_space<vmem>>, vector<1x2x192xbf16>
    %62 = vector.shape_cast %61 : vector<1x2x192xbf16> to vector<2x192xbf16>
    %63 = arith.maximumf %60, %62 : vector<2x192xbf16>
    %c20 = arith.constant 20 : index
    %c0_45 = arith.constant 0 : index
    %c0_46 = arith.constant 0 : index
    %64 = vector.load %arg0[%c20, %c0_45, %c0_46] : memref<36x2x192xbf16, #tpu.memory_space<vmem>>, vector<1x2x192xbf16>
    %65 = vector.shape_cast %64 : vector<1x2x192xbf16> to vector<2x192xbf16>
    %66 = arith.maximumf %63, %65 : vector<2x192xbf16>
    %c21 = arith.constant 21 : index
    %c0_47 = arith.constant 0 : index
    %c0_48 = arith.constant 0 : index
    %67 = vector.load %arg0[%c21, %c0_47, %c0_48] : memref<36x2x192xbf16, #tpu.memory_space<vmem>>, vector<1x2x192xbf16>
    %68 = vector.shape_cast %67 : vector<1x2x192xbf16> to vector<2x192xbf16>
    %69 = arith.maximumf %66, %68 : vector<2x192xbf16>
    %c22 = arith.constant 22 : index
    %c0_49 = arith.constant 0 : index
    %c0_50 = arith.constant 0 : index
    %70 = vector.load %arg0[%c22, %c0_49, %c0_50] : memref<36x2x192xbf16, #tpu.memory_space<vmem>>, vector<1x2x192xbf16>
    %71 = vector.shape_cast %70 : vector<1x2x192xbf16> to vector<2x192xbf16>
    %72 = arith.maximumf %69, %71 : vector<2x192xbf16>
    %c23 = arith.constant 23 : index
    %c0_51 = arith.constant 0 : index
    %c0_52 = arith.constant 0 : index
    %73 = vector.load %arg0[%c23, %c0_51, %c0_52] : memref<36x2x192xbf16, #tpu.memory_space<vmem>>, vector<1x2x192xbf16>
    %74 = vector.shape_cast %73 : vector<1x2x192xbf16> to vector<2x192xbf16>
    %75 = arith.maximumf %72, %74 : vector<2x192xbf16>
    %c24 = arith.constant 24 : index
    %c0_53 = arith.constant 0 : index
    %c0_54 = arith.constant 0 : index
    %76 = vector.load %arg0[%c24, %c0_53, %c0_54] : memref<36x2x192xbf16, #tpu.memory_space<vmem>>, vector<1x2x192xbf16>
    %77 = vector.shape_cast %76 : vector<1x2x192xbf16> to vector<2x192xbf16>
    %78 = arith.maximumf %75, %77 : vector<2x192xbf16>
    %c25 = arith.constant 25 : index
    %c0_55 = arith.constant 0 : index
    %c0_56 = arith.constant 0 : index
    %79 = vector.load %arg0[%c25, %c0_55, %c0_56] : memref<36x2x192xbf16, #tpu.memory_space<vmem>>, vector<1x2x192xbf16>
    %80 = vector.shape_cast %79 : vector<1x2x192xbf16> to vector<2x192xbf16>
    %81 = arith.maximumf %78, %80 : vector<2x192xbf16>
    %c26 = arith.constant 26 : index
    %c0_57 = arith.constant 0 : index
    %c0_58 = arith.constant 0 : index
    %82 = vector.load %arg0[%c26, %c0_57, %c0_58] : memref<36x2x192xbf16, #tpu.memory_space<vmem>>, vector<1x2x192xbf16>
    %83 = vector.shape_cast %82 : vector<1x2x192xbf16> to vector<2x192xbf16>
    %84 = arith.maximumf %81, %83 : vector<2x192xbf16>
    %c384 = arith.constant 384 : index
    %c0_59 = arith.constant 0 : index
    %85 = vector.load %arg1[%c384, %c0_59] : memref<768x400xbf16, #tpu.memory_space<vmem>>, vector<192x400xbf16>
    %cst_60 = arith.constant dense<0.000000e+00> : vector<2x400xf32>
    %86 = tpu.matmul %84, %85, %cst_60 {dimension_numbers = #tpu.dot_dimension_numbers<[1], [0], [0], [1], [0, 0, 1, 1], [], []>} : vector<2x192xbf16>, vector<192x400xbf16>, vector<2x400xf32> -> vector<2x400xf32>
    %87 = arith.addf %58, %86 : vector<2x400xf32>
    %c27 = arith.constant 27 : index
    %c0_61 = arith.constant 0 : index
    %c0_62 = arith.constant 0 : index
    %88 = vector.load %arg0[%c27, %c0_61, %c0_62] : memref<36x2x192xbf16, #tpu.memory_space<vmem>>, vector<1x2x192xbf16>
    %89 = vector.shape_cast %88 : vector<1x2x192xbf16> to vector<2x192xbf16>
    %c28 = arith.constant 28 : index
    %c0_63 = arith.constant 0 : index
    %c0_64 = arith.constant 0 : index
    %90 = vector.load %arg0[%c28, %c0_63, %c0_64] : memref<36x2x192xbf16, #tpu.memory_space<vmem>>, vector<1x2x192xbf16>
    %91 = vector.shape_cast %90 : vector<1x2x192xbf16> to vector<2x192xbf16>
    %92 = arith.maximumf %89, %91 : vector<2x192xbf16>
    %c29 = arith.constant 29 : index
    %c0_65 = arith.constant 0 : index
    %c0_66 = arith.constant 0 : index
    %93 = vector.load %arg0[%c29, %c0_65, %c0_66] : memref<36x2x192xbf16, #tpu.memory_space<vmem>>, vector<1x2x192xbf16>
    %94 = vector.shape_cast %93 : vector<1x2x192xbf16> to vector<2x192xbf16>
    %95 = arith.maximumf %92, %94 : vector<2x192xbf16>
    %c30 = arith.constant 30 : index
    %c0_67 = arith.constant 0 : index
    %c0_68 = arith.constant 0 : index
    %96 = vector.load %arg0[%c30, %c0_67, %c0_68] : memref<36x2x192xbf16, #tpu.memory_space<vmem>>, vector<1x2x192xbf16>
    %97 = vector.shape_cast %96 : vector<1x2x192xbf16> to vector<2x192xbf16>
    %98 = arith.maximumf %95, %97 : vector<2x192xbf16>
    %c31 = arith.constant 31 : index
    %c0_69 = arith.constant 0 : index
    %c0_70 = arith.constant 0 : index
    %99 = vector.load %arg0[%c31, %c0_69, %c0_70] : memref<36x2x192xbf16, #tpu.memory_space<vmem>>, vector<1x2x192xbf16>
    %100 = vector.shape_cast %99 : vector<1x2x192xbf16> to vector<2x192xbf16>
    %101 = arith.maximumf %98, %100 : vector<2x192xbf16>
    %c32 = arith.constant 32 : index
    %c0_71 = arith.constant 0 : index
    %c0_72 = arith.constant 0 : index
    %102 = vector.load %arg0[%c32, %c0_71, %c0_72] : memref<36x2x192xbf16, #tpu.memory_space<vmem>>, vector<1x2x192xbf16>
    %103 = vector.shape_cast %102 : vector<1x2x192xbf16> to vector<2x192xbf16>
    %104 = arith.maximumf %101, %103 : vector<2x192xbf16>
    %c33 = arith.constant 33 : index
    %c0_73 = arith.constant 0 : index
    %c0_74 = arith.constant 0 : index
    %105 = vector.load %arg0[%c33, %c0_73, %c0_74] : memref<36x2x192xbf16, #tpu.memory_space<vmem>>, vector<1x2x192xbf16>
    %106 = vector.shape_cast %105 : vector<1x2x192xbf16> to vector<2x192xbf16>
    %107 = arith.maximumf %104, %106 : vector<2x192xbf16>
    %c34 = arith.constant 34 : index
    %c0_75 = arith.constant 0 : index
    %c0_76 = arith.constant 0 : index
    %108 = vector.load %arg0[%c34, %c0_75, %c0_76] : memref<36x2x192xbf16, #tpu.memory_space<vmem>>, vector<1x2x192xbf16>
    %109 = vector.shape_cast %108 : vector<1x2x192xbf16> to vector<2x192xbf16>
    %110 = arith.maximumf %107, %109 : vector<2x192xbf16>
    %c35 = arith.constant 35 : index
    %c0_77 = arith.constant 0 : index
    %c0_78 = arith.constant 0 : index
    %111 = vector.load %arg0[%c35, %c0_77, %c0_78] : memref<36x2x192xbf16, #tpu.memory_space<vmem>>, vector<1x2x192xbf16>
    %112 = vector.shape_cast %111 : vector<1x2x192xbf16> to vector<2x192xbf16>
    %113 = arith.maximumf %110, %112 : vector<2x192xbf16>
    %c576 = arith.constant 576 : index
    %c0_79 = arith.constant 0 : index
    %114 = vector.load %arg1[%c576, %c0_79] : memref<768x400xbf16, #tpu.memory_space<vmem>>, vector<192x400xbf16>
    %cst_80 = arith.constant dense<0.000000e+00> : vector<2x400xf32>
    %115 = tpu.matmul %113, %114, %cst_80 {dimension_numbers = #tpu.dot_dimension_numbers<[1], [0], [0], [1], [0, 0, 1, 1], [], []>} : vector<2x192xbf16>, vector<192x400xbf16>, vector<2x400xf32> -> vector<2x400xf32>
    %116 = arith.addf %87, %115 : vector<2x400xf32>
    %c0_81 = arith.constant 0 : index
    %c0_82 = arith.constant 0 : index
    %117 = vector.load %arg2[%c0_81, %c0_82] : memref<1x400xf32, #tpu.memory_space<vmem>>, vector<1x400xf32>
    %118 = vector.broadcast %117 : vector<1x400xf32> to vector<2x400xf32>
    %119 = arith.addf %116, %118 : vector<2x400xf32>
    %cst_83 = arith.constant 0.000000e+00 : f32
    %120 = vector.broadcast %cst_83 : f32 to vector<2x400xf32>
    %121 = arith.maximumf %119, %120 : vector<2x400xf32>
    %c0_84 = arith.constant 0 : index
    %c0_85 = arith.constant 0 : index
    %122 = vector.load %arg3[%c0_84, %c0_85] : memref<400x128xf32, #tpu.memory_space<vmem>>, vector<400x128xf32>
    %cst_86 = arith.constant dense<0.000000e+00> : vector<2x128xf32>
    %123 = tpu.matmul %121, %122, %cst_86 {dimension_numbers = #tpu.dot_dimension_numbers<[1], [0], [0], [1], [0, 0, 1, 1], [], []>} : vector<2x400xf32>, vector<400x128xf32>, vector<2x128xf32> -> vector<2x128xf32>
    %c0_87 = arith.constant 0 : index
    %c0_88 = arith.constant 0 : index
    %124 = vector.load %arg4[%c0_87, %c0_88] : memref<1x128xf32, #tpu.memory_space<vmem>>, vector<1x128xf32>
    %125 = vector.broadcast %124 : vector<1x128xf32> to vector<2x128xf32>
    %126 = arith.addf %123, %125 : vector<2x128xf32>
    %c0_89 = arith.constant 0 : index
    %c0_90 = arith.constant 0 : index
    %127 = vector.load %arg5[%c0_89, %c0_90] : memref<2x128xf32, #tpu.memory_space<vmem>>, vector<2x128xf32>
    tpu.vector_store %arg5[%c0_89, %c0_90], %126 {strides = array<i32>} : memref<2x128xf32, #tpu.memory_space<vmem>>, vector<2x128xf32>,
    return
  }
}

</mosaic_0001>

<bundles_post_ra>
// kernel: _lambda_.6
= control target key start
LH: loop header
LB: loop body
LE: loop exit
PB: predicated region body
PF: predicated region fallthrough
CT: control target
= control target key end

     0   :  { %8 = vsyncpa [#allocation3], 0  ;;  %s1248_s0 = inlined_call_operand.vmem [shape: bf16[1024,25], index: 0, kind: input, shape index: {}]   ;;  %s1249_s1 = inlined_call_operand.hbm [shape: bf16[25,32], index: 1, kind: input, shape index: {}]   ;;  %s1250_s2 = inlined_call_operand.hbm [shape: f32[1,32], index: 2, kind: input, shape index: {}]   ;;  %s1251_s3 = inlined_call_operand.vmem [shape: bf16[1024,32], index: 3, kind: output, shape index: {}]  }
   0x1   :  { %9 = vsyncpa [#allocation5], 0  ;;  %s984_s12 = smov 0  }
   0x2 LB: > { %s713_s13 = sadd.s32 4294967295, %s957_s12   ;;  %p715_p0 = scmp.ge.s32.totalorder %s957_s12, 1  ;;  %s957_s12 = sphi %s984_s12, %s15_s12  }
   0x3   : > { %p114_p1 = scmp.lt.s32.totalorder %s957_s12, 9  ;;  %s959_s14 = smov [#allocation2]  }
   0x4   : > { %s126_s15 = sshll.u32 %s959_s14, 4  ;;  %p998_p3 = scmp.eq.s32.totalorder %s713_s13, 0  ;;  %s127_s15 = int_to_ptr.vmem [resolvable:$true] %s126_s15 }
   0x5   : > { %p992_p2 = pnand %p715_p0, %p114_p1  ;;  %s960_s18 = smov [#allocation4]  }
   0x6   : > { %s1256_s17 = scalar_select %p998_p3, 1, 0 }
   0x7   : > { %s1255_s16 = scalar_select %p992_p2, 1, 0 }
   0x8   : > { %p821_p4 = pneg %p992_p2  ;;  %s140_s19 = sshll.u32 %s960_s18, 4  ;;  %s1010_s19 = int_to_ptr.vmem [resolvable:$true] %s140_s19 }
   0x9   : > { %s887_s23 = scalar_lea.hbm %s1249_s1, 256 }
   0xa   : > { %p1006_p5 = pnand %p998_p3, %p821_p4  ;;  %p888_p6 = scmp.ne.s32.totalorder %s1249_s1, %s887_s23 }
   0xb   : > { %p894_p10 = scmp.lt.u32.totalorder %s887_s23, %s1249_s1 }
   0xc   : > { %p889_p7 = pneg %p1006_p5 }
   0xe   : > { %p890_p8 = pnand %p889_p7, %p888_p6 }
  0x10   : > { %p891_p9 = pneg %p890_p8 }
  0x12   : > { %p896_p11 = pnand %p894_p10, %p891_p9 }
  0x14   : > { %899 = shalt.err (!%p896_p11)
}
  0x15   : > { %s900_s28 = scalar_lea.vmem %s127_s15, 256  ;;  %p908_p1 = scmp.lt.s32.totalorder %s127_s15, %s127_s15 }
  0x16   : > { %p901_p12 = scmp.ne.s32.totalorder %s127_s15, %s900_s28  ;;  %p909_p4 = scmp.lt.s32.totalorder %s900_s28, %s900_s28 }
  0x18   : > { %p903_p13 = pnand %p901_p12, %p889_p7  ;;  %p910_p3 = por %p909_p4, %p908_p1 }
  0x1a   : > { %p904_p0 = pneg %p903_p13 }
  0x1c   : > { %p911_p2 = pnand %p910_p3, %p904_p0 }
  0x1e   : > { %914 = shalt.err (!%p911_p2)
}
  0x1f   : > { %s961_s29 = smov 64   ;;  %s962_s30 = smov 4  }
  0x20   : > { %824 = dma.hbm_to_vmem [thread:$0]  (!%p1006_p5), %s1249_s1, 256, %s127_s15, [#allocation3], %s961_s29, %s961_s29, %s962_s30  }
  0x21   : > { %s915_s8 = scalar_lea.hbm %s1250_s2, 16 }
  0x22   : > { %p916_p6 = scmp.ne.s32.totalorder %s1250_s2, %s915_s8  ;;  %p922_p8 = scmp.lt.u32.totalorder %s915_s8, %s1250_s2 }
  0x24   : > { %p918_p2 = pnand %p916_p6, %p889_p7 }
  0x26   : > { %p919_p3 = pneg %p918_p2 }
  0x28   : > { %p924_p9 = pnand %p922_p8, %p919_p3 }
  0x2a   : > { %927 = shalt.err (!%p924_p9)
}
  0x2b   : > { %s928_s15 = scalar_lea.vmem %s1010_s19, 16  ;;  %s935_s18 = scalar_lea.vmem %s1010_s19, 32 }
  0x2c   : > { %p929_p10 = scmp.ne.s32.totalorder %s1010_s19, %s928_s15  ;;  %p936_p13 = scmp.lt.s32.totalorder %s1010_s19, %s1010_s19 }
  0x2d   : > { %p937_p0 = scmp.lt.s32.totalorder %s935_s18, %s928_s15 }
  0x2e   : > { %p931_p11 = pnand %p929_p10, %p889_p7 }
  0x2f   : > { %p938_p1 = por %p937_p0, %p936_p13 }
  0x30   : > { %p932_p12 = pneg %p931_p11 }
  0x32   : > { %p939_p4 = pnand %p938_p1, %p932_p12 }
  0x34   : > { %942 = shalt.err (!%p939_p4)
}
  0x35   : > { %827 = dma.hbm_to_vmem [thread:$0]  (!%p1006_p5), %s1250_s2, 16, %s1010_s19, [#allocation5]  }
  0x36   : > { %p1258_p6 = scmp.ne.s32.totalorder %s1255_s16, 0 }
  0x37   : > { %p1259_p7 = scmp.ne.s32.totalorder (!%p1258_p6), %s1256_s17, 0 }
  0x38   : > { %162 = sbr.rel (%p1258_p6) target bundleno = 349 (0x15d), region = 32 }
  0x3f   : > { %948 = dma.done.wait (%p1259_p7), [#allocation3], 256  }
  0x40   : > { %950 = vsyncadd (%p1259_p7), [#allocation3], 4294967040 }
  0x41   : > { %952 = dma.done.wait (%p1259_p7), [#allocation5], 16  }
  0x42   : > { %954 = vsyncadd (%p1259_p7), [#allocation5], 4294967280  ;;  %s722_s20 = sshll.u32 %s713_s13, 4  ;;  %vm306_vm0 = vcmask 1043456   ;;  %vm307_vm1 = vcmask 1044480   ;;  %v963_v0 = vmov 65535  }
  0x43   : > { %p191_p5 = scmp.lt.s32.totalorder %s722_s20, 127  ;;  %v308_v1 = vsel %vm306_vm0, 4294967295, %v963_v0  ;;  %vm281_vm2 = vcmask 203776   ;;  %v845_v2 = vld [vmem:[#allocation2] sm:$0xff]   ;;  %v846_v4 = vld [vmem:[#allocation2 + $0x8] sm:$0x1f]  }
  0x44   : > { %v309_v3 = vsel %vm307_vm1, %v308_v1, 0  ;;  %789 = vmatprep.subr.bf16.mxu0 %v845_v2  ;;  %809 = vmatprep.subr.bf16.mxu1 %v845_v2  ;;  %v1088_v14 = vld [vmem:[#allocation4] ss:$0 sm:$0xff]  ;;  %vm618_vm3 = vcmask 257024  }
  0x45   : > { %s1261_s20 = smov (!%p191_p5, %s722_s20), 127  ;;  %790 = vmatpush3.bf16.msra.mxu0 %v845_v2  ;;  %811 = vmatpush3.bf16.msra.mxu1 %v845_v2  ;;  %v311_v6 = vand.u32 %v846_v4, %v309_v3 }
  0x46   : > { %s723_s16 = sshll.u32 %s1261_s20, 2 }
  0x47   : > { %s194_s24 = scalar_lea.vmem %s1248_s0, %s723_s16  ;;  %791 = vmatprep.subr.bf16.mxu0 %v311_v6  ;;  %810 = vmatprep.subr.bf16.mxu1 %v311_v6  ;;  %s1179_s25 = scalar_lea.vmem %s1251_s3, %s723_s16 }
  0x48   : > { %v847_v5 = vld [vmem:[%s194_s24] sm:$0xff]   ;;  %v849_v8 = vld [vmem:[%s194_s24 + $0x8] sm:$0xff]   ;;  %v851_v10 = vld [vmem:[%s194_s24 + $0x10] sm:$0xff]  }
  0x49   : > { %v848_v7 = vld [vmem:[%s194_s24 + $0x20] sm:$0xff]   ;;  %793 = vmatprep.mubr.msk.bf16.mxu0 %vm281_vm2, %v847_v5  ;;  %v850_v9 = vld [vmem:[%s194_s24 + $0x28] sm:$0xff]   ;;  %792 = vmatpush3.bf16.msra.mxu0 %v311_v6  ;;  %v852_v11 = vld [vmem:[%s194_s24 + $0x30] sm:$0xff]  }
  0x4a   : > { %801 = vmatprep.mubr.msk.bf16.mxu1 %vm281_vm2, %v848_v7  ;;  %812 = vmatpush3.bf16.msra.mxu1 %v311_v6  ;;  %v853_v12 = vld [vmem:[%s194_s24 + $0x18] sm:$0xff]  }
  0x4b   : > { %v854_v13 = vld [vmem:[%s194_s24 + $0x38] sm:$0xff]  }
  0x4c   : > { %794 = vmatmul.mubr.msk.bf16.vlgmr.msra.gmra.mrb[0].mxu0 %vm281_vm2, %v849_v8 }
  0x4d   : > { %802 = vmatmul.mubr.msk.bf16.vlgmr.msra.gmra.mrb[0].mxu1 %vm281_vm2, %v850_v9  ;;  %797 = vmatprep.mubr.msk.bf16.mxu0 %vm281_vm2, %v851_v10 }
  0x4e   : > { %805 = vmatprep.mubr.msk.bf16.mxu1 %vm281_vm2, %v852_v11 }
  0x54   : > { %798 = vmatmul.mubr.msk.bf16.gmra.mrb[4].mxu0 %vm281_vm2, %v853_v12 }
  0x55   : > { %806 = vmatmul.mubr.msk.bf16.gmra.mrb[4].mxu1 %vm281_vm2, %v854_v13 }
 0x11f   : > { %v795_v15 = vpop.f32.mrb[0].mxu0 }
 0x120   : > { %v803_v16 = vpop.f32.mrb[0].mxu1  ;;  %v356_v17 = vadd.f32 %v795_v15, %v1088_v14  ;;  %v347_v19 = vpop.f32.mrb[1].mxu0 }
 0x121   : > { %v388_v18 = vadd.f32 %v803_v16, %v1088_v14  ;;  %v379_v20 = vpop.f32.mrb[1].mxu1  ;;  %v348_v21 = vadd.f32 %v1088_v14, %v347_v19  ;;  %v796_v23 = vpop.f32.mrb[2].mxu0 }
 0x122   : > { %v1094_v22 = vadd.f32 %v1088_v14, %v379_v20  ;;  %v804_v24 = vpop.f32.mrb[2].mxu1  ;;  %v428_v25 = vmul.f32 0.044715, %v356_v17  ;;  %v1098_v31 = vadd.f32 %v796_v23, %v1088_v14  ;;  %v350_v33 = vpop.f32.mrb[3].mxu0  ;;  %v1117_v58 = vmul.f32 0.5, %v356_v17 }
 0x123   : > { %v436_v26 = vmul.f32 0.044715, %v388_v18  ;;  %v426_v27 = vmul.f32 0.044715, %v348_v21  ;;  %v1101_v32 = vadd.f32 %v804_v24, %v1088_v14  ;;  %v382_v34 = vpop.f32.mrb[3].mxu1  ;;  %v1105_v37 = vadd.f32 %v1088_v14, %v350_v33 }
 0x124   : > { %v434_v28 = vmul.f32 0.044715, %v1094_v22  ;;  %v444_v29 = vmul.f32 %v428_v25, %v356_v17  ;;  %v429_v40 = vmul.f32 0.044715, %v1098_v31  ;;  %v1112_v49 = vadd.f32 %v1088_v14, %v382_v34 }
 0x125   : > { %v452_v30 = vmul.f32 %v436_v26, %v388_v18  ;;  %v442_v35 = vmul.f32 %v426_v27, %v348_v21  ;;  %v437_v43 = vmul.f32 0.044715, %v1101_v32  ;;  %v427_v55 = vmul.f32 0.044715, %v1105_v37 }
 0x126   : > { %v450_v36 = vmul.f32 %v434_v28, %v1094_v22  ;;  %v460_v38 = vmul.f32 %v444_v29, %v356_v17  ;;  %v445_v48 = vmul.f32 %v429_v40, %v1098_v31  ;;  %v435_v5 = vmul.f32 0.044715, %v1112_v49 }
 0x127   : > { %v468_v39 = vmul.f32 %v452_v30, %v388_v18  ;;  %v458_v41 = vmul.f32 %v442_v35, %v348_v21  ;;  %v799_v44 = vpop.f32.mrb[4].mxu0  ;;  %v453_v54 = vmul.f32 %v437_v43, %v1101_v32  ;;  %v443_v2 = vmul.f32 %v427_v55, %v1105_v37 }
 0x128   : > { %v466_v42 = vmul.f32 %v450_v36, %v1094_v22  ;;  %v807_v45 = vpop.f32.mrb[4].mxu1  ;;  %v476_v46 = vadd.f32 %v460_v38, %v356_v17  ;;  %v363_v50 = vpop.f32.mrb[5].mxu0  ;;  %v461_v61 = vmul.f32 %v445_v48, %v1098_v31  ;;  %v1129_v6 = vadd.f32 %v799_v44, %v1088_v14 }
 0x129   : > { %v484_v47 = vadd.f32 %v468_v39, %v388_v18  ;;  %v395_v51 = vpop.f32.mrb[5].mxu1  ;;  %v474_v52 = vadd.f32 %v458_v41, %v348_v21  ;;  %v800_v56 = vpop.f32.mrb[6].mxu0  ;;  %v469_v1 = vmul.f32 %v453_v54, %v1101_v32  ;;  %v459_v8 = vmul.f32 %v443_v2, %v1105_v37 }
 0x12a   : > { %v482_v53 = vadd.f32 %v466_v42, %v1094_v22  ;;  %v808_v57 = vpop.f32.mrb[6].mxu1  ;;  %v492_v59 = vmul.f32 0.7978846, %v476_v46  ;;  %v1120_v62 = vpop.f32.mrb[7].mxu0  ;;  %v477_v4 = vadd.f32 %v461_v61, %v1098_v31  ;;  %v1134_v9 = vadd.f32 %v807_v45, %v1088_v14 }
 0x12b   : > { %v500_v60 = vmul.f32 0.7978846, %v484_v47  ;;  %v490_v63 = vmul.f32 0.7978846, %v474_v52  ;;  %v1124_v3 = vpop.f32.mrb[7].mxu1  ;;  %v485_v7 = vadd.f32 %v469_v1, %v1101_v32  ;;  %v420_v10 = vmul.f32 0.5, %v388_v18 }
 0x12c   : > { %v498_v0 = vmul.f32 0.7978846, %v482_v53  ;;  %855 = vtanh.f32 %v492_v59  ;;  %v493_v11 = vmul.f32 0.7978846, %v477_v4  ;;  %v451_v12 = vmul.f32 %v435_v5, %v1112_v49 }
 0x12d   : > { %857 = vtanh.f32 %v500_v60  ;;  %v501_v13 = vmul.f32 0.7978846, %v485_v7  ;;  %v475_v15 = vadd.f32 %v459_v8, %v1105_v37  ;;  %v432_v16 = vmul.f32 0.044715, %v1129_v6 }
 0x12e   : > { %859 = vtanh.f32 %v490_v63  ;;  %v410_v17 = vmul.f32 0.5, %v348_v21  ;;  %v467_v19 = vmul.f32 %v451_v12, %v1112_v49  ;;  %v440_v20 = vmul.f32 0.044715, %v1134_v9 }
 0x12f   : > { %861 = vtanh.f32 %v498_v0  ;;  %v491_v23 = vmul.f32 0.7978846, %v475_v15  ;;  %v448_v18 = vmul.f32 %v432_v16, %v1129_v6  ;;  %v1143_v24 = vadd.f32 %v1088_v14, %v363_v50 }
 0x130   : > { %863 = vtanh.f32 %v493_v11  ;;  %v483_v25 = vadd.f32 %v467_v19, %v1112_v49  ;;  %v456_v26 = vmul.f32 %v440_v20, %v1134_v9  ;;  %v1148_v27 = vadd.f32 %v1088_v14, %v395_v51 }
 0x131   : > { %865 = vtanh.f32 %v501_v13  ;;  %v1151_v21 = vadd.f32 %v800_v56, %v1088_v14  ;;  %v418_v28 = vmul.f32 0.5, %v1094_v22  ;;  %v464_v29 = vmul.f32 %v448_v18, %v1129_v6 }
 0x132   : > { %867 = vtanh.f32 %v491_v23  ;;  %v430_v30 = vmul.f32 0.044715, %v1143_v24  ;;  %v413_v33 = vmul.f32 0.5, %v1098_v31  ;;  %v499_v34 = vmul.f32 0.7978846, %v483_v25 }
 0x133   : > { %v472_v35 = vmul.f32 %v456_v26, %v1134_v9  ;;  %v438_v36 = vmul.f32 0.044715, %v1148_v27  ;;  %v421_v38 = vmul.f32 0.5, %v1101_v32  ;;  %v480_v39 = vadd.f32 %v464_v29, %v1129_v6 }
 0x134   : > { %v446_v40 = vmul.f32 %v430_v30, %v1143_v24  ;;  %v433_v22 = vmul.f32 0.044715, %v1151_v21  ;;  %v411_v42 = vmul.f32 0.5, %v1105_v37  ;;  %869 = vtanh.f32 %v499_v34 }
 0x135   : > { %v488_v43 = vadd.f32 %v472_v35, %v1134_v9  ;;  %v454_v31 = vmul.f32 %v438_v36, %v1148_v27  ;;  %v496_v46 = vmul.f32 0.7978846, %v480_v39  ;;  %v1168_v47 = vadd.f32 %v808_v57, %v1088_v14 }
 0x136   : > { %v856_v41 = vpop.eup %855  ;;  %v462_v32 = vmul.f32 %v446_v40, %v1143_v24  ;;  %v449_v37 = vmul.f32 %v433_v22, %v1151_v21  ;;  %v1193_v18 = vadd.f32 %v1088_v14, %v1120_v62  ;;  %v1199_v29 = vadd.f32 %v1088_v14, %v1124_v3 }
 0x137   : > { %v858_v44 = vpop.eup %857  ;;  %v524_v45 = vadd.f32 1.0, %v856_v41  ;;  %v504_v51 = vmul.f32 0.7978846, %v488_v43  ;;  %v470_v52 = vmul.f32 %v454_v31, %v1148_v27  ;;  %871 = vtanh.f32 %v496_v46 }
 0x138   : > { %v860_v48 = vpop.eup %859  ;;  %v532_v50 = vadd.f32 1.0, %v858_v44  ;;  %v478_v56 = vadd.f32 %v462_v32, %v1143_v24  ;;  %v465_v13 = vmul.f32 %v449_v37, %v1151_v21  ;;  %v441_v23 = vmul.f32 0.044715, %v1168_v47 }
 0x139   : > { %v862_v53 = vpop.eup %861  ;;  %v540_v54 = vmul.f32 %v524_v45, %v1117_v58  ;;  %v522_v55 = vadd.f32 1.0, %v860_v48  ;;  %873 = vtanh.f32 %v504_v51  ;;  %v486_v61 = vadd.f32 %v470_v52, %v1148_v27 }
 0x13a   : > { %v864_v59 = vpop.eup %863  ;;  %v548_v57 = vmul.f32 %v532_v50, %v420_v10  ;;  %v530_v60 = vadd.f32 1.0, %v862_v53  ;;  %v494_v2 = vmul.f32 0.7978846, %v478_v56  ;;  %v481_v20 = vadd.f32 %v465_v13, %v1151_v21 }
 0x13b   : > { %v866_v63 = vpop.eup %865  ;;  %v765_v58 = vpack.c.bf16 %v540_v54, %v540_v54  ;;  %v538_v0 = vmul.f32 %v522_v55, %v410_v17  ;;  %v525_v1 = vadd.f32 1.0, %v864_v59  ;;  %v502_v8 = vmul.f32 0.7978846, %v486_v61 }
 0x13c   : > { %v773_v4 = vpack.c.bf16 %v548_v57, %v548_v57  ;;  %v546_v5 = vmul.f32 %v530_v60, %v418_v28  ;;  %v533_v7 = vadd.f32 1.0, %v866_v63  ;;  %v868_v11 = vpop.eup %867  ;;  %875 = vtanh.f32 %v494_v2 }
 0x13d   : > { %621 = vst.msk [vmem:[%s1179_s25 + $0x8] sm:$0xf] %vm618_vm3, %v765_v58  ;;  %v763_v10 = vpack.c.bf16 %v538_v0, %v538_v0  ;;  %v541_v12 = vmul.f32 %v525_v1, %v413_v33  ;;  %v523_v17 = vadd.f32 1.0, %v868_v11  ;;  %877 = vtanh.f32 %v502_v8 }
 0x13e   : > { %629 = vst.msk [vmem:[%s1179_s25 + $0x28] sm:$0xf] %vm618_vm3, %v773_v4  ;;  %v771_v15 = vpack.c.bf16 %v546_v5, %v546_v5  ;;  %v549_v16 = vmul.f32 %v533_v7, %v421_v38  ;;  %v870_v25 = vpop.eup %869  ;;  %v419_v30 = vmul.f32 0.5, %v1112_v49  ;;  %v497_v34 = vmul.f32 0.7978846, %v481_v20 }
 0x13f   : > { %619 = vst.msk [vmem:[%s1179_s25] sm:$0xf] %vm618_vm3, %v763_v10  ;;  %v766_v19 = vpack.c.bf16 %v541_v12, %v541_v12  ;;  %v539_v28 = vmul.f32 %v523_v17, %v411_v42  ;;  %v531_v33 = vadd.f32 1.0, %v870_v25  ;;  %v457_v35 = vmul.f32 %v441_v23, %v1168_v47 }
 0x140   : > { %627 = vst.msk [vmem:[%s1179_s25 + $0x20] sm:$0xf] %vm618_vm3, %v771_v15  ;;  %v774_v26 = vpack.c.bf16 %v549_v16, %v549_v16  ;;  %v431_v36 = vmul.f32 0.044715, %v1193_v18  ;;  %v439_v38 = vmul.f32 0.044715, %v1199_v29  ;;  %879 = vtanh.f32 %v497_v34 }
 0x141   : > { %622 = vst.msk [vmem:[%s1179_s25 + $0xc] sm:$0xf] %vm618_vm3, %v766_v19  ;;  %v764_v62 = vpack.c.bf16 %v539_v28, %v539_v28  ;;  %v872_v39 = vpop.eup %871  ;;  %v547_v40 = vmul.f32 %v531_v33, %v419_v30  ;;  %v473_v14 = vmul.f32 %v457_v35, %v1168_v47  ;;  %v416_v49 = vmul.f32 0.5, %v1129_v6 }
 0x142   : > { %630 = vst.msk [vmem:[%s1179_s25 + $0x2c] sm:$0xf] %vm618_vm3, %v774_v26  ;;  %v528_v22 = vadd.f32 1.0, %v872_v39  ;;  %v447_v41 = vmul.f32 %v431_v36, %v1193_v18  ;;  %v455_v42 = vmul.f32 %v439_v38, %v1199_v29  ;;  %v424_v31 = vmul.f32 0.5, %v1134_v9 }
 0x143   : > { %v874_v3 = vpop.eup %873  ;;  %620 = vst.msk [vmem:[%s1179_s25 + $0x4] sm:$0xf] %vm618_vm3, %v764_v62  ;;  %v772_v43 = vpack.c.bf16 %v547_v40, %v547_v40  ;;  %v489_v45 = vadd.f32 %v473_v14, %v1168_v47  ;;  %v414_v51 = vmul.f32 0.5, %v1143_v24  ;;  %v422_v59 = vmul.f32 0.5, %v1148_v27 }
 0x144   : > { %v536_v44 = vadd.f32 1.0, %v874_v3  ;;  %v544_v46 = vmul.f32 %v528_v22, %v416_v49  ;;  %v463_v32 = vmul.f32 %v447_v41, %v1193_v18  ;;  %v471_v48 = vmul.f32 %v455_v42, %v1199_v29 }
 0x145   : > { %628 = vst.msk [vmem:[%s1179_s25 + $0x24] sm:$0xf] %vm618_vm3, %v772_v43  ;;  %v505_v52 = vmul.f32 0.7978846, %v489_v45  ;;  %v417_v27 = vmul.f32 0.5, %v1151_v21  ;;  %v425_v8 = vmul.f32 0.5, %v1168_v47 }
 0x146   : > { %v876_v50 = vpop.eup %875  ;;  %v552_v6 = vmul.f32 %v536_v44, %v424_v31  ;;  %v769_v53 = vpack.c.bf16 %v544_v46, %v544_v46  ;;  %v479_v54 = vadd.f32 %v463_v32, %v1193_v18  ;;  %v487_v55 = vadd.f32 %v471_v48, %v1199_v29 }
 0x147   : > { %v878_v37 = vpop.eup %877  ;;  %v526_v9 = vadd.f32 1.0, %v876_v50  ;;  %881 = vtanh.f32 %v505_v52  ;;  %v415_v15 = vmul.f32 0.5, %v1193_v18  ;;  %v423_v17 = vmul.f32 0.5, %v1199_v29 }
 0x148   : > { %v777_v56 = vpack.c.bf16 %v552_v6, %v552_v6  ;;  %v534_v57 = vadd.f32 1.0, %v878_v37  ;;  %625 = vst.msk [vmem:[%s1179_s25 + $0x18] sm:$0xf] %vm618_vm3, %v769_v53  ;;  %v495_v61 = vmul.f32 0.7978846, %v479_v54 }
 0x149   : > { %v542_v60 = vmul.f32 %v526_v9, %v414_v51  ;;  %v503_v24 = vmul.f32 0.7978846, %v487_v55 }
 0x14a   : > { %633 = vst.msk [vmem:[%s1179_s25 + $0x38] sm:$0xf] %vm618_vm3, %v777_v56  ;;  %v550_v63 = vmul.f32 %v534_v57, %v422_v59  ;;  %883 = vtanh.f32 %v495_v61  ;;  %v880_v0 = vpop.eup %879 }
 0x14b   : > { %v767_v58 = vpack.c.bf16 %v542_v60, %v542_v60  ;;  %885 = vtanh.f32 %v503_v24  ;;  %v529_v2 = vadd.f32 1.0, %v880_v0 }
 0x14c   : > { %v775_v1 = vpack.c.bf16 %v550_v63, %v550_v63 }
 0x14d   : > { %623 = vst.msk [vmem:[%s1179_s25 + $0x10] sm:$0xf] %vm618_vm3, %v767_v58  ;;  %v545_v4 = vmul.f32 %v529_v2, %v417_v27 }
 0x14e   : > { %631 = vst.msk [vmem:[%s1179_s25 + $0x30] sm:$0xf] %vm618_vm3, %v775_v1 }
 0x14f   : > { %v770_v5 = vpack.c.bf16 %v545_v4, %v545_v4 }
 0x151   : > { %v882_v7 = vpop.eup %881  ;;  %626 = vst.msk [vmem:[%s1179_s25 + $0x1c] sm:$0xf] %vm618_vm3, %v770_v5 }
 0x152   : > { %v537_v11 = vadd.f32 1.0, %v882_v7 }
 0x154   : > { %v884_v10 = vpop.eup %883  ;;  %v553_v12 = vmul.f32 %v537_v11, %v425_v8 }
 0x155   : > { %v886_v13 = vpop.eup %885  ;;  %v527_v21 = vadd.f32 1.0, %v884_v10 }
 0x156   : > { %v778_v16 = vpack.c.bf16 %v553_v12, %v553_v12  ;;  %v535_v19 = vadd.f32 1.0, %v886_v13 }
 0x157   : > { %v543_v20 = vmul.f32 %v527_v21, %v415_v15 }
 0x158   : > { %634 = vst.msk [vmem:[%s1179_s25 + $0x3c] sm:$0xf] %vm618_vm3, %v778_v16  ;;  %v551_v23 = vmul.f32 %v535_v19, %v423_v17 }
 0x159   : > { %v768_v25 = vpack.c.bf16 %v543_v20, %v543_v20 }
 0x15a   : > { %v776_v26 = vpack.c.bf16 %v551_v23, %v551_v23 }
 0x15b   : > { %624 = vst.msk [vmem:[%s1179_s25 + $0x14] sm:$0xf] %vm618_vm3, %v768_v25 }
 0x15c   : > { %632 = vst.msk [vmem:[%s1179_s25 + $0x34] sm:$0xf] %vm618_vm3, %v776_v26 }
 0x15d PF: > { %s15_s12 = sadd.s32 1, %s957_s12  }
 0x15e   : > { %p12_p2 = scmp.ge.s32.totalorder %s15_s12, 10  }
 0x160   :  { %14 = sbr.rel (!%p12_p2) target bundleno = 2 (0x2), region = 71 }
 0x167   :  { %657 = vsyncpa [#allocation3], 1 }
 0x168   :  { %659 = vsyncpa [#allocation3 + $0x1], 1 }
 0x169   :  { %660 = vsyncpa [#allocation5], 1 }

// kernel: _lambda_.7
= control target key start
LH: loop header
LB: loop body
LE: loop exit
PB: predicated region body
PF: predicated region fallthrough
CT: control target
= control target key end

     0   :  { %s2218_s12 = smov 0   ;;  %s2669_s0 = inlined_call_operand.vmem [shape: bf16[768,800], index: 0, kind: input, shape index: {}]   ;;  %s2670_s1 = inlined_call_operand.vmem [shape: bf16[800,32], index: 1, kind: input, shape index: {}]   ;;  %s2671_s2 = inlined_call_operand.vmem [shape: f32[1,32], index: 2, kind: input, shape index: {}]   ;;  %s2672_s3 = inlined_call_operand.vmem [shape: bf16[768,32], index: 3, kind: output, shape index: {}]  }
   0x1 LB: > { %s1623_s13 = sadd.s32 4294967295, %s2196_s12   ;;  %p1627_p0 = scmp.ge.s32.totalorder %s2196_s12, 1  ;;  %s2196_s12 = sphi %s2218_s12, %s13_s12  }
   0x2   : > { %p139_p1 = scmp.lt.s32.totalorder %s2196_s12, 7 }
   0x4   : > { %p140_p2 = pnand %p1627_p0, %p139_p1 }
   0x5   : > { %v2028_v0 = vld [vmem:[%s2670_s1 + $0x40] sm:$0xff] (!%p140_p2)   ;;  %v2032_v4 = vld [vmem:[%s2670_s1 + $0x48] sm:$0xff] (!%p140_p2)   ;;  %v2036_v8 = vld [vmem:[%s2670_s1 + $0x50] sm:$0xff] (!%p140_p2)   ;;  %s1628_s19 = sshll.u32 (!%p140_p2), %s1623_s13, 4  ;;  %vm929_vm0 = vcmask (!%p140_p2), 261120   ;;  %vm1550_vm1 = vcmask (!%p140_p2), 257024  }
   0x6   : > { %143 = sbr.rel (%p140_p2) target bundleno = 402 (0x192), region = 32  ;;  %v2029_v1 = vld [vmem:[%s2670_s1 + $0xc0] sm:$0xff] (!%p140_p2)   ;;  %1781 = vmatprep.subr.bf16.mxu0 (!%p140_p2), %v2028_v0  ;;  %v2033_v5 = vld [vmem:[%s2670_s1 + $0xc8] sm:$0xff] (!%p140_p2)   ;;  %v2037_v9 = vld [vmem:[%s2670_s1 + $0xd0] sm:$0xff] (!%p140_p2)   ;;  %p165_p3 = scmp.lt.s32.totalorder (!%p140_p2), %s1628_s19, 95 }
   0x7   : > { %v2030_v2 = vld [vmem:[%s2670_s1] sm:$0xff] (!%p140_p2)   ;;  %1845 = vmatprep.subr.bf16.mxu1 (!%p140_p2), %v2029_v1  ;;  %v2034_v6 = vld [vmem:[%s2670_s1 + $0x8] sm:$0xff] (!%p140_p2)   ;;  %v2038_v10 = vld [vmem:[%s2670_s1 + $0x10] sm:$0xff] (!%p140_p2)  }
   0x8   : > { %v2031_v3 = vld [vmem:[%s2670_s1 + $0x80] sm:$0xff] (!%p140_p2)   ;;  %1782 = vmatpush3.bf16.msra.mxu0 (!%p140_p2), %v2030_v2  ;;  %v2035_v7 = vld [vmem:[%s2670_s1 + $0x88] sm:$0xff] (!%p140_p2)   ;;  %v2039_v11 = vld [vmem:[%s2670_s1 + $0x90] sm:$0xff] (!%p140_p2)  }
   0x9   : > { %1846 = vmatpush3.bf16.msra.mxu1 (!%p140_p2), %v2031_v3  ;;  %1783 = vmatprep.subr.bf16.mxu0 (!%p140_p2), %v2032_v4  ;;  %v2040_v12 = vld [vmem:[%s2670_s1 + $0x58] sm:$0xff] (!%p140_p2)   ;;  %v2044_v16 = vld [vmem:[%s2670_s1 + $0x60] sm:$0xff] (!%p140_p2)   ;;  %v2048_v20 = vld [vmem:[%s2670_s1 + $0x68] sm:$0xff] (!%p140_p2)  }
   0xa   : > { %1847 = vmatprep.subr.bf16.mxu1 (!%p140_p2), %v2033_v5  ;;  %v2041_v13 = vld [vmem:[%s2670_s1 + $0xd8] sm:$0xff] (!%p140_p2)   ;;  %v2045_v17 = vld [vmem:[%s2670_s1 + $0xe0] sm:$0xff] (!%p140_p2)   ;;  %v2049_v21 = vld [vmem:[%s2670_s1 + $0xe8] sm:$0xff] (!%p140_p2)  }
   0xb   : > { %v2042_v14 = vld [vmem:[%s2670_s1 + $0x18] sm:$0xff] (!%p140_p2)   ;;  %v2046_v18 = vld [vmem:[%s2670_s1 + $0x20] sm:$0xff] (!%p140_p2)   ;;  %v2050_v22 = vld [vmem:[%s2670_s1 + $0x28] sm:$0xff] (!%p140_p2)  }
   0xc   : > { %1784 = vmatpush3.bf16.msra.mxu0 (!%p140_p2), %v2034_v6  ;;  %v2043_v15 = vld [vmem:[%s2670_s1 + $0x98] sm:$0xff] (!%p140_p2)   ;;  %v2047_v19 = vld [vmem:[%s2670_s1 + $0xa0] sm:$0xff] (!%p140_p2)   ;;  %v2051_v23 = vld [vmem:[%s2670_s1 + $0xa8] sm:$0xff] (!%p140_p2)  }
   0xd   : > { %1848 = vmatpush3.bf16.msra.mxu1 %v2035_v7  ;;  %1785 = vmatprep.subr.bf16.mxu0 %v2036_v8  ;;  %s2674_s19 = smov (!%p165_p3, %s1628_s19), 95  ;;  %v2052_v24 = vld [vmem:[%s2670_s1 + $0x70] sm:$0xff]   ;;  %v2056_v28 = vld [vmem:[%s2670_s1 + $0x78] sm:$0xff]   ;;  %v2066_v36 = vld [vmem:[%s2670_s1 + $0x140] sm:$0xff]  }
   0xe   : > { %1849 = vmatprep.subr.bf16.mxu1 %v2037_v9  ;;  %v2053_v25 = vld [vmem:[%s2670_s1 + $0xf0] sm:$0xff]   ;;  %s2019_s16 = smul.u32 28, %s2674_s19  ;;  %v2057_v29 = vld [vmem:[%s2670_s1 + $0xf8] sm:$0xff]   ;;  %v2067_v37 = vld [vmem:[%s2670_s1 + $0x100] sm:$0xff]  }
   0xf   : > { %v2054_v26 = vld [vmem:[%s2670_s1 + $0x30] sm:$0xff]   ;;  %v2058_v30 = vld [vmem:[%s2670_s1 + $0x38] sm:$0xff]   ;;  %v2074_v42 = vld [vmem:[%s2670_s1 + $0x148] sm:$0xff]  }
  0x10   : > { %1786 = vmatpush3.bf16.msra.mxu0 %v2038_v10  ;;  %v2055_v27 = vld [vmem:[%s2670_s1 + $0xb0] sm:$0xff]   ;;  %s2324_s13 = scalar_lea.vmem %s2669_s0, %s2019_s16  ;;  %v2059_v31 = vld [vmem:[%s2670_s1 + $0xb8] sm:$0xff]   ;;  %v2075_v43 = vld [vmem:[%s2670_s1 + $0x108] sm:$0xff]  }
  0x11   : > { %1850 = vmatpush3.bf16.msra.mxu1 %v2039_v11  ;;  %1787 = vmatprep.subr.bf16.mxu0 %v2040_v12  ;;  %v2060_v32 = vld [vmem:[%s2324_s13] ss:$28 sps:$4 sm:$0xff]   ;;  %v2063_v34 = vld [vmem:[%s2324_s13 + $0x8] ss:$28 sps:$4 sm:$0xff]   ;;  %v2072_v40 = vld [vmem:[%s2324_s13 + $0x38] ss:$28 sps:$4 sm:$0xff]  }
  0x12   : > { %1851 = vmatprep.subr.bf16.mxu1 %v2041_v13  ;;  %v2062_v33 = vld [vmem:[%s2324_s13 + $0x4] ss:$28 sps:$4 sm:$0xff]   ;;  %v2065_v35 = vld [vmem:[%s2324_s13 + $0xc] ss:$28 sps:$4 sm:$0xff]   ;;  %v2068_v38 = vld [vmem:[%s2324_s13 + $0x3c] ss:$28 sps:$4 sm:$0xff]  }
  0x13   : > { %986 = vmatprep.mubr.bf16.mxu0 %v2062_v33  ;;  %1083 = vmatprep.mubr.bf16.mxu1 %v2065_v35  ;;  %v2070_v39 = vld [vmem:[%s2324_s13 + $0x44] ss:$28 sps:$4 sm:$0xff]   ;;  %v2076_v44 = vld [vmem:[%s2324_s13 + $0x74] ss:$28 sps:$4 sm:$0xff]   ;;  %v2078_v45 = vld [vmem:[%s2324_s13 + $0x7c] ss:$28 sps:$4 sm:$0xff]  }
  0x14   : > { %1788 = vmatpush3.bf16.msra.mxu0 %v2042_v14  ;;  %v2073_v41 = vld [vmem:[%s2324_s13 + $0x40] ss:$28 sps:$4 sm:$0xff]   ;;  %v2082_v46 = vld [vmem:[%s2670_s1 + $0x150] sm:$0xff]   ;;  %v2084_v50 = vld [vmem:[%s2324_s13 + $0xac] ss:$28 sps:$4 sm:$0xff]  }
  0x15   : > { %1852 = vmatpush3.bf16.msra.mxu1 %v2043_v15  ;;  %1789 = vmatprep.subr.bf16.mxu0 %v2044_v16  ;;  %v2083_v47 = vld [vmem:[%s2670_s1 + $0x110] sm:$0xff]   ;;  %v2090_v52 = vld [vmem:[%s2670_s1 + $0x158] sm:$0xff]   ;;  %v2098_v54 = vld [vmem:[%s2670_s1 + $0x160] sm:$0xff]  }
  0x16   : > { %1853 = vmatprep.subr.bf16.mxu1 %v2045_v17  ;;  %v2080_v48 = vld [vmem:[%s2324_s13 + $0x70] ss:$28 sps:$4 sm:$0xff]   ;;  %v2081_v49 = vld [vmem:[%s2324_s13 + $0x78] ss:$28 sps:$4 sm:$0xff]   ;;  %v2099_v55 = vld [vmem:[%s2670_s1 + $0x120] sm:$0xff]  }
  0x17   : > { %v2086_v51 = vld [vmem:[%s2324_s13 + $0xb4] ss:$28 sps:$4 sm:$0xff]   ;;  %v2091_v53 = vld [vmem:[%s2670_s1 + $0x118] sm:$0xff]   ;;  %v2088_v56 = vld [vmem:[%s2324_s13 + $0xa8] ss:$28 sps:$4 sm:$0xff]  }
  0x18   : > { %1790 = vmatpush3.bf16.msra.mxu0 %v2046_v18  ;;  %v2089_v57 = vld [vmem:[%s2324_s13 + $0xb0] ss:$28 sps:$4 sm:$0xff]   ;;  %v2092_v58 = vld [vmem:[%s2324_s13 + $0xe4] ss:$28 sps:$4 sm:$0xff]   ;;  %v2100_v2 = vld [vmem:[%s2324_s13 + $0x11c] ss:$28 sps:$4 sm:$0xff]  }
  0x19   : > { %1854 = vmatpush3.bf16.msra.mxu1 %v2047_v19  ;;  %1791 = vmatprep.subr.bf16.mxu0 %v2048_v20  ;;  %v2094_v59 = vld [vmem:[%s2324_s13 + $0xec] ss:$28 sps:$4 sm:$0xff]   ;;  %v2096_v62 = vld [vmem:[%s2324_s13 + $0xe0] ss:$28 sps:$4 sm:$0xff]   ;;  %v2114_v0 = vld [vmem:[%s2670_s1 + $0x170] sm:$0xff]  }
  0x1a   : > { %1855 = vmatprep.subr.bf16.mxu1 %v2049_v21  ;;  %v2106_v60 = vld [vmem:[%s2670_s1 + $0x168] sm:$0xff]   ;;  %v2115_v1 = vld [vmem:[%s2670_s1 + $0x130] sm:$0xff]   ;;  %v2102_v3 = vld [vmem:[%s2324_s13 + $0x124] ss:$28 sps:$4 sm:$0xff]  }
  0x1b   : > { %v2107_v61 = vld [vmem:[%s2670_s1 + $0x128] sm:$0xff]   ;;  %v2122_v4 = vld [vmem:[%s2670_s1 + $0x178] sm:$0xff]   ;;  %v2130_v8 = vld [vmem:[%s2670_s1 + $0x180] sm:$0xff]  }
  0x1c   : > { %1792 = vmatpush3.bf16.msra.mxu0 %v2050_v22  ;;  %v2097_v63 = vld [vmem:[%s2324_s13 + $0xe8] ss:$28 sps:$4 sm:$0xff]   ;;  %v2123_v5 = vld [vmem:[%s2670_s1 + $0x138] sm:$0xff]   ;;  %v2108_v9 = vld [vmem:[%s2324_s13 + $0x154] ss:$28 sps:$4 sm:$0xff]  }
  0x1d   : > { %1856 = vmatpush3.bf16.msra.mxu1 %v2051_v23  ;;  %1793 = vmatprep.subr.bf16.mxu0 %v2052_v24  ;;  %v2104_v6 = vld [vmem:[%s2324_s13 + $0x118] ss:$28 sps:$4 sm:$0xff]   ;;  %v2105_v7 = vld [vmem:[%s2324_s13 + $0x120] ss:$28 sps:$4 sm:$0xff]   ;;  %v2112_v11 = vld [vmem:[%s2324_s13 + $0x150] ss:$28 sps:$4 sm:$0xff]  }
  0x1e   : > { %1857 = vmatprep.subr.bf16.mxu1 %v2053_v25  ;;  %v2110_v10 = vld [vmem:[%s2324_s13 + $0x15c] ss:$28 sps:$4 sm:$0xff]   ;;  %v2116_v13 = vld [vmem:[%s2324_s13 + $0x18c] ss:$28 sps:$4 sm:$0xff]   ;;  %v2118_v14 = vld [vmem:[%s2324_s13 + $0x194] ss:$28 sps:$4 sm:$0xff]  }
  0x1f   : > { %v2113_v12 = vld [vmem:[%s2324_s13 + $0x158] ss:$28 sps:$4 sm:$0xff]   ;;  %v2120_v15 = vld [vmem:[%s2324_s13 + $0x188] ss:$28 sps:$4 sm:$0xff]   ;;  %v2121_v16 = vld [vmem:[%s2324_s13 + $0x190] ss:$28 sps:$4 sm:$0xff]  }
  0x20   : > { %1794 = vmatpush3.bf16.msra.mxu0 %v2054_v26  ;;  %v2126_v17 = vld [vmem:[%s2324_s13 + $0x14] ss:$28 sps:$4 sm:$0xff]   ;;  %v2129_v18 = vld [vmem:[%s2324_s13 + $0x164] ss:$28 sps:$4 sm:$0xff]   ;;  %v2131_v21 = vld [vmem:[%s2324_s13 + $0x4c] ss:$28 sps:$4 sm:$0xff]  }
  0x21   : > { %1858 = vmatpush3.bf16.msra.mxu1 %v2055_v27  ;;  %1795 = vmatprep.subr.bf16.mxu0 %v2056_v28  ;;  %v2124_v19 = vld [vmem:[%s2324_s13 + $0x10] ss:$28 sps:$4 sm:$0xff]   ;;  %v2127_v20 = vld [vmem:[%s2324_s13 + $0x160] ss:$28 sps:$4 sm:$0xff]   ;;  %v2135_v24 = vld [vmem:[%s2324_s13 + $0x48] ss:$28 sps:$4 sm:$0xff]  }
  0x22   : > { %1859 = vmatprep.subr.bf16.mxu1 %v2057_v29  ;;  %v2133_v22 = vld [vmem:[%s2324_s13 + $0x19c] ss:$28 sps:$4 sm:$0xff]   ;;  %v2137_v23 = vld [vmem:[%s2670_s1 + $0x188] sm:$0xff]   ;;  %v2138_v26 = vld [vmem:[%s2324_s13 + $0x84] ss:$28 sps:$4 sm:$0xff]  }
  0x23   : > { %v2136_v25 = vld [vmem:[%s2324_s13 + $0x198] ss:$28 sps:$4 sm:$0xff]   ;;  %v2141_v28 = vld [vmem:[%s2324_s13 + $0x80] ss:$28 sps:$4 sm:$0xff]   ;;  %v2142_v29 = vld [vmem:[%s2324_s13 + $0x50] ss:$28 sps:$4 sm:$0xff]  }
  0x24   : > { %1796 = vmatpush3.bf16.msra.mxu0 %v2058_v30  ;;  %v2140_v27 = vld [vmem:[%s2324_s13 + $0x18] ss:$28 sps:$4 sm:$0xff]   ;;  %v2147_v33 = vld [vmem:[%s2324_s13 + $0xc0] ss:$28 sps:$4 sm:$0xff]  }
  0x25   : > { %1860 = vmatpush3.bf16.msra.mxu1 %v2059_v31  ;;  %1909 = vmatprep.subr.bf16.mxu0 %v2066_v36  ;;  %v2143_v30 = vld [vmem:[%s2324_s13 + $0xbc] ss:$28 sps:$4 sm:$0xff]   ;;  %v2145_v31 = vld [vmem:[%s2324_s13 + $0x88] ss:$28 sps:$4 sm:$0xff]  }
  0x26   : > { %2003 = vmatprep.subr.bf16.mxu1 %v2066_v36  ;;  %v2150_v35 = vld [vmem:[%s2324_s13 + $0xf8] ss:$28 sps:$4 sm:$0xff]   ;;  %v2151_v36 = vld [vmem:[%s2324_s13 + $0xf0] ss:$28 sps:$4 sm:$0xff]  }
  0x27   : > { %987 = vmatmul.mubr.bf16.vlgmr.msra.gmra.mrb[0].mxu0 %v2060_v32  ;;  %v2146_v32 = vld [vmem:[%s2324_s13 + $0xb8] ss:$28 sps:$4 sm:$0xff]  }
  0x28   : > { %1084 = vmatmul.mubr.bf16.vlgmr.msra.gmra.mrb[0].mxu1 %v2063_v34  ;;  %1910 = vmatpush3.bf16.msra.mxu0 %v2067_v37  ;;  %v2148_v34 = vld [vmem:[%s2324_s13 + $0xf4] ss:$28 sps:$4 sm:$0xff]  }
  0x29   : > { %2011 = vmatpush3.bf16.msra.mxu1 %v2067_v37  ;;  %994 = vmatprep.mubr.bf16.mxu0 %v2068_v38  ;;  %v2152_v37 = vld [vmem:[%s2324_s13 + $0x130] ss:$28 sps:$4 sm:$0xff]  }
  0x2a   : > { %1091 = vmatprep.mubr.bf16.mxu1 %v2070_v39  ;;  %1911 = vmatprep.subr.bf16.mxu0 %v2074_v42  ;;  %v2153_v38 = vld [vmem:[%s2324_s13 + $0x12c] ss:$28 sps:$4 sm:$0xff]  }
  0x2b   : > { %2004 = vmatprep.subr.bf16.mxu1 %v2074_v42  ;;  %v2155_v39 = vld [vmem:[%s2324_s13 + $0x168] ss:$28 sps:$4 sm:$0xff]  }
  0x2c   : > { %1912 = vmatpush3.bf16.msra.mxu0 %v2075_v43 }
  0x2d   : > { %2012 = vmatpush3.bf16.msra.mxu1 %v2075_v43  ;;  %1913 = vmatprep.subr.bf16.mxu0 %v2082_v46  ;;  %v2453_v43 = vld [vmem:[%s2671_s2] ss:$0 sm:$0xff] }
  0x2e   : > { %2005 = vmatprep.subr.bf16.mxu1 %v2082_v46 }
  0x2f   : > { %995 = vmatmul.mubr.bf16.gmra.mrb[4].mxu0 %v2072_v40  ;;  %v2156_v40 = vld [vmem:[%s2324_s13 + $0x128] ss:$28 sps:$4 sm:$0xff]  }
  0x30   : > { %1092 = vmatmul.mubr.bf16.gmra.mrb[4].mxu1 %v2073_v41  ;;  %1002 = vmatprep.mubr.bf16.mxu0 %v2076_v44  ;;  %v2157_v41 = vld [vmem:[%s2324_s13 + $0x1a0] ss:$28 sps:$4 sm:$0xff]   ;;  %s1631_s13 = sshll.u32 %s2674_s19, 2 }
  0x31   : > { %1099 = vmatprep.mubr.bf16.mxu1 %v2078_v45  ;;  %1914 = vmatpush3.bf16.msra.mxu0 %v2083_v47  ;;  %s2581_s24 = scalar_lea.vmem %s2672_s3, %s1631_s13 }
  0x32   : > { %2013 = vmatpush3.bf16.msra.mxu1 %v2083_v47  ;;  %1915 = vmatprep.subr.bf16.mxu0 %v2090_v52 }
  0x33   : > { %2006 = vmatprep.subr.bf16.mxu1 %v2090_v52 }
  0x35   : > { %1916 = vmatpush3.bf16.msra.mxu0 %v2091_v53 }
  0x36   : > { %2014 = vmatpush3.bf16.msra.mxu1 %v2091_v53  ;;  %1917 = vmatprep.subr.bf16.mxu0 %v2098_v54 }
  0x37   : > { %1003 = vmatmul.mubr.bf16.gmra.mrb[8].mxu0 %v2080_v48  ;;  %2007 = vmatprep.subr.bf16.mxu1 %v2098_v54 }
  0x38   : > { %1100 = vmatmul.mubr.bf16.gmra.mrb[8].mxu1 %v2081_v49  ;;  %1010 = vmatprep.mubr.bf16.mxu0 %v2084_v50 }
  0x39   : > { %1107 = vmatprep.mubr.bf16.mxu1 %v2086_v51  ;;  %1918 = vmatpush3.bf16.msra.mxu0 %v2099_v55 }
  0x3a   : > { %2015 = vmatpush3.bf16.msra.mxu1 %v2099_v55  ;;  %1919 = vmatprep.subr.bf16.mxu0 %v2106_v60 }
  0x3b   : > { %2008 = vmatprep.subr.bf16.mxu1 %v2106_v60 }
  0x3d   : > { %1920 = vmatpush3.bf16.msra.mxu0 %v2107_v61 }
  0x3e   : > { %2016 = vmatpush3.bf16.msra.mxu1 %v2107_v61  ;;  %1921 = vmatprep.subr.bf16.mxu0 %v2114_v0 }
  0x3f   : > { %1011 = vmatmul.mubr.bf16.gmra.mrb[12].mxu0 %v2088_v56  ;;  %2009 = vmatprep.subr.bf16.mxu1 %v2114_v0 }
  0x40   : > { %1108 = vmatmul.mubr.bf16.gmra.mrb[12].mxu1 %v2089_v57  ;;  %1018 = vmatprep.mubr.bf16.mxu0 %v2092_v58 }
  0x41   : > { %1115 = vmatprep.mubr.bf16.mxu1 %v2094_v59  ;;  %1922 = vmatpush3.bf16.msra.mxu0 %v2115_v1 }
  0x42   : > { %2017 = vmatpush3.bf16.msra.mxu1 %v2115_v1  ;;  %1923 = vmatprep.subr.bf16.mxu0 %v2122_v4 }
  0x43   : > { %2010 = vmatprep.subr.bf16.mxu1 %v2122_v4 }
  0x45   : > { %1924 = vmatpush3.bf16.msra.mxu0 %v2123_v5 }
  0x46   : > { %2018 = vmatpush3.bf16.msra.mxu1 %v2123_v5 }
  0x47   : > { %1019 = vmatmul.mubr.bf16.gmra.mrb[16].mxu0 %v2096_v62  ;;  %1983 = vmatprep.subr.bf16.mxu1 %v2130_v8 }
  0x48   : > { %1116 = vmatmul.mubr.bf16.gmra.mrb[16].mxu1 %v2097_v63  ;;  %1026 = vmatprep.mubr.bf16.mxu0 %v2100_v2 }
  0x49   : > { %1123 = vmatprep.mubr.bf16.mxu1 %v2102_v3 }
  0x4f   : > { %1027 = vmatmul.mubr.bf16.gmra.mrb[20].mxu0 %v2104_v6 }
  0x50   : > { %1124 = vmatmul.mubr.bf16.gmra.mrb[20].mxu1 %v2105_v7  ;;  %1034 = vmatprep.mubr.bf16.mxu0 %v2108_v9 }
  0x51   : > { %1131 = vmatprep.mubr.bf16.mxu1 %v2110_v10 }
  0x57   : > { %1035 = vmatmul.mubr.bf16.gmra.mrb[24].mxu0 %v2112_v11 }
  0x58   : > { %1132 = vmatmul.mubr.bf16.gmra.mrb[24].mxu1 %v2113_v12  ;;  %1042 = vmatprep.mubr.bf16.mxu0 %v2116_v13 }
  0x59   : > { %1139 = vmatprep.mubr.bf16.mxu1 %v2118_v14 }
  0x5f   : > { %1043 = vmatmul.mubr.bf16.gmra.mrb[28].mxu0 %v2120_v15 }
  0x60   : > { %1140 = vmatmul.mubr.bf16.gmra.mrb[28].mxu1 %v2121_v16  ;;  %1180 = vmatprep.mubr.bf16.mxu0 %v2126_v17 }
  0x61   : > { %1228 = vmatprep.mubr.bf16.mxu1 %v2129_v18 }
  0x67   : > { %1181 = vmatmul.mubr.bf16.vlgmr.msra.gmra.mrb[32].mxu0 %v2124_v19 }
  0x68   : > { %1229 = vmatmul.mubr.bf16.vlgmr.msra.gmra.mrb[32].mxu1 %v2127_v20  ;;  %1188 = vmatprep.mubr.bf16.mxu0 %v2131_v21 }
  0x69   : > { %1984 = vmatpush3.bf16.msra.mxu1 %v2130_v8  ;;  %1236 = vmatprep.mubr.bf16.mxu1 %v2133_v22 }
  0x6a   : > { %1985 = vmatprep.subr.bf16.mxu1 %v2137_v23 }
  0x6d   : > { %1986 = vmatpush3.bf16.msra.mxu1 %v2137_v23 }
  0x6f   : > { %1189 = vmatmul.mubr.bf16.gmra.mrb[36].mxu0 %v2135_v24 }
  0x70   : > { %1237 = vmatmul.mubr.bf16.gmra.mrb[36].mxu1 %v2136_v25  ;;  %1196 = vmatprep.mubr.bf16.mxu0 %v2138_v26 }
  0x71   : > { %1987 = vmatprep.mubr.msk.bf16.mxu1 %vm929_vm0, %v2140_v27 }
  0x77   : > { %1197 = vmatmul.mubr.bf16.gmra.mrb[40].mxu0 %v2141_v28 }
  0x78   : > { %1988 = vmatmul.mubr.msk.bf16.vlgmr.msra.gmra.mrb[40].mxu1 %vm929_vm0, %v2142_v29  ;;  %1204 = vmatprep.mubr.bf16.mxu0 %v2143_v30 }
  0x79   : > { %1991 = vmatprep.mubr.msk.bf16.mxu1 %vm929_vm0, %v2145_v31 }
  0x7f   : > { %1205 = vmatmul.mubr.bf16.gmra.mrb[44].mxu0 %v2146_v32 }
  0x80   : > { %1992 = vmatmul.mubr.msk.bf16.gmra.mrb[44].mxu1 %vm929_vm0, %v2147_v33  ;;  %1212 = vmatprep.mubr.bf16.mxu0 %v2148_v34 }
  0x81   : > { %1995 = vmatprep.mubr.msk.bf16.mxu1 %vm929_vm0, %v2150_v35 }
  0x87   : > { %1213 = vmatmul.mubr.bf16.gmra.mrb[48].mxu0 %v2151_v36 }
  0x88   : > { %1996 = vmatmul.mubr.msk.bf16.gmra.mrb[48].mxu1 %vm929_vm0, %v2152_v37  ;;  %1220 = vmatprep.mubr.bf16.mxu0 %v2153_v38 }
  0x89   : > { %1999 = vmatprep.mubr.msk.bf16.mxu1 %vm929_vm0, %v2155_v39 }
  0x8f   : > { %1221 = vmatmul.mubr.bf16.gmra.mrb[52].mxu0 %v2156_v40 }
  0x90   : > { %2000 = vmatmul.mubr.msk.bf16.gmra.mrb[52].mxu1 %vm929_vm0, %v2157_v41 }
  0xfa   : > { %v1797_v42 = vpop.f32.mrb[0].mxu0 }
  0xfb   : > { %v1798_v44 = vpop.f32.mrb[1].mxu0  ;;  %v1861_v45 = vpop.f32.mrb[0].mxu1 }
  0xfc   : > { %v1799_v46 = vadd.f32 %v1798_v44, %v1797_v42  ;;  %v1800_v47 = vpop.f32.mrb[2].mxu0  ;;  %v1862_v48 = vpop.f32.mrb[1].mxu1 }
  0xfd   : > { %v1801_v49 = vpop.f32.mrb[3].mxu0  ;;  %v1863_v50 = vadd.f32 %v1862_v48, %v1861_v45  ;;  %v1864_v51 = vpop.f32.mrb[2].mxu1 }
  0xfe   : > { %v989_v52 = vadd.f32 %v1799_v46, %v2453_v43  ;;  %v1802_v53 = vadd.f32 %v1801_v49, %v1800_v47  ;;  %v1865_v54 = vpop.f32.mrb[3].mxu1 }
  0xff   : > { %v1866_v55 = vadd.f32 %v1865_v54, %v1864_v51 }
 0x100   : > { %v992_v56 = vadd.f32 %v1802_v53, %v2453_v43  ;;  %v2457_v57 = vadd.f32 %v1863_v50, %v989_v52 }
 0x102   : > { %v2459_v58 = vadd.f32 %v1866_v55, %v992_v56  ;;  %v1803_v59 = vpop.f32.mrb[4].mxu0 }
 0x103   : > { %v1804_v60 = vpop.f32.mrb[5].mxu0  ;;  %v1867_v61 = vpop.f32.mrb[4].mxu1 }
 0x104   : > { %v1805_v62 = vadd.f32 %v1804_v60, %v1803_v59  ;;  %v1806_v63 = vpop.f32.mrb[6].mxu0  ;;  %v1868_v0 = vpop.f32.mrb[5].mxu1 }
 0x105   : > { %v1807_v1 = vpop.f32.mrb[7].mxu0  ;;  %v1869_v2 = vadd.f32 %v1868_v0, %v1867_v61  ;;  %v1870_v3 = vpop.f32.mrb[6].mxu1 }
 0x106   : > { %v997_v4 = vadd.f32 %v1805_v62, %v2453_v43  ;;  %v1808_v5 = vadd.f32 %v1807_v1, %v1806_v63  ;;  %v1871_v6 = vpop.f32.mrb[7].mxu1 }
 0x107   : > { %v1872_v7 = vadd.f32 %v1871_v6, %v1870_v3 }
 0x108   : > { %v1000_v8 = vadd.f32 %v1808_v5, %v2453_v43  ;;  %v2463_v9 = vadd.f32 %v1869_v2, %v997_v4 }
 0x10a   : > { %v2465_v10 = vadd.f32 %v1872_v7, %v1000_v8  ;;  %v1809_v11 = vpop.f32.mrb[8].mxu0 }
 0x10b   : > { %v1810_v12 = vpop.f32.mrb[9].mxu0  ;;  %v1873_v13 = vpop.f32.mrb[8].mxu1 }
 0x10c   : > { %v1811_v14 = vadd.f32 %v1810_v12, %v1809_v11  ;;  %v1812_v15 = vpop.f32.mrb[10].mxu0  ;;  %v1874_v16 = vpop.f32.mrb[9].mxu1 }
 0x10d   : > { %v1813_v17 = vpop.f32.mrb[11].mxu0  ;;  %v1875_v18 = vadd.f32 %v1874_v16, %v1873_v13  ;;  %v1876_v19 = vpop.f32.mrb[10].mxu1 }
 0x10e   : > { %v1005_v20 = vadd.f32 %v1811_v14, %v2453_v43  ;;  %v1814_v21 = vadd.f32 %v1813_v17, %v1812_v15  ;;  %v1877_v22 = vpop.f32.mrb[11].mxu1 }
 0x10f   : > { %v1878_v23 = vadd.f32 %v1877_v22, %v1876_v19 }
 0x110   : > { %v1008_v24 = vadd.f32 %v1814_v21, %v2453_v43  ;;  %v2469_v25 = vadd.f32 %v1875_v18, %v1005_v20 }
 0x112   : > { %v2471_v26 = vadd.f32 %v1878_v23, %v1008_v24  ;;  %v1815_v27 = vpop.f32.mrb[12].mxu0 }
 0x113   : > { %v1816_v28 = vpop.f32.mrb[13].mxu0  ;;  %v1879_v29 = vpop.f32.mrb[12].mxu1 }
 0x114   : > { %v1817_v30 = vadd.f32 %v1816_v28, %v1815_v27  ;;  %v1818_v31 = vpop.f32.mrb[14].mxu0  ;;  %v1880_v32 = vpop.f32.mrb[13].mxu1 }
 0x115   : > { %v1819_v33 = vpop.f32.mrb[15].mxu0  ;;  %v1881_v34 = vadd.f32 %v1880_v32, %v1879_v29  ;;  %v1882_v35 = vpop.f32.mrb[14].mxu1 }
 0x116   : > { %v1013_v36 = vadd.f32 %v1817_v30, %v2453_v43  ;;  %v1820_v37 = vadd.f32 %v1819_v33, %v1818_v31  ;;  %v1883_v38 = vpop.f32.mrb[15].mxu1 }
 0x117   : > { %v1884_v39 = vadd.f32 %v1883_v38, %v1882_v35 }
 0x118   : > { %v1016_v40 = vadd.f32 %v1820_v37, %v2453_v43  ;;  %v2475_v41 = vadd.f32 %v1881_v34, %v1013_v36 }
 0x11a   : > { %v2477_v42 = vadd.f32 %v1884_v39, %v1016_v40  ;;  %v1821_v44 = vpop.f32.mrb[16].mxu0 }
 0x11b   : > { %v1822_v45 = vpop.f32.mrb[17].mxu0  ;;  %v1885_v46 = vpop.f32.mrb[16].mxu1 }
 0x11c   : > { %v1823_v47 = vadd.f32 %v1822_v45, %v1821_v44  ;;  %v1824_v48 = vpop.f32.mrb[18].mxu0  ;;  %v1886_v49 = vpop.f32.mrb[17].mxu1 }
 0x11d   : > { %v1825_v50 = vpop.f32.mrb[19].mxu0  ;;  %v1887_v51 = vadd.f32 %v1886_v49, %v1885_v46  ;;  %v1888_v52 = vpop.f32.mrb[18].mxu1 }
 0x11e   : > { %v1021_v53 = vadd.f32 %v1823_v47, %v2453_v43  ;;  %v1826_v54 = vadd.f32 %v1825_v50, %v1824_v48  ;;  %v1889_v55 = vpop.f32.mrb[19].mxu1 }
 0x11f   : > { %v1890_v56 = vadd.f32 %v1889_v55, %v1888_v52 }
 0x120   : > { %v1024_v59 = vadd.f32 %v1826_v54, %v2453_v43  ;;  %v2481_v60 = vadd.f32 %v1887_v51, %v1021_v53 }
 0x122   : > { %v2483_v61 = vadd.f32 %v1890_v56, %v1024_v59  ;;  %v1827_v62 = vpop.f32.mrb[20].mxu0 }
 0x123   : > { %v1828_v63 = vpop.f32.mrb[21].mxu0  ;;  %v1891_v0 = vpop.f32.mrb[20].mxu1 }
 0x124   : > { %v1829_v1 = vadd.f32 %v1828_v63, %v1827_v62  ;;  %v1830_v2 = vpop.f32.mrb[22].mxu0  ;;  %v1892_v3 = vpop.f32.mrb[21].mxu1 }
 0x125   : > { %v1831_v4 = vpop.f32.mrb[23].mxu0  ;;  %v1893_v5 = vadd.f32 %v1892_v3, %v1891_v0  ;;  %v1894_v6 = vpop.f32.mrb[22].mxu1 }
 0x126   : > { %v1029_v7 = vadd.f32 %v1829_v1, %v2453_v43  ;;  %v1832_v8 = vadd.f32 %v1831_v4, %v1830_v2  ;;  %v1895_v11 = vpop.f32.mrb[23].mxu1 }
 0x127   : > { %v1896_v12 = vadd.f32 %v1895_v11, %v1894_v6 }
 0x128   : > { %v1032_v13 = vadd.f32 %v1832_v8, %v2453_v43  ;;  %v2487_v14 = vadd.f32 %v1893_v5, %v1029_v7 }
 0x12a   : > { %v2489_v15 = vadd.f32 %v1896_v12, %v1032_v13  ;;  %v1833_v16 = vpop.f32.mrb[24].mxu0 }
 0x12b   : > { %v1834_v17 = vpop.f32.mrb[25].mxu0  ;;  %v1897_v18 = vpop.f32.mrb[24].mxu1 }
 0x12c   : > { %v1835_v19 = vadd.f32 %v1834_v17, %v1833_v16  ;;  %v1836_v20 = vpop.f32.mrb[26].mxu0  ;;  %v1898_v21 = vpop.f32.mrb[25].mxu1 }
 0x12d   : > { %v1837_v22 = vpop.f32.mrb[27].mxu0  ;;  %v1899_v23 = vadd.f32 %v1898_v21, %v1897_v18  ;;  %v1900_v24 = vpop.f32.mrb[26].mxu1 }
 0x12e   : > { %v1037_v27 = vadd.f32 %v1835_v19, %v2453_v43  ;;  %v1838_v28 = vadd.f32 %v1837_v22, %v1836_v20  ;;  %v1901_v29 = vpop.f32.mrb[27].mxu1 }
 0x12f   : > { %v1902_v30 = vadd.f32 %v1901_v29, %v1900_v24 }
 0x130   : > { %v1040_v31 = vadd.f32 %v1838_v28, %v2453_v43  ;;  %v1134_v32 = vadd.f32 %v1899_v23, %v1037_v27 }
 0x132   : > { %v1137_v33 = vadd.f32 %v1902_v30, %v1040_v31  ;;  %v1839_v34 = vpop.f32.mrb[28].mxu0 }
 0x133   : > { %v1840_v35 = vpop.f32.mrb[29].mxu0  ;;  %v1903_v36 = vpop.f32.mrb[28].mxu1 }
 0x134   : > { %v1841_v37 = vadd.f32 %v1840_v35, %v1839_v34  ;;  %v1842_v38 = vpop.f32.mrb[30].mxu0  ;;  %v1904_v39 = vpop.f32.mrb[29].mxu1 }
 0x135   : > { %v1843_v40 = vpop.f32.mrb[31].mxu0  ;;  %v1905_v44 = vadd.f32 %v1904_v39, %v1903_v36  ;;  %v1906_v45 = vpop.f32.mrb[30].mxu1 }
 0x136   : > { %v1045_v46 = vadd.f32 %v1841_v37, %v2453_v43  ;;  %v1844_v47 = vadd.f32 %v1843_v40, %v1842_v38  ;;  %v1907_v48 = vpop.f32.mrb[31].mxu1 }
 0x137   : > { %v1908_v49 = vadd.f32 %v1907_v48, %v1906_v45 }
 0x138   : > { %v1048_v50 = vadd.f32 %v1844_v47, %v2453_v43  ;;  %v1142_v51 = vadd.f32 %v1905_v44, %v1045_v46 }
 0x13a   : > { %v1145_v52 = vadd.f32 %v1908_v49, %v1048_v50  ;;  %v1925_v53 = vpop.f32.mrb[32].mxu0 }
 0x13b   : > { %v1961_v54 = vpop.f32.mrb[32].mxu1  ;;  %v1926_v55 = vpop.f32.mrb[33].mxu0 }
 0x13c   : > { %v1927_v56 = vadd.f32 %v1926_v55, %v1925_v53  ;;  %v1962_v59 = vpop.f32.mrb[33].mxu1  ;;  %v1928_v62 = vpop.f32.mrb[34].mxu0 }
 0x13d   : > { %v1963_v63 = vadd.f32 %v1962_v59, %v1961_v54  ;;  %v1964_v0 = vpop.f32.mrb[34].mxu1  ;;  %v1929_v1 = vpop.f32.mrb[35].mxu0 }
 0x13e   : > { %v1930_v2 = vadd.f32 %v1929_v1, %v1928_v62  ;;  %v1965_v3 = vpop.f32.mrb[35].mxu1  ;;  %v1183_v4 = vadd.f32 %v1927_v56, %v2457_v57 }
 0x13f   : > { %v1966_v5 = vadd.f32 %v1965_v3, %v1964_v0  ;;  %v2496_v6 = vadd.f32 %v1963_v63, %v1134_v32 }
 0x140   : > { %v1186_v43 = vadd.f32 %v1930_v2, %v2459_v58 }
 0x141   : > { %v2499_v7 = vadd.f32 %v1966_v5, %v1137_v33 }
 0x142   : > { %v1931_v8 = vpop.f32.mrb[36].mxu0 }
 0x143   : > { %v1967_v11 = vpop.f32.mrb[36].mxu1  ;;  %v1932_v12 = vpop.f32.mrb[37].mxu0 }
 0x144   : > { %v1933_v13 = vadd.f32 %v1932_v12, %v1931_v8  ;;  %v1968_v16 = vpop.f32.mrb[37].mxu1  ;;  %v1934_v17 = vpop.f32.mrb[38].mxu0 }
 0x145   : > { %v1969_v18 = vadd.f32 %v1968_v16, %v1967_v11  ;;  %v1970_v19 = vpop.f32.mrb[38].mxu1  ;;  %v1935_v20 = vpop.f32.mrb[39].mxu0 }
 0x146   : > { %v1936_v21 = vadd.f32 %v1935_v20, %v1934_v17  ;;  %v1971_v22 = vpop.f32.mrb[39].mxu1  ;;  %v1191_v57 = vadd.f32 %v1933_v13, %v2463_v9 }
 0x147   : > { %v1972_v23 = vadd.f32 %v1971_v22, %v1970_v19  ;;  %v2502_v24 = vadd.f32 %v1969_v18, %v1142_v51 }
 0x148   : > { %v1194_v58 = vadd.f32 %v1936_v21, %v2465_v10 }
 0x149   : > { %v2505_v27 = vadd.f32 %v1972_v23, %v1145_v52 }
 0x14a   : > { %v1937_v28 = vpop.f32.mrb[40].mxu0 }
 0x14b   : > { %v1989_v29 = vpop.f32.mrb[40].mxu1  ;;  %v1938_v30 = vpop.f32.mrb[41].mxu0 }
 0x14c   : > { %v2507_v31 = vadd.f32 %v1989_v29, %v1191_v57  ;;  %v1939_v32 = vadd.f32 %v1938_v30, %v1937_v28  ;;  %v1279_v33 = vpop.f32.mrb[41].mxu1  ;;  %v1940_v34 = vpop.f32.mrb[42].mxu0 }
 0x14d   : > { %v2509_v35 = vadd.f32 %v1279_v33, %v1183_v4  ;;  %v1990_v36 = vpop.f32.mrb[42].mxu1  ;;  %v1941_v37 = vpop.f32.mrb[43].mxu0 }
 0x14e   : > { %v1360_v9 = vmul.f32 0.044715, %v2507_v31  ;;  %v2512_v38 = vadd.f32 %v1990_v36, %v1194_v58  ;;  %v1942_v39 = vadd.f32 %v1941_v37, %v1940_v34  ;;  %v1282_v10 = vpop.f32.mrb[43].mxu1  ;;  %v1199_v45 = vadd.f32 %v1939_v32, %v2469_v25 }
 0x14f   : > { %v1358_v40 = vmul.f32 0.044715, %v2509_v35  ;;  %v2515_v44 = vadd.f32 %v1282_v10, %v1186_v43 }
 0x150   : > { %v1376_v46 = vmul.f32 %v1360_v9, %v2507_v31  ;;  %v1361_v47 = vmul.f32 0.044715, %v2512_v38  ;;  %v1202_v48 = vadd.f32 %v1942_v39, %v2471_v26 }
 0x151   : > { %v1374_v49 = vmul.f32 %v1358_v40, %v2509_v35  ;;  %v1359_v50 = vmul.f32 0.044715, %v2515_v44 }
 0x152   : > { %v1392_v51 = vmul.f32 %v1376_v46, %v2507_v31  ;;  %v1377_v52 = vmul.f32 %v1361_v47, %v2512_v38  ;;  %v1943_v53 = vpop.f32.mrb[44].mxu0 }
 0x153   : > { %v1390_v54 = vmul.f32 %v1374_v49, %v2509_v35  ;;  %v1375_v55 = vmul.f32 %v1359_v50, %v2515_v44  ;;  %v1993_v25 = vpop.f32.mrb[44].mxu1  ;;  %v1944_v56 = vpop.f32.mrb[45].mxu0 }
 0x154   : > { %v1408_v59 = vadd.f32 %v1392_v51, %v2507_v31  ;;  %v1393_v62 = vmul.f32 %v1377_v52, %v2512_v38  ;;  %v1945_v26 = vadd.f32 %v1944_v56, %v1943_v53  ;;  %v1295_v63 = vpop.f32.mrb[45].mxu1  ;;  %v1946_v0 = vpop.f32.mrb[46].mxu0  ;;  %v1344_v56 = vmul.f32 0.5, %v2507_v31 }
 0x155   : > { %v1406_v1 = vadd.f32 %v1390_v54, %v2509_v35  ;;  %v1391_v2 = vmul.f32 %v1375_v55, %v2515_v44  ;;  %v2531_v3 = vadd.f32 %v1295_v63, %v1199_v45  ;;  %v1994_v4 = vpop.f32.mrb[46].mxu1  ;;  %v1947_v5 = vpop.f32.mrb[47].mxu0 }
 0x156   : > { %v1424_v43 = vmul.f32 0.7978846, %v1408_v59  ;;  %v1409_v8 = vadd.f32 %v1393_v62, %v2512_v38  ;;  %v1207_v11 = vadd.f32 %v1945_v26, %v2475_v41  ;;  %v1948_v12 = vadd.f32 %v1947_v5, %v1946_v0  ;;  %v1298_v13 = vpop.f32.mrb[47].mxu1 }
 0x157   : > { %v1422_v16 = vmul.f32 0.7978846, %v1406_v1  ;;  %v1407_v17 = vadd.f32 %v1391_v2, %v2515_v44  ;;  %v1362_v18 = vmul.f32 0.044715, %v2531_v3  ;;  %v2541_v23 = vadd.f32 %v1298_v13, %v1202_v48 }
 0x158   : > { %2158 = vtanh.f32 %v1424_v43  ;;  %v1425_v19 = vmul.f32 0.7978846, %v1409_v8  ;;  %v2537_v20 = vadd.f32 %v1993_v25, %v1207_v11  ;;  %v1210_v21 = vadd.f32 %v1948_v12, %v2477_v42 }
 0x159   : > { %2160 = vtanh.f32 %v1422_v16  ;;  %v1423_v22 = vmul.f32 0.7978846, %v1407_v17  ;;  %v1378_v57 = vmul.f32 %v1362_v18, %v2531_v3  ;;  %v1363_v30 = vmul.f32 0.044715, %v2541_v23 }
 0x15a   : > { %2162 = vtanh.f32 %v1425_v19  ;;  %v1364_v41 = vmul.f32 0.044715, %v2537_v20  ;;  %v2544_v58 = vadd.f32 %v1994_v4, %v1210_v21  ;;  %v1949_v28 = vpop.f32.mrb[48].mxu0  ;;  %v1342_v62 = vmul.f32 0.5, %v2509_v35 }
 0x15b   : > { %2164 = vtanh.f32 %v1423_v22  ;;  %v1394_v29 = vmul.f32 %v1378_v57, %v2531_v3  ;;  %v1950_v32 = vpop.f32.mrb[49].mxu0  ;;  %v2548_v33 = vpop.f32.mrb[48].mxu1  ;;  %v1379_v10 = vmul.f32 %v1363_v30, %v2541_v23  ;;  %v1343_v22 = vmul.f32 0.5, %v2515_v44 }
 0x15c   : > { %v1380_v42 = vmul.f32 %v1364_v41, %v2537_v20  ;;  %v1365_v34 = vmul.f32 0.044715, %v2544_v58  ;;  %v1951_v36 = vadd.f32 %v1950_v32, %v1949_v28  ;;  %v1952_v37 = vpop.f32.mrb[50].mxu0  ;;  %v1311_v9 = vpop.f32.mrb[49].mxu1 }
 0x15d   : > { %v1410_v39 = vadd.f32 %v1394_v29, %v2531_v3  ;;  %v1953_v40 = vpop.f32.mrb[51].mxu0  ;;  %v2554_v45 = vpop.f32.mrb[50].mxu1  ;;  %v1395_v52 = vmul.f32 %v1379_v10, %v2541_v23 }
 0x15e   : > { %v1396_v46 = vmul.f32 %v1380_v42, %v2537_v20  ;;  %v1381_v47 = vmul.f32 %v1365_v34, %v2544_v58  ;;  %v1954_v48 = vadd.f32 %v1953_v40, %v1952_v37  ;;  %v1215_v49 = vadd.f32 %v1951_v36, %v2481_v60  ;;  %v1314_v50 = vpop.f32.mrb[51].mxu1 }
 0x15f   : > { %v1426_v51 = vmul.f32 0.7978846, %v1410_v39  ;;  %v1411_v59 = vadd.f32 %v1395_v52, %v2541_v23  ;;  %v1346_v40 = vmul.f32 0.5, %v2531_v3 }
 0x160   : > { %v1412_v53 = vadd.f32 %v1396_v46, %v2537_v20  ;;  %v1397_v54 = vmul.f32 %v1381_v47, %v2544_v58  ;;  %v2562_v55 = vadd.f32 %v1311_v9, %v1215_v49  ;;  %v1218_v25 = vadd.f32 %v1954_v48, %v2483_v61 }
 0x161   : > { %2166 = vtanh.f32 %v1426_v51  ;;  %v1345_v61 = vmul.f32 0.5, %v2512_v38  ;;  %v1427_v5 = vmul.f32 0.7978846, %v1411_v59 }
 0x162   : > { %v2159_v60 = vpop.eup %2158  ;;  %v1428_v26 = vmul.f32 0.7978846, %v1412_v53  ;;  %v1413_v63 = vadd.f32 %v1397_v54, %v2544_v58  ;;  %v1366_v0 = vmul.f32 0.044715, %v2562_v55  ;;  %v1955_v1 = vpop.f32.mrb[52].mxu0  ;;  %v2572_v43 = vadd.f32 %v1314_v50, %v1218_v25 }
 0x163   : > { %v2161_v2 = vpop.eup %2160  ;;  %v1456_v4 = vadd.f32 1.0, %v2159_v60  ;;  %v2001_v31 = vpop.f32.mrb[52].mxu1  ;;  %v1348_v25 = vmul.f32 0.5, %v2537_v20 }
 0x164   : > { %v1956_v8 = vpop.f32.mrb[53].mxu0  ;;  %v2163_v11 = vpop.eup %2162  ;;  %v1454_v12 = vadd.f32 1.0, %v2161_v2  ;;  %2168 = vtanh.f32 %v1428_v26  ;;  %v1429_v35 = vmul.f32 0.7978846, %v1413_v63  ;;  %v1382_v13 = vmul.f32 %v1366_v0, %v2562_v55 }
 0x165   : > { %v1327_v16 = vpop.f32.mrb[53].mxu1  ;;  %v1958_v17 = vpop.f32.mrb[54].mxu0  ;;  %v1472_v19 = vmul.f32 %v1456_v4, %v1344_v56  ;;  %v1457_v21 = vadd.f32 1.0, %v2163_v11  ;;  %2170 = vtanh.f32 %v1427_v5  ;;  %v1367_v42 = vmul.f32 0.044715, %v2572_v43 }
 0x166   : > { %v2165_v18 = vpop.eup %2164  ;;  %v2002_v38 = vpop.f32.mrb[54].mxu1  ;;  %v1470_v41 = vmul.f32 %v1454_v12, %v1342_v62  ;;  %2172 = vtanh.f32 %v1429_v35  ;;  %v1398_v29 = vmul.f32 %v1382_v13, %v2562_v55  ;;  %v2588_v34 = vadd.f32 %v2001_v31, %v2502_v24 }
 0x167   : > { %v1959_v57 = vpop.f32.mrb[55].mxu0  ;;  %v1455_v28 = vadd.f32 1.0, %v2165_v18  ;;  %v2584_v30 = vpop.f32.mrb[55].mxu1  ;;  %v1767_v32 = vpack.c.bf16 %v1472_v19, %v1472_v19  ;;  %v1473_v44 = vmul.f32 %v1457_v21, %v1345_v61  ;;  %v1957_v39 = vadd.f32 %v1956_v8, %v1955_v1 }
 0x168   : > { %v1765_v36 = vpack.c.bf16 %v1470_v41, %v1470_v41  ;;  %v1414_v9 = vadd.f32 %v1398_v29, %v2562_v55  ;;  %v1383_v46 = vmul.f32 %v1367_v42, %v2572_v43  ;;  %v1372_v47 = vmul.f32 0.044715, %v2588_v34 }
 0x169   : > { %v1471_v37 = vmul.f32 %v1455_v28, %v1343_v22  ;;  %1553 = vst.msk [vmem:[%s2581_s24 + $0x8] sm:$0xf] %vm1550_vm1, %v1767_v32  ;;  %v1768_v10 = vpack.c.bf16 %v1473_v44, %v1473_v44  ;;  %v1223_v49 = vadd.f32 %v1957_v39, %v2487_v14  ;;  %v2600_v50 = vadd.f32 %v1327_v16, %v2496_v6 }
 0x16a   : > { %1551 = vst.msk [vmem:[%s2581_s24] sm:$0xf] %vm1550_vm1, %v1765_v36  ;;  %v1430_v48 = vmul.f32 0.7978846, %v1414_v9  ;;  %v1399_v52 = vmul.f32 %v1383_v46, %v2572_v43  ;;  %v1388_v3 = vmul.f32 %v1372_v47, %v2588_v34  ;;  %v2607_v53 = vadd.f32 %v2002_v38, %v2505_v27 }
 0x16b   : > { %v1766_v24 = vpack.c.bf16 %v1471_v37, %v1471_v37  ;;  %v2167_v51 = vpop.eup %2166  ;;  %1554 = vst.msk [vmem:[%s2581_s24 + $0xc] sm:$0xf] %vm1550_vm1, %v1768_v10  ;;  %v1960_v54 = vadd.f32 %v1959_v57, %v1958_v17  ;;  %v2613_v14 = vadd.f32 %v2548_v33, %v1223_v49  ;;  %v1347_v6 = vmul.f32 0.5, %v2541_v23 }
 0x16c   : > { %v1458_v56 = vadd.f32 1.0, %v2167_v51  ;;  %2174 = vtanh.f32 %v1430_v48  ;;  %v1415_v59 = vadd.f32 %v1399_v52, %v2572_v43  ;;  %v1404_v60 = vmul.f32 %v1388_v3, %v2588_v34 }
 0x16d   : > { %1552 = vst.msk [vmem:[%s2581_s24 + $0x4] sm:$0xf] %vm1550_vm1, %v1766_v24  ;;  %v1370_v62 = vmul.f32 0.044715, %v2600_v50  ;;  %v1349_v63 = vmul.f32 0.5, %v2544_v58  ;;  %v1226_v22 = vadd.f32 %v1960_v54, %v2489_v15  ;;  %v1331_v44 = vadd.f32 %v2584_v30, %v2499_v7 }
 0x16e   : > { %v2169_v27 = vpop.eup %2168  ;;  %v1474_v26 = vmul.f32 %v1458_v56, %v1346_v40  ;;  %v1368_v0 = vmul.f32 0.044715, %v2613_v14  ;;  %v1373_v20 = vmul.f32 0.044715, %v2607_v53  ;;  %v1431_v2 = vmul.f32 0.7978846, %v1415_v59 }
 0x16f   : > { %v2171_v1 = vpop.eup %2170  ;;  %v1460_v33 = vadd.f32 1.0, %v2169_v27  ;;  %v1420_v23 = vadd.f32 %v1404_v60, %v2588_v34  ;;  %v1386_v4 = vmul.f32 %v1370_v62, %v2600_v50  ;;  %v1323_v32 = vadd.f32 %v2554_v45, %v1226_v22 }
 0x170   : > { %v2173_v61 = vpop.eup %2172  ;;  %v1769_v5 = vpack.c.bf16 %v1474_v26, %v1474_v26  ;;  %v1459_v31 = vadd.f32 1.0, %v2171_v1  ;;  %v1384_v8 = vmul.f32 %v1368_v0, %v2613_v14  ;;  %v1389_v11 = vmul.f32 %v1373_v20, %v2607_v53 }
 0x171   : > { %v1476_v58 = vmul.f32 %v1460_v33, %v1348_v25  ;;  %v1461_v12 = vadd.f32 1.0, %v2173_v61  ;;  %2176 = vtanh.f32 %v1431_v2  ;;  %v1436_v35 = vmul.f32 0.7978846, %v1420_v23 }
 0x172   : > { %1555 = vst.msk [vmem:[%s2581_s24 + $0x10] sm:$0xf] %vm1550_vm1, %v1769_v5  ;;  %v1475_v13 = vmul.f32 %v1459_v31, %v1347_v6  ;;  %v1400_v16 = vmul.f32 %v1384_v8, %v2613_v14  ;;  %v1402_v17 = vmul.f32 %v1386_v4, %v2600_v50  ;;  %v1405_v18 = vmul.f32 %v1389_v11, %v2607_v53 }
 0x173   : > { %v1771_v19 = vpack.c.bf16 %v1476_v58, %v1476_v58  ;;  %v1477_v21 = vmul.f32 %v1461_v12, %v1349_v63  ;;  %2178 = vtanh.f32 %v1436_v35  ;;  %v1350_v9 = vmul.f32 0.5, %v2562_v55 }
 0x174   : > { %v1770_v38 = vpack.c.bf16 %v1475_v13, %v1475_v13  ;;  %v1416_v57 = vadd.f32 %v1400_v16, %v2613_v14  ;;  %v1418_v41 = vadd.f32 %v1402_v17, %v2600_v50  ;;  %v1421_v28 = vadd.f32 %v1405_v18, %v2607_v53 }
 0x175   : > { %1557 = vst.msk [vmem:[%s2581_s24 + $0x18] sm:$0xf] %vm1550_vm1, %v1771_v19  ;;  %v1772_v29 = vpack.c.bf16 %v1477_v21, %v1477_v21  ;;  %v1369_v10 = vmul.f32 0.044715, %v1323_v32  ;;  %v1371_v40 = vmul.f32 0.044715, %v1331_v44 }
 0x176   : > { %v2175_v42 = vpop.eup %2174  ;;  %1556 = vst.msk [vmem:[%s2581_s24 + $0x14] sm:$0xf] %vm1550_vm1, %v1770_v38  ;;  %v1432_v36 = vmul.f32 0.7978846, %v1416_v57  ;;  %v1434_v15 = vmul.f32 0.7978846, %v1418_v41 }
 0x177   : > { %v1437_v37 = vmul.f32 0.7978846, %v1421_v28  ;;  %1558 = vst.msk [vmem:[%s2581_s24 + $0x1c] sm:$0xf] %vm1550_vm1, %v1772_v29  ;;  %v1462_v39 = vadd.f32 1.0, %v2175_v42  ;;  %v1385_v45 = vmul.f32 %v1369_v10, %v1323_v32  ;;  %v1387_v7 = vmul.f32 %v1371_v40, %v1331_v44 }
 0x178   : > { %2180 = vtanh.f32 %v1432_v36  ;;  %v1351_v48 = vmul.f32 0.5, %v2572_v43  ;;  %v1356_v54 = vmul.f32 0.5, %v2588_v34  ;;  %v1352_v63 = vmul.f32 0.5, %v2613_v14 }
 0x179   : > { %v1478_v46 = vmul.f32 %v1462_v39, %v1350_v9  ;;  %2182 = vtanh.f32 %v1434_v15  ;;  %v1401_v24 = vmul.f32 %v1385_v45, %v1323_v32  ;;  %v1403_v51 = vmul.f32 %v1387_v7, %v1331_v44 }
 0x17a   : > { %2184 = vtanh.f32 %v1437_v37  ;;  %v1354_v20 = vmul.f32 0.5, %v2600_v50  ;;  %v1357_v2 = vmul.f32 0.5, %v2607_v53  ;;  %v1353_v11 = vmul.f32 0.5, %v1323_v32 }
 0x17b   : > { %v2177_v30 = vpop.eup %2176  ;;  %v1773_v47 = vpack.c.bf16 %v1478_v46, %v1478_v46  ;;  %v1417_v55 = vadd.f32 %v1401_v24, %v1323_v32  ;;  %v1419_v56 = vadd.f32 %v1403_v51, %v1331_v44  ;;  %v1355_v12 = vmul.f32 0.5, %v1331_v44 }
 0x17c   : > { %v1463_v49 = vadd.f32 1.0, %v2177_v30 }
 0x17d   : > { %v2179_v52 = vpop.eup %2178  ;;  %1559 = vst.msk [vmem:[%s2581_s24 + $0x20] sm:$0xf] %vm1550_vm1, %v1773_v47  ;;  %v1433_v6 = vmul.f32 0.7978846, %v1417_v55  ;;  %v1435_v62 = vmul.f32 0.7978846, %v1419_v56 }
 0x17e   : > { %v1479_v3 = vmul.f32 %v1463_v49, %v1351_v48  ;;  %v1468_v25 = vadd.f32 1.0, %v2179_v52 }
 0x17f   : > { %2186 = vtanh.f32 %v1433_v6 }
 0x180   : > { %v1774_v59 = vpack.c.bf16 %v1479_v3, %v1479_v3  ;;  %v1484_v60 = vmul.f32 %v1468_v25, %v1356_v54  ;;  %2188 = vtanh.f32 %v1435_v62 }
 0x182   : > { %v2181_v27 = vpop.eup %2180  ;;  %1560 = vst.msk [vmem:[%s2581_s24 + $0x24] sm:$0xf] %vm1550_vm1, %v1774_v59  ;;  %v1779_v43 = vpack.c.bf16 %v1484_v60, %v1484_v60 }
 0x183   : > { %v2183_v26 = vpop.eup %2182  ;;  %v1464_v0 = vadd.f32 1.0, %v2181_v27 }
 0x184   : > { %v2185_v34 = vpop.eup %2184  ;;  %1565 = vst.msk [vmem:[%s2581_s24 + $0x38] sm:$0xf] %vm1550_vm1, %v1779_v43  ;;  %v1466_v1 = vadd.f32 1.0, %v2183_v26 }
 0x185   : > { %v1480_v33 = vmul.f32 %v1464_v0, %v1352_v63  ;;  %v1469_v23 = vadd.f32 1.0, %v2185_v34 }
 0x186   : > { %v1482_v4 = vmul.f32 %v1466_v1, %v1354_v20 }
 0x187   : > { %v1775_v61 = vpack.c.bf16 %v1480_v33, %v1480_v33  ;;  %v1485_v5 = vmul.f32 %v1469_v23, %v1357_v2 }
 0x188   : > { %v1777_v31 = vpack.c.bf16 %v1482_v4, %v1482_v4 }
 0x189   : > { %1561 = vst.msk [vmem:[%s2581_s24 + $0x28] sm:$0xf] %vm1550_vm1, %v1775_v61  ;;  %v1780_v14 = vpack.c.bf16 %v1485_v5, %v1485_v5  ;;  %v2187_v8 = vpop.eup %2186 }
 0x18a   : > { %1563 = vst.msk [vmem:[%s2581_s24 + $0x30] sm:$0xf] %vm1550_vm1, %v1777_v31  ;;  %v2189_v50 = vpop.eup %2188  ;;  %v1465_v58 = vadd.f32 1.0, %v2187_v8 }
 0x18b   : > { %1566 = vst.msk [vmem:[%s2581_s24 + $0x3c] sm:$0xf] %vm1550_vm1, %v1780_v14  ;;  %v1467_v53 = vadd.f32 1.0, %v2189_v50 }
 0x18c   : > { %v1481_v35 = vmul.f32 %v1465_v58, %v1353_v11 }
 0x18d   : > { %v1483_v13 = vmul.f32 %v1467_v53, %v1355_v12 }
 0x18e   : > { %v1776_v16 = vpack.c.bf16 %v1481_v35, %v1481_v35 }
 0x18f   : > { %v1778_v17 = vpack.c.bf16 %v1483_v13, %v1483_v13 }
 0x190   : > { %1562 = vst.msk [vmem:[%s2581_s24 + $0x2c] sm:$0xf] %vm1550_vm1, %v1776_v16 }
 0x191   : > { %1564 = vst.msk [vmem:[%s2581_s24 + $0x34] sm:$0xf] %vm1550_vm1, %v1778_v17 }
 0x192 PF: > { %s13_s12 = sadd.s32 1, %s2196_s12  }
 0x193   : > { %p10_p4 = scmp.ge.s32.totalorder %s13_s12, 8  }
 0x195   :  { %12 = sbr.rel (!%p10_p4) target bundleno = 1 (0x1), region = 62 }

// kernel: _lambda_.8
= control target key start
LH: loop header
LB: loop body
LE: loop exit
PB: predicated region body
PF: predicated region fallthrough
CT: control target
= control target key end

     0   :  { %s1304_s12 = smov 0   ;;  %s1593_s0 = inlined_call_operand.vmem [shape: bf16[768,288], index: 0, kind: input, shape index: {}]   ;;  %s1594_s1 = inlined_call_operand.vmem [shape: bf16[288,64], index: 1, kind: input, shape index: {}]   ;;  %s1595_s2 = inlined_call_operand.vmem [shape: f32[1,64], index: 2, kind: input, shape index: {}]   ;;  %s1596_s3 = inlined_call_operand.vmem [shape: bf16[768,64], index: 3, kind: output, shape index: {}]  }
   0x1 LB: > { %s981_s13 = sadd.s32 4294967295, %s1282_s12   ;;  %p985_p0 = scmp.ge.s32.totalorder %s1282_s12, 1  ;;  %s1282_s12 = sphi %s1304_s12, %s13_s12  }
   0x2   : > { %p139_p1 = scmp.lt.s32.totalorder %s1282_s12, 7 }
   0x4   : > { %p140_p2 = pnand %p985_p0, %p139_p1 }
   0x5   : > { %v1194_v0 = vld [vmem:[%s1594_s1 + $0x40] sm:$0xff] (!%p140_p2)   ;;  %s986_s16 = sshll.u32 (!%p140_p2), %s981_s13, 4  ;;  %v1196_v2 = vld [vmem:[%s1594_s1 + $0x48] sm:$0xff] (!%p140_p2)   ;;  %v1198_v4 = vld [vmem:[%s1594_s1 + $0x50] sm:$0xff] (!%p140_p2)   ;;  %vm481_vm0 = vcmask (!%p140_p2), 261120   ;;  %vm908_vm1 = vcmask (!%p140_p2), 519168  }
   0x6   : > { %143 = sbr.rel (%p140_p2) target bundleno = 336 (0x150), region = 32  ;;  %v1195_v1 = vld [vmem:[%s1594_s1] sm:$0xff] (!%p140_p2)   ;;  %1075 = vmatprep.subr.bf16.mxu0 (!%p140_p2), %v1194_v0  ;;  %1169 = vmatprep.subr.bf16.mxu1 (!%p140_p2), %v1194_v0  ;;  %p165_p3 = scmp.lt.s32.totalorder (!%p140_p2), %s986_s16, 95  ;;  %v1197_v3 = vld [vmem:[%s1594_s1 + $0x8] sm:$0xff] (!%p140_p2)   ;;  %v1199_v5 = vld [vmem:[%s1594_s1 + $0x10] sm:$0xff] (!%p140_p2)  }
   0x7   : > { %1076 = vmatpush3.bf16.msra.mxu0 (!%p140_p2), %v1195_v1  ;;  %1177 = vmatpush3.bf16.msra.mxu1 (!%p140_p2), %v1195_v1  ;;  %v1200_v6 = vld [vmem:[%s1594_s1 + $0x58] sm:$0xff] (!%p140_p2)   ;;  %v1202_v8 = vld [vmem:[%s1594_s1 + $0x60] sm:$0xff] (!%p140_p2)   ;;  %v1204_v10 = vld [vmem:[%s1594_s1 + $0x68] sm:$0xff] (!%p140_p2)  }
   0x8   : > { %1077 = vmatprep.subr.bf16.mxu0 (!%p140_p2), %v1196_v2  ;;  %1170 = vmatprep.subr.bf16.mxu1 (!%p140_p2), %v1196_v2  ;;  %v1201_v7 = vld [vmem:[%s1594_s1 + $0x18] sm:$0xff] (!%p140_p2)   ;;  %v1203_v9 = vld [vmem:[%s1594_s1 + $0x20] sm:$0xff] (!%p140_p2)   ;;  %v1205_v13 = vld [vmem:[%s1594_s1 + $0x28] sm:$0xff] (!%p140_p2)  }
   0x9   : > { %v1206_v14 = vld [vmem:[%s1594_s1 + $0x70] sm:$0xff] (!%p140_p2)   ;;  %v1208_v16 = vld [vmem:[%s1594_s1 + $0x78] sm:$0xff] (!%p140_p2)   ;;  %v1216_v19 = vld [vmem:[%s1594_s1 + $0x80] sm:$0xff] (!%p140_p2)  }
   0xa   : > { %v1207_v15 = vld [vmem:[%s1594_s1 + $0x30] sm:$0xff] (!%p140_p2)   ;;  %v1209_v17 = vld [vmem:[%s1594_s1 + $0x38] sm:$0xff] (!%p140_p2)   ;;  %v1223_v23 = vld [vmem:[%s1594_s1 + $0x88] sm:$0xff] (!%p140_p2)  }
   0xb   : > { %1078 = vmatpush3.bf16.msra.mxu0 (!%p140_p2), %v1197_v3  ;;  %1178 = vmatpush3.bf16.msra.mxu1 (!%p140_p2), %v1197_v3  ;;  %v1417_v2 = vld [vmem:[%s1595_s2] ss:$0 sm:$0xff] (!%p140_p2) }
   0xc   : > { %1079 = vmatprep.subr.bf16.mxu0 (!%p140_p2), %v1198_v4  ;;  %1171 = vmatprep.subr.bf16.mxu1 (!%p140_p2), %v1198_v4 }
   0xd   : > { %s1598_s16 = smov (!%p165_p3, %s986_s16), 95 }
   0xe   : > { %s1185_s29 = smul.u32 12, %s1598_s16  ;;  %s989_s5 = sshll.u32 %s1598_s16, 2 }
   0xf   : > { %1080 = vmatpush3.bf16.msra.mxu0 %v1199_v5  ;;  %1179 = vmatpush3.bf16.msra.mxu1 %v1199_v5  ;;  %s1505_s7 = scalar_lea.vmem %s1596_s3, %s989_s5 }
  0x10   : > { %1081 = vmatprep.subr.bf16.mxu0 %v1200_v6  ;;  %1172 = vmatprep.subr.bf16.mxu1 %v1200_v6  ;;  %s1345_s9 = scalar_lea.vmem %s1593_s0, %s1185_s29 }
  0x11   : > { %v1212_v11 = vld [vmem:[%s1345_s9 + $0x4] ss:$12 sps:$4 sm:$0xff]   ;;  %v1215_v12 = vld [vmem:[%s1345_s9 + $0x94] ss:$12 sps:$4 sm:$0xff]   ;;  %v1217_v21 = vld [vmem:[%s1345_s9 + $0x1c] ss:$12 sps:$4 sm:$0xff]  }
  0x12   : > { %538 = vmatprep.mubr.bf16.mxu0 %v1212_v11  ;;  %586 = vmatprep.mubr.bf16.mxu1 %v1215_v12  ;;  %v1210_v18 = vld [vmem:[%s1345_s9] ss:$12 sps:$4 sm:$0xff]   ;;  %v1213_v20 = vld [vmem:[%s1345_s9 + $0x90] ss:$12 sps:$4 sm:$0xff]   ;;  %v1221_v24 = vld [vmem:[%s1345_s9 + $0x18] ss:$12 sps:$4 sm:$0xff]  }
  0x13   : > { %1082 = vmatpush3.bf16.msra.mxu0 %v1201_v7  ;;  %1180 = vmatpush3.bf16.msra.mxu1 %v1201_v7  ;;  %v1219_v22 = vld [vmem:[%s1345_s9 + $0xac] ss:$12 sps:$4 sm:$0xff]   ;;  %v1222_v25 = vld [vmem:[%s1345_s9 + $0xa8] ss:$12 sps:$4 sm:$0xff]   ;;  %v1227_v28 = vld [vmem:[%s1345_s9 + $0x30] ss:$12 sps:$4 sm:$0xff]  }
  0x14   : > { %1083 = vmatprep.subr.bf16.mxu0 %v1202_v8  ;;  %1173 = vmatprep.subr.bf16.mxu1 %v1202_v8  ;;  %v1224_v26 = vld [vmem:[%s1345_s9 + $0x34] ss:$12 sps:$4 sm:$0xff]   ;;  %v1229_v30 = vld [vmem:[%s1345_s9 + $0x4c] ss:$12 sps:$4 sm:$0xff]   ;;  %v1233_v33 = vld [vmem:[%s1345_s9 + $0x50] ss:$12 sps:$4 sm:$0xff]  }
  0x15   : > { %v1226_v27 = vld [vmem:[%s1345_s9 + $0x8] ss:$12 sps:$4 sm:$0xff]   ;;  %v1228_v29 = vld [vmem:[%s1345_s9 + $0x20] ss:$12 sps:$4 sm:$0xff]   ;;  %v1231_v31 = vld [vmem:[%s1345_s9 + $0x38] ss:$12 sps:$4 sm:$0xff]  }
  0x16   : > { %v1232_v32 = vld [vmem:[%s1345_s9 + $0x48] ss:$12 sps:$4 sm:$0xff]   ;;  %v1234_v34 = vld [vmem:[%s1345_s9 + $0x64] ss:$12 sps:$4 sm:$0xff]   ;;  %v1237_v36 = vld [vmem:[%s1345_s9 + $0x60] ss:$12 sps:$4 sm:$0xff]  }
  0x17   : > { %1084 = vmatpush3.bf16.msra.mxu0 %v1203_v9  ;;  %1181 = vmatpush3.bf16.msra.mxu1 %v1203_v9  ;;  %v1236_v35 = vld [vmem:[%s1345_s9 + $0x68] ss:$12 sps:$4 sm:$0xff]   ;;  %v1238_v37 = vld [vmem:[%s1345_s9 + $0x80] ss:$12 sps:$4 sm:$0xff]   ;;  %v1241_v39 = vld [vmem:[%s1345_s9 + $0x98] ss:$12 sps:$4 sm:$0xff]  }
  0x18   : > { %1085 = vmatprep.subr.bf16.mxu0 %v1204_v10  ;;  %1174 = vmatprep.subr.bf16.mxu1 %v1204_v10  ;;  %v1239_v38 = vld [vmem:[%s1345_s9 + $0x7c] ss:$12 sps:$4 sm:$0xff]   ;;  %v1242_v40 = vld [vmem:[%s1345_s9 + $0x78] ss:$12 sps:$4 sm:$0xff]  }
  0x19   : > { %v1243_v41 = vld [vmem:[%s1345_s9 + $0xb0] ss:$12 sps:$4 sm:$0xff]  }
  0x1b   : > { %1086 = vmatpush3.bf16.msra.mxu0 %v1205_v13  ;;  %1182 = vmatpush3.bf16.msra.mxu1 %v1205_v13 }
  0x1c   : > { %1087 = vmatprep.subr.bf16.mxu0 %v1206_v14  ;;  %1175 = vmatprep.subr.bf16.mxu1 %v1206_v14 }
  0x1f   : > { %1088 = vmatpush3.bf16.msra.mxu0 %v1207_v15  ;;  %1183 = vmatpush3.bf16.msra.mxu1 %v1207_v15 }
  0x20   : > { %1089 = vmatprep.subr.bf16.mxu0 %v1208_v16  ;;  %1176 = vmatprep.subr.bf16.mxu1 %v1208_v16 }
  0x23   : > { %1090 = vmatpush3.bf16.msra.mxu0 %v1209_v17  ;;  %1184 = vmatpush3.bf16.msra.mxu1 %v1209_v17 }
  0x24   : > { %1149 = vmatprep.subr.bf16.mxu1 %v1216_v19 }
  0x26   : > { %539 = vmatmul.mubr.bf16.vlgmr.msra.gmra.mrb[0].mxu0 %v1210_v18  ;;  %587 = vmatmul.mubr.bf16.vlgmr.msra.gmra.mrb[0].mxu1 %v1213_v20 }
  0x27   : > { %1150 = vmatpush3.bf16.msra.mxu1 %v1216_v19  ;;  %546 = vmatprep.mubr.bf16.mxu0 %v1217_v21 }
  0x28   : > { %594 = vmatprep.mubr.bf16.mxu1 %v1219_v22  ;;  %1151 = vmatprep.subr.bf16.mxu1 %v1223_v23 }
  0x2b   : > { %1152 = vmatpush3.bf16.msra.mxu1 %v1223_v23 }
  0x2e   : > { %547 = vmatmul.mubr.bf16.gmra.mrb[4].mxu0 %v1221_v24  ;;  %595 = vmatmul.mubr.bf16.gmra.mrb[4].mxu1 %v1222_v25 }
  0x2f   : > { %554 = vmatprep.mubr.bf16.mxu0 %v1224_v26  ;;  %1153 = vmatprep.mubr.msk.bf16.mxu1 %vm481_vm0, %v1226_v27 }
  0x36   : > { %555 = vmatmul.mubr.bf16.gmra.mrb[8].mxu0 %v1227_v28  ;;  %1154 = vmatmul.mubr.msk.bf16.vlgmr.msra.gmra.mrb[8].mxu1 %vm481_vm0, %v1228_v29 }
  0x37   : > { %562 = vmatprep.mubr.bf16.mxu0 %v1229_v30  ;;  %1157 = vmatprep.mubr.msk.bf16.mxu1 %vm481_vm0, %v1231_v31 }
  0x3e   : > { %563 = vmatmul.mubr.bf16.gmra.mrb[12].mxu0 %v1232_v32  ;;  %1158 = vmatmul.mubr.msk.bf16.gmra.mrb[12].mxu1 %vm481_vm0, %v1233_v33 }
  0x3f   : > { %570 = vmatprep.mubr.bf16.mxu0 %v1234_v34  ;;  %1161 = vmatprep.mubr.msk.bf16.mxu1 %vm481_vm0, %v1236_v35 }
  0x46   : > { %571 = vmatmul.mubr.bf16.gmra.mrb[16].mxu0 %v1237_v36  ;;  %1162 = vmatmul.mubr.msk.bf16.gmra.mrb[16].mxu1 %vm481_vm0, %v1238_v37 }
  0x47   : > { %578 = vmatprep.mubr.bf16.mxu0 %v1239_v38  ;;  %1165 = vmatprep.mubr.msk.bf16.mxu1 %vm481_vm0, %v1241_v39 }
  0x4e   : > { %579 = vmatmul.mubr.bf16.gmra.mrb[20].mxu0 %v1242_v40  ;;  %1166 = vmatmul.mubr.msk.bf16.gmra.mrb[20].mxu1 %vm481_vm0, %v1243_v41 }
  0xf9   : > { %v1091_v42 = vpop.f32.mrb[0].mxu0  ;;  %v1127_v43 = vpop.f32.mrb[0].mxu1 }
  0xfa   : > { %v1092_v44 = vpop.f32.mrb[1].mxu0  ;;  %v1128_v45 = vpop.f32.mrb[1].mxu1 }
  0xfb   : > { %v1093_v46 = vadd.f32 %v1092_v44, %v1091_v42  ;;  %v1094_v47 = vpop.f32.mrb[2].mxu0  ;;  %v1406_v48 = vadd.f32 %v1128_v45, %v1127_v43  ;;  %v1130_v49 = vpop.f32.mrb[2].mxu1 }
  0xfc   : > { %v1095_v50 = vpop.f32.mrb[3].mxu0  ;;  %v1131_v51 = vpop.f32.mrb[3].mxu1 }
  0xfd   : > { %v1096_v52 = vadd.f32 %v1095_v50, %v1094_v47  ;;  %v1408_v53 = vadd.f32 %v1131_v51, %v1130_v49  ;;  %v541_v6 = vadd.f32 %v1093_v46, %v1417_v2 }
  0xff   : > { %v544_v15 = vadd.f32 %v1096_v52, %v1417_v2 }
 0x101   : > { %v1097_v54 = vpop.f32.mrb[4].mxu0  ;;  %v1133_v55 = vpop.f32.mrb[4].mxu1 }
 0x102   : > { %v1098_v56 = vpop.f32.mrb[5].mxu0  ;;  %v1134_v57 = vpop.f32.mrb[5].mxu1 }
 0x103   : > { %v1099_v58 = vadd.f32 %v1098_v56, %v1097_v54  ;;  %v1100_v59 = vpop.f32.mrb[6].mxu0  ;;  %v1410_v60 = vadd.f32 %v1134_v57, %v1133_v55  ;;  %v1136_v61 = vpop.f32.mrb[6].mxu1 }
 0x104   : > { %v1101_v62 = vpop.f32.mrb[7].mxu0  ;;  %v1137_v63 = vpop.f32.mrb[7].mxu1 }
 0x105   : > { %v1102_v0 = vadd.f32 %v1101_v62, %v1100_v59  ;;  %v1412_v1 = vadd.f32 %v1137_v63, %v1136_v61  ;;  %v549_v3 = vadd.f32 %v1099_v58, %v1417_v2 }
 0x107   : > { %v552_v10 = vadd.f32 %v1102_v0, %v1417_v2 }
 0x109   : > { %v1103_v4 = vpop.f32.mrb[8].mxu0  ;;  %v1155_v5 = vpop.f32.mrb[8].mxu1 }
 0x10a   : > { %v1421_v7 = vadd.f32 %v1155_v5, %v549_v3  ;;  %v1104_v8 = vpop.f32.mrb[9].mxu0  ;;  %v637_v9 = vpop.f32.mrb[9].mxu1 }
 0x10b   : > { %v1105_v11 = vadd.f32 %v1104_v8, %v1103_v4  ;;  %v1424_v12 = vadd.f32 %v637_v9, %v541_v6  ;;  %v1106_v13 = vpop.f32.mrb[10].mxu0  ;;  %v1156_v14 = vpop.f32.mrb[10].mxu1 }
 0x10c   : > { %v718_v16 = vmul.f32 0.044715, %v1421_v7  ;;  %v1428_v17 = vadd.f32 %v1156_v14, %v552_v10  ;;  %v1107_v18 = vpop.f32.mrb[11].mxu0  ;;  %v640_v19 = vpop.f32.mrb[11].mxu1 }
 0x10d   : > { %v716_v20 = vmul.f32 0.044715, %v1424_v12  ;;  %v1108_v21 = vadd.f32 %v1107_v18, %v1106_v13  ;;  %v1431_v22 = vadd.f32 %v640_v19, %v544_v15  ;;  %v557_v33 = vadd.f32 %v1105_v11, %v1417_v2 }
 0x10e   : > { %v734_v23 = vmul.f32 %v718_v16, %v1421_v7  ;;  %v719_v24 = vmul.f32 0.044715, %v1428_v17  ;;  %v1471_v15 = vadd.f32 %v1406_v48, %v1417_v2 }
 0x10f   : > { %v732_v25 = vmul.f32 %v716_v20, %v1424_v12  ;;  %v717_v26 = vmul.f32 0.044715, %v1431_v22  ;;  %v560_v52 = vadd.f32 %v1108_v21, %v1417_v2 }
 0x110   : > { %v750_v27 = vmul.f32 %v734_v23, %v1421_v7  ;;  %v735_v28 = vmul.f32 %v719_v24, %v1428_v17  ;;  %v1478_v23 = vadd.f32 %v1408_v53, %v1417_v2 }
 0x111   : > { %v748_v29 = vmul.f32 %v732_v25, %v1424_v12  ;;  %v733_v30 = vmul.f32 %v717_v26, %v1431_v22  ;;  %v1109_v31 = vpop.f32.mrb[12].mxu0  ;;  %v1159_v32 = vpop.f32.mrb[12].mxu1  ;;  %v597_v26 = vadd.f32 %v1410_v60, %v1417_v2 }
 0x112   : > { %v766_v34 = vadd.f32 %v750_v27, %v1421_v7  ;;  %v751_v35 = vmul.f32 %v735_v28, %v1428_v17  ;;  %v1110_v36 = vpop.f32.mrb[13].mxu0  ;;  %v653_v37 = vpop.f32.mrb[13].mxu1  ;;  %v702_v27 = vmul.f32 0.5, %v1421_v7 }
 0x113   : > { %v764_v38 = vadd.f32 %v748_v29, %v1424_v12  ;;  %v749_v39 = vmul.f32 %v733_v30, %v1431_v22  ;;  %v1111_v40 = vadd.f32 %v1110_v36, %v1109_v31  ;;  %v1446_v41 = vadd.f32 %v653_v37, %v557_v33  ;;  %v1112_v42 = vpop.f32.mrb[14].mxu0  ;;  %v1160_v43 = vpop.f32.mrb[14].mxu1 }
 0x114   : > { %v782_v44 = vmul.f32 0.7978846, %v766_v34  ;;  %v767_v45 = vadd.f32 %v751_v35, %v1428_v17  ;;  %v1113_v46 = vpop.f32.mrb[15].mxu0  ;;  %v656_v47 = vpop.f32.mrb[15].mxu1  ;;  %v700_v31 = vmul.f32 0.5, %v1424_v12  ;;  %v703_v35 = vmul.f32 0.5, %v1428_v17 }
 0x115   : > { %v780_v49 = vmul.f32 0.7978846, %v764_v38  ;;  %v765_v50 = vadd.f32 %v749_v39, %v1431_v22  ;;  %v565_v51 = vadd.f32 %v1111_v40, %v1417_v2  ;;  %v720_v55 = vmul.f32 0.044715, %v1446_v41 }
 0x116   : > { %1244 = vtanh.f32 %v782_v44  ;;  %v783_v54 = vmul.f32 0.7978846, %v767_v45  ;;  %v1114_v56 = vadd.f32 %v1113_v46, %v1112_v42  ;;  %v1455_v59 = vadd.f32 %v656_v47, %v560_v52 }
 0x117   : > { %1246 = vtanh.f32 %v780_v49  ;;  %v781_v57 = vmul.f32 0.7978846, %v765_v50  ;;  %v1453_v58 = vadd.f32 %v1159_v32, %v565_v51  ;;  %v736_v61 = vmul.f32 %v720_v55, %v1446_v41 }
 0x118   : > { %1248 = vtanh.f32 %v783_v54  ;;  %v568_v62 = vadd.f32 %v1114_v56, %v1417_v2  ;;  %v721_v6 = vmul.f32 0.044715, %v1455_v59  ;;  %v701_v38 = vmul.f32 0.5, %v1431_v22 }
 0x119   : > { %1250 = vtanh.f32 %v781_v57  ;;  %v722_v63 = vmul.f32 0.044715, %v1453_v58  ;;  %v1115_v0 = vpop.f32.mrb[16].mxu0  ;;  %v1460_v3 = vpop.f32.mrb[16].mxu1  ;;  %v752_v4 = vmul.f32 %v736_v61, %v1446_v41 }
 0x11a   : > { %v1463_v5 = vadd.f32 %v1160_v43, %v568_v62  ;;  %v1116_v8 = vpop.f32.mrb[17].mxu0  ;;  %v669_v9 = vpop.f32.mrb[17].mxu1  ;;  %v737_v19 = vmul.f32 %v721_v6, %v1455_v59 }
 0x11b   : > { %v738_v10 = vmul.f32 %v722_v63, %v1453_v58  ;;  %v1117_v11 = vadd.f32 %v1116_v8, %v1115_v0  ;;  %v1118_v13 = vpop.f32.mrb[18].mxu0  ;;  %v1467_v14 = vpop.f32.mrb[18].mxu1  ;;  %v768_v16 = vadd.f32 %v752_v4, %v1446_v41  ;;  %v600_v4 = vadd.f32 %v1412_v1, %v1417_v2 }
 0x11c   : > { %v723_v18 = vmul.f32 0.044715, %v1463_v5  ;;  %v1119_v20 = vpop.f32.mrb[19].mxu0  ;;  %v672_v21 = vpop.f32.mrb[19].mxu1  ;;  %v753_v30 = vmul.f32 %v737_v19, %v1455_v59 }
 0x11d   : > { %v754_v24 = vmul.f32 %v738_v10, %v1453_v58  ;;  %v573_v25 = vadd.f32 %v1117_v11, %v1417_v2  ;;  %v1120_v48 = vadd.f32 %v1119_v20, %v1118_v13  ;;  %v784_v28 = vmul.f32 0.7978846, %v768_v16 }
 0x11e   : > { %v739_v29 = vmul.f32 %v723_v18, %v1463_v5  ;;  %v769_v7 = vadd.f32 %v753_v30, %v1455_v59  ;;  %v705_v30 = vmul.f32 0.5, %v1455_v59 }
 0x11f   : > { %v770_v53 = vadd.f32 %v754_v24, %v1453_v58  ;;  %v1489_v32 = vadd.f32 %v669_v9, %v573_v25  ;;  %v576_v33 = vadd.f32 %v1120_v48, %v1417_v2  ;;  %1252 = vtanh.f32 %v784_v28 }
 0x120   : > { %v1245_v34 = vpop.eup %1244  ;;  %v755_v60 = vmul.f32 %v739_v29, %v1463_v5  ;;  %v785_v44 = vmul.f32 0.7978846, %v769_v7  ;;  %v704_v25 = vmul.f32 0.5, %v1446_v41  ;;  %v706_v29 = vmul.f32 0.5, %v1453_v58 }
 0x121   : > { %v1247_v36 = vpop.eup %1246  ;;  %v814_v37 = vadd.f32 1.0, %v1245_v34  ;;  %v786_v12 = vmul.f32 0.7978846, %v770_v53  ;;  %v724_v39 = vmul.f32 0.044715, %v1489_v32  ;;  %v1499_v45 = vadd.f32 %v672_v21, %v576_v33  ;;  %v1121_v17 = vpop.f32.mrb[20].mxu0 }
 0x122   : > { %v1249_v40 = vpop.eup %1248  ;;  %v812_v42 = vadd.f32 1.0, %v1247_v36  ;;  %v771_v43 = vadd.f32 %v755_v60, %v1463_v5  ;;  %v1167_v46 = vpop.f32.mrb[20].mxu1  ;;  %v707_v36 = vmul.f32 0.5, %v1463_v5 }
 0x123   : > { %v1251_v47 = vpop.eup %1250  ;;  %v830_v49 = vmul.f32 %v814_v37, %v702_v27  ;;  %v815_v50 = vadd.f32 1.0, %v1249_v40  ;;  %1254 = vtanh.f32 %v786_v12  ;;  %v740_v51 = vmul.f32 %v724_v39, %v1489_v32  ;;  %v1122_v52 = vpop.f32.mrb[21].mxu0 }
 0x124   : > { %v685_v22 = vpop.f32.mrb[21].mxu1  ;;  %v828_v54 = vmul.f32 %v812_v42, %v700_v31  ;;  %v813_v55 = vadd.f32 1.0, %v1251_v47  ;;  %v787_v56 = vmul.f32 0.7978846, %v771_v43  ;;  %1256 = vtanh.f32 %v785_v44  ;;  %v1124_v57 = vpop.f32.mrb[22].mxu0 }
 0x125   : > { %v1168_v61 = vpop.f32.mrb[22].mxu1  ;;  %v1061_v62 = vpack.c.bf16 %v830_v49, %v830_v49  ;;  %v831_v63 = vmul.f32 %v815_v50, %v703_v35  ;;  %v756_v0 = vmul.f32 %v740_v51, %v1489_v32  ;;  %v1125_v6 = vpop.f32.mrb[23].mxu0  ;;  %v725_v11 = vmul.f32 0.044715, %v1499_v45 }
 0x126   : > { %v1510_v8 = vpop.f32.mrb[23].mxu1  ;;  %v1059_v9 = vpack.c.bf16 %v828_v54, %v828_v54  ;;  %v829_v10 = vmul.f32 %v813_v55, %v701_v38  ;;  %1258 = vtanh.f32 %v787_v56  ;;  %v1516_v18 = vadd.f32 %v1167_v46, %v597_v26 }
 0x127   : > { %911 = vst.msk [vmem:[%s1505_s7 + $0x8] sm:$0xf] %vm908_vm1, %v1061_v62  ;;  %v1062_v13 = vpack.c.bf16 %v831_v63, %v831_v63  ;;  %v772_v16 = vadd.f32 %v756_v0, %v1489_v32  ;;  %v1123_v19 = vadd.f32 %v1122_v52, %v1121_v17  ;;  %v741_v20 = vmul.f32 %v725_v11, %v1499_v45 }
 0x128   : > { %909 = vst.msk [vmem:[%s1505_s7] sm:$0xf] %vm908_vm1, %v1059_v9  ;;  %v1060_v1 = vpack.c.bf16 %v829_v10, %v829_v10  ;;  %v1522_v21 = vadd.f32 %v685_v22, %v1471_v15  ;;  %v1524_v24 = vadd.f32 %v1168_v61, %v600_v4  ;;  %v730_v27 = vmul.f32 0.044715, %v1516_v18 }
 0x129   : > { %912 = vst.msk [vmem:[%s1505_s7 + $0xc] sm:$0xf] %vm908_vm1, %v1062_v13  ;;  %v788_v48 = vmul.f32 0.7978846, %v772_v16  ;;  %v581_v26 = vadd.f32 %v1123_v19, %v1417_v2  ;;  %v1253_v28 = vpop.eup %1252  ;;  %v757_v15 = vmul.f32 %v741_v20, %v1499_v45  ;;  %v1126_v58 = vadd.f32 %v1125_v6, %v1124_v57 }
 0x12a   : > { %910 = vst.msk [vmem:[%s1505_s7 + $0x4] sm:$0xf] %vm908_vm1, %v1060_v1  ;;  %v728_v31 = vmul.f32 0.044715, %v1522_v21  ;;  %v816_v53 = vadd.f32 1.0, %v1253_v28  ;;  %v746_v41 = vmul.f32 %v730_v27, %v1516_v18  ;;  %v689_v9 = vadd.f32 %v1510_v8, %v1478_v23 }
 0x12b   : > { %1260 = vtanh.f32 %v788_v48  ;;  %v1539_v33 = vadd.f32 %v1460_v3, %v581_v26  ;;  %v773_v34 = vadd.f32 %v757_v15, %v1499_v45  ;;  %v731_v60 = vmul.f32 0.044715, %v1524_v24 }
 0x12c   : > { %v744_v35 = vmul.f32 %v728_v31, %v1522_v21  ;;  %v832_v59 = vmul.f32 %v816_v53, %v704_v25  ;;  %v762_v37 = vmul.f32 %v746_v41, %v1516_v18  ;;  %v584_v61 = vadd.f32 %v1126_v58, %v1417_v2 }
 0x12d   : > { %v1255_v7 = vpop.eup %1254  ;;  %v726_v38 = vmul.f32 0.044715, %v1539_v33  ;;  %v789_v3 = vmul.f32 0.7978846, %v773_v34  ;;  %v747_v42 = vmul.f32 %v731_v60, %v1524_v24  ;;  %v708_v13 = vmul.f32 0.5, %v1489_v32 }
 0x12e   : > { %v1257_v12 = vpop.eup %1256  ;;  %v818_v39 = vadd.f32 1.0, %v1255_v7  ;;  %v760_v40 = vmul.f32 %v744_v35, %v1522_v21  ;;  %v1063_v43 = vpack.c.bf16 %v832_v59, %v832_v59  ;;  %v778_v17 = vadd.f32 %v762_v37, %v1516_v18 }
 0x12f   : > { %v817_v44 = vadd.f32 1.0, %v1257_v12  ;;  %v742_v46 = vmul.f32 %v726_v38, %v1539_v33  ;;  %1262 = vtanh.f32 %v789_v3  ;;  %v763_v50 = vmul.f32 %v747_v42, %v1524_v24 }
 0x130   : > { %v1259_v47 = vpop.eup %1258  ;;  %v834_v5 = vmul.f32 %v818_v39, %v706_v29  ;;  %v776_v49 = vadd.f32 %v760_v40, %v1522_v21  ;;  %913 = vst.msk [vmem:[%s1505_s7 + $0x10] sm:$0xf] %vm908_vm1, %v1063_v43  ;;  %v794_v22 = vmul.f32 0.7978846, %v778_v17  ;;  %v681_v6 = vadd.f32 %v1467_v14, %v584_v61 }
 0x131   : > { %v819_v51 = vadd.f32 1.0, %v1259_v47  ;;  %v833_v52 = vmul.f32 %v817_v44, %v705_v30  ;;  %v758_v54 = vmul.f32 %v742_v46, %v1539_v33  ;;  %v779_v57 = vadd.f32 %v763_v50, %v1524_v24 }
 0x132   : > { %v1065_v55 = vpack.c.bf16 %v834_v5, %v834_v5  ;;  %v792_v56 = vmul.f32 0.7978846, %v776_v49  ;;  %1264 = vtanh.f32 %v794_v22  ;;  %v727_v19 = vmul.f32 0.044715, %v681_v6 }
 0x133   : > { %v835_v62 = vmul.f32 %v819_v51, %v707_v36  ;;  %v1064_v63 = vpack.c.bf16 %v833_v52, %v833_v52  ;;  %v774_v0 = vadd.f32 %v758_v54, %v1539_v33  ;;  %v795_v4 = vmul.f32 0.7978846, %v779_v57 }
 0x134   : > { %915 = vst.msk [vmem:[%s1505_s7 + $0x18] sm:$0xf] %vm908_vm1, %v1065_v55  ;;  %1266 = vtanh.f32 %v792_v56  ;;  %v729_v1 = vmul.f32 0.044715, %v689_v9  ;;  %v743_v14 = vmul.f32 %v727_v19, %v681_v6  ;;  %v709_v27 = vmul.f32 0.5, %v1499_v45 }
 0x135   : > { %v1261_v10 = vpop.eup %1260  ;;  %v1066_v11 = vpack.c.bf16 %v835_v62, %v835_v62  ;;  %914 = vst.msk [vmem:[%s1505_s7 + $0x14] sm:$0xf] %vm908_vm1, %v1064_v63  ;;  %v790_v2 = vmul.f32 0.7978846, %v774_v0  ;;  %1268 = vtanh.f32 %v795_v4  ;;  %v714_v53 = vmul.f32 0.5, %v1516_v18 }
 0x136   : > { %v820_v16 = vadd.f32 1.0, %v1261_v10  ;;  %v745_v25 = vmul.f32 %v729_v1, %v689_v9  ;;  %v759_v8 = vmul.f32 %v743_v14, %v681_v6  ;;  %v712_v60 = vmul.f32 0.5, %v1522_v21 }
 0x137   : > { %916 = vst.msk [vmem:[%s1505_s7 + $0x1c] sm:$0xf] %vm908_vm1, %v1066_v11  ;;  %1270 = vtanh.f32 %v790_v2  ;;  %v715_v18 = vmul.f32 0.5, %v1524_v24  ;;  %v710_v21 = vmul.f32 0.5, %v1539_v33  ;;  %v711_v46 = vmul.f32 0.5, %v681_v6 }
 0x138   : > { %v836_v20 = vmul.f32 %v820_v16, %v708_v13  ;;  %v761_v28 = vmul.f32 %v745_v25, %v689_v9  ;;  %v775_v32 = vadd.f32 %v759_v8, %v681_v6  ;;  %v713_v47 = vmul.f32 0.5, %v689_v9 }
 0x139   : > { %v1263_v48 = vpop.eup %1262 }
 0x13a   : > { %v1067_v23 = vpack.c.bf16 %v836_v20, %v836_v20  ;;  %v821_v26 = vadd.f32 1.0, %v1263_v48  ;;  %v777_v15 = vadd.f32 %v761_v28, %v689_v9  ;;  %v791_v34 = vmul.f32 0.7978846, %v775_v32 }
 0x13c   : > { %917 = vst.msk [vmem:[%s1505_s7 + $0x20] sm:$0xf] %vm908_vm1, %v1067_v23  ;;  %v1265_v29 = vpop.eup %1264  ;;  %v837_v30 = vmul.f32 %v821_v26, %v709_v27  ;;  %v793_v45 = vmul.f32 0.7978846, %v777_v15  ;;  %1272 = vtanh.f32 %v791_v34 }
 0x13d   : > { %v826_v41 = vadd.f32 1.0, %v1265_v29 }
 0x13e   : > { %v1267_v31 = vpop.eup %1266  ;;  %v1068_v35 = vpack.c.bf16 %v837_v30, %v837_v30  ;;  %1274 = vtanh.f32 %v793_v45 }
 0x13f   : > { %v824_v58 = vadd.f32 1.0, %v1267_v31  ;;  %v1269_v7 = vpop.eup %1268  ;;  %v842_v59 = vmul.f32 %v826_v41, %v714_v53 }
 0x140   : > { %918 = vst.msk [vmem:[%s1505_s7 + $0x24] sm:$0xf] %vm908_vm1, %v1068_v35  ;;  %v827_v38 = vadd.f32 1.0, %v1269_v7 }
 0x141   : > { %v1271_v36 = vpop.eup %1270  ;;  %v840_v37 = vmul.f32 %v824_v58, %v712_v60  ;;  %v1073_v12 = vpack.c.bf16 %v842_v59, %v842_v59 }
 0x142   : > { %v822_v39 = vadd.f32 1.0, %v1271_v36  ;;  %v843_v40 = vmul.f32 %v827_v38, %v715_v18 }
 0x143   : > { %v1071_v3 = vpack.c.bf16 %v840_v37, %v840_v37  ;;  %923 = vst.msk [vmem:[%s1505_s7 + $0x38] sm:$0xf] %vm908_vm1, %v1073_v12 }
 0x144   : > { %v838_v42 = vmul.f32 %v822_v39, %v710_v21  ;;  %v1074_v43 = vpack.c.bf16 %v843_v40, %v843_v40 }
 0x145   : > { %921 = vst.msk [vmem:[%s1505_s7 + $0x30] sm:$0xf] %vm908_vm1, %v1071_v3 }
 0x146   : > { %v1069_v44 = vpack.c.bf16 %v838_v42, %v838_v42  ;;  %924 = vst.msk [vmem:[%s1505_s7 + $0x3c] sm:$0xf] %vm908_vm1, %v1074_v43  ;;  %v1273_v24 = vpop.eup %1272 }
 0x147   : > { %v823_v33 = vadd.f32 1.0, %v1273_v24 }
 0x148   : > { %919 = vst.msk [vmem:[%s1505_s7 + $0x28] sm:$0xf] %vm908_vm1, %v1069_v44  ;;  %v1275_v17 = vpop.eup %1274 }
 0x149   : > { %v825_v5 = vadd.f32 1.0, %v1275_v17  ;;  %v839_v49 = vmul.f32 %v823_v33, %v711_v46 }
 0x14b   : > { %v841_v50 = vmul.f32 %v825_v5, %v713_v47  ;;  %v1070_v51 = vpack.c.bf16 %v839_v49, %v839_v49 }
 0x14d   : > { %v1072_v52 = vpack.c.bf16 %v841_v50, %v841_v50  ;;  %920 = vst.msk [vmem:[%s1505_s7 + $0x2c] sm:$0xf] %vm908_vm1, %v1070_v51 }
 0x14f   : > { %922 = vst.msk [vmem:[%s1505_s7 + $0x34] sm:$0xf] %vm908_vm1, %v1072_v52 }
 0x150 PF: > { %s13_s12 = sadd.s32 1, %s1282_s12  }
 0x151   : > { %p10_p4 = scmp.ge.s32.totalorder %s13_s12, 8  }
 0x153   :  { %12 = sbr.rel (!%p10_p4) target bundleno = 1 (0x1), region = 62 }

// kernel: _lambda_.9
= control target key start
LH: loop header
LB: loop body
LE: loop exit
PB: predicated region body
PF: predicated region fallthrough
CT: control target
= control target key end

     0   :  { %vm374_vm0 = vcmask 523264   ;;  %vm704_vm1 = vcmask 650240   ;;  %s1648_s1 = inlined_call_operand.vmem [shape: bf16[64,80], index: 1, kind: input, shape index: {}]   ;;  %s1649_s0 = inlined_call_operand.vmem [shape: bf16[9,128,64], index: 0, kind: input, shape index: {}]   ;;  %s1650_s2 = inlined_call_operand.vmem [shape: f32[1,80], index: 2, kind: input, shape index: {}]   ;;  %s1651_s3 = inlined_call_operand.vmem [shape: bf16[128,80], index: 3, kind: output, shape index: {}]  }
   0x1   :  { %v950_v0 = vld [vmem:[%s1648_s1] sm:$0xff]   ;;  %v951_v1 = vld [vmem:[%s1648_s1 + $0x8] sm:$0xff]   ;;  %v952_v2 = vld [vmem:[%s1648_s1 + $0x10] sm:$0xff]  }
   0x2   :  { %918 = vmatprep.subr.bf16.mxu0 %v950_v0  ;;  %942 = vmatprep.subr.bf16.mxu1 %v950_v0  ;;  %v15_v3 = vld [vmem:[%s1649_s0] sm:$0xf]  ;;  %v16_v4 = vld [vmem:[%s1649_s0 + $0x4] sm:$0xf]  ;;  %v953_v14 = vld [vmem:[%s1648_s1 + $0x18] sm:$0xff]  }
   0x3   :  { %919 = vmatpush3.bf16.msra.mxu0 %v950_v0  ;;  %946 = vmatpush3.bf16.msra.mxu1 %v950_v0  ;;  %v725_v5 = vld [vmem:[%s1649_s0 + $0x40] sm:$0xf]  ;;  %v726_v6 = vld [vmem:[%s1649_s0 + $0x44] sm:$0xf]  ;;  %v17_v52 = vld [vmem:[%s1649_s0 + $0x8] sm:$0xf] }
   0x4   :  { %920 = vmatprep.subr.bf16.mxu0 %v951_v1  ;;  %943 = vmatprep.subr.bf16.mxu1 %v951_v1  ;;  %v48_v7 = vmax.bf16 %v725_v5, %v15_v3  ;;  %v741_v8 = vld [vmem:[%s1649_s0 + $0x80] sm:$0xf]  ;;  %v742_v9 = vld [vmem:[%s1649_s0 + $0x84] sm:$0xf]  ;;  %v49_v10 = vmax.bf16 %v726_v6, %v16_v4  ;;  %v18_v53 = vld [vmem:[%s1649_s0 + $0xc] sm:$0xf] }
   0x5   :  { %v757_v11 = vld [vmem:[%s1649_s0 + $0xc0] sm:$0xf]  ;;  %v758_v13 = vld [vmem:[%s1649_s0 + $0xc4] sm:$0xf]  ;;  %v727_v54 = vld [vmem:[%s1649_s0 + $0x48] sm:$0xf] }
   0x6   :  { %v81_v12 = vmax.bf16 %v741_v8, %v48_v7  ;;  %v82_v15 = vmax.bf16 %v742_v9, %v49_v10  ;;  %v773_v16 = vld [vmem:[%s1649_s0 + $0x100] sm:$0xf]  ;;  %v774_v18 = vld [vmem:[%s1649_s0 + $0x104] sm:$0xf]  ;;  %v728_v57 = vld [vmem:[%s1649_s0 + $0x4c] sm:$0xf]  ;;  %v50_v58 = vmax.bf16 %v727_v54, %v17_v52 }
   0x7   :  { %921 = vmatpush3.bf16.msra.mxu0 %v951_v1  ;;  %947 = vmatpush3.bf16.msra.mxu1 %v951_v1  ;;  %v789_v19 = vld [vmem:[%s1649_s0 + $0x140] sm:$0xf]  ;;  %v790_v20 = vld [vmem:[%s1649_s0 + $0x144] sm:$0xf]  ;;  %v743_v59 = vld [vmem:[%s1649_s0 + $0x88] sm:$0xf]  ;;  %v51_v0 = vmax.bf16 %v728_v57, %v18_v53 }
   0x8   :  { %922 = vmatprep.subr.bf16.mxu0 %v952_v2  ;;  %944 = vmatprep.subr.bf16.mxu1 %v952_v2  ;;  %v114_v17 = vmax.bf16 %v757_v11, %v81_v12  ;;  %v115_v21 = vmax.bf16 %v758_v13, %v82_v15  ;;  %v23_v22 = vld [vmem:[%s1649_s0 + $0x20] sm:$0xf]  ;;  %v24_v23 = vld [vmem:[%s1649_s0 + $0x24] sm:$0xf]  ;;  %v744_v60 = vld [vmem:[%s1649_s0 + $0x8c] sm:$0xf]  ;;  %v83_v6 = vmax.bf16 %v743_v59, %v50_v58 }
   0x9   :  { %v733_v24 = vld [vmem:[%s1649_s0 + $0x60] sm:$0xf]  ;;  %v734_v26 = vld [vmem:[%s1649_s0 + $0x64] sm:$0xf]  ;;  %v759_v1 = vld [vmem:[%s1649_s0 + $0xc8] sm:$0xf]  ;;  %v84_v12 = vmax.bf16 %v744_v60, %v51_v0 }
   0xa   :  { %v147_v25 = vmax.bf16 %v773_v16, %v114_v17  ;;  %v56_v27 = vmax.bf16 %v733_v24, %v23_v22  ;;  %v749_v28 = vld [vmem:[%s1649_s0 + $0xa0] sm:$0xf]  ;;  %v750_v29 = vld [vmem:[%s1649_s0 + $0xa4] sm:$0xf]  ;;  %v148_v30 = vmax.bf16 %v774_v18, %v115_v21  ;;  %v57_v32 = vmax.bf16 %v734_v26, %v24_v23  ;;  %v760_v7 = vld [vmem:[%s1649_s0 + $0xcc] sm:$0xf] }
   0xb   :  { %923 = vmatpush3.bf16.msra.mxu0 %v952_v2  ;;  %948 = vmatpush3.bf16.msra.mxu1 %v952_v2  ;;  %v805_v31 = vld [vmem:[%s1649_s0 + $0x180] sm:$0xf]  ;;  %v806_v35 = vld [vmem:[%s1649_s0 + $0x184] sm:$0xf]  ;;  %v775_v13 = vld [vmem:[%s1649_s0 + $0x108] sm:$0xf]  ;;  %v116_v16 = vmax.bf16 %v759_v1, %v83_v6  ;;  %v117_v22 = vmax.bf16 %v760_v7, %v84_v12 }
   0xc   :  { %924 = vmatprep.subr.bf16.mxu0 %v953_v14  ;;  %945 = vmatprep.subr.bf16.mxu1 %v953_v14  ;;  %v765_v33 = vld [vmem:[%s1649_s0 + $0xe0] sm:$0xf]  ;;  %v180_v34 = vmax.bf16 %v789_v19, %v147_v25  ;;  %v89_v37 = vmax.bf16 %v749_v28, %v56_v27  ;;  %v766_v38 = vld [vmem:[%s1649_s0 + $0xe4] sm:$0xf]  ;;  %v181_v39 = vmax.bf16 %v790_v20, %v148_v30  ;;  %v776_v17 = vld [vmem:[%s1649_s0 + $0x10c] sm:$0xf] }
   0xd   :  { %v821_v36 = vld [vmem:[%s1649_s0 + $0x1c0] sm:$0xf]  ;;  %v822_v40 = vld [vmem:[%s1649_s0 + $0x1c4] sm:$0xf]  ;;  %v90_v42 = vmax.bf16 %v750_v29, %v57_v32  ;;  %v791_v18 = vld [vmem:[%s1649_s0 + $0x148] sm:$0xf]  ;;  %v149_v27 = vmax.bf16 %v775_v13, %v116_v16 }
   0xe   :  { %v837_v41 = vld [vmem:[%s1649_s0 + $0x200] sm:$0xf]  ;;  %v213_v44 = vmax.bf16 %v805_v31, %v180_v34  ;;  %v838_v45 = vld [vmem:[%s1649_s0 + $0x204] sm:$0xf]  ;;  %v122_v46 = vmax.bf16 %v765_v33, %v89_v37  ;;  %v214_v50 = vmax.bf16 %v806_v35, %v181_v39  ;;  %v792_v19 = vld [vmem:[%s1649_s0 + $0x14c] sm:$0xf]  ;;  %v150_v33 = vmax.bf16 %v776_v17, %v117_v22 }
   0xf   :  { %v781_v43 = vld [vmem:[%s1649_s0 + $0x120] sm:$0xf]  ;;  %925 = vmatpush3.bf16.msra.mxu0 %v953_v14  ;;  %949 = vmatpush3.bf16.msra.mxu1 %v953_v14  ;;  %v782_v47 = vld [vmem:[%s1649_s0 + $0x124] sm:$0xf]  ;;  %v123_v51 = vmax.bf16 %v766_v38, %v90_v42  ;;  %v25_v23 = vld [vmem:[%s1649_s0 + $0x28] sm:$0xf]  ;;  %v182_v38 = vmax.bf16 %v791_v18, %v149_v27 }
  0x10   :  { %v797_v48 = vld [vmem:[%s1649_s0 + $0x160] sm:$0xf]  ;;  %v798_v49 = vld [vmem:[%s1649_s0 + $0x164] sm:$0xf]  ;;  %v246_v55 = vmax.bf16 %v821_v36, %v213_v44  ;;  %v155_v56 = vmax.bf16 %v781_v43, %v122_v46  ;;  %v247_v61 = vmax.bf16 %v822_v40, %v214_v50  ;;  %v26_v24 = vld [vmem:[%s1649_s0 + $0x2c] sm:$0xf]  ;;  %v183_v44 = vmax.bf16 %v792_v19, %v150_v33 }
  0x11   :  { %v156_v62 = vmax.bf16 %v782_v47, %v123_v51  ;;  %v813_v63 = vld [vmem:[%s1649_s0 + $0x1a0] sm:$0xf]  ;;  %v814_v4 = vld [vmem:[%s1649_s0 + $0x1a4] sm:$0xf]  ;;  %v735_v25 = vld [vmem:[%s1649_s0 + $0x68] sm:$0xf] }
  0x12   :  { %v279_v2 = vmax.bf16 %v837_v41, %v246_v55  ;;  %v188_v3 = vmax.bf16 %v797_v48, %v155_v56  ;;  %v829_v5 = vld [vmem:[%s1649_s0 + $0x1e0] sm:$0xf]  ;;  %v280_v8 = vmax.bf16 %v838_v45, %v247_v61  ;;  %v830_v10 = vld [vmem:[%s1649_s0 + $0x1e4] sm:$0xf]  ;;  %v736_v28 = vld [vmem:[%s1649_s0 + $0x6c] sm:$0xf]  ;;  %v58_v29 = vmax.bf16 %v735_v25, %v25_v23 }
  0x13   :  { %v189_v9 = vmax.bf16 %v798_v49, %v156_v62  ;;  %v845_v11 = vld [vmem:[%s1649_s0 + $0x220] sm:$0xf]  ;;  %v846_v15 = vld [vmem:[%s1649_s0 + $0x224] sm:$0xf]  ;;  %v751_v30 = vld [vmem:[%s1649_s0 + $0xa8] sm:$0xf]  ;;  %v59_v35 = vmax.bf16 %v736_v28, %v26_v24 }
  0x14   :  { %v221_v14 = vmax.bf16 %v813_v63, %v188_v3  ;;  %v854_v20 = vcombine.low %v279_v2, %v280_v8  ;;  %v752_v31 = vld [vmem:[%s1649_s0 + $0xac] sm:$0xf]  ;;  %v807_v34 = vld [vmem:[%s1649_s0 + $0x188] sm:$0xf]  ;;  %v91_v41 = vmax.bf16 %v751_v30, %v58_v29  ;;  %v19_v58 = vld [vmem:[%s1649_s0 + $0x10] sm:$0xf] }
  0x15   :  { %v222_v21 = vmax.bf16 %v814_v4, %v189_v9  ;;  %v767_v36 = vld [vmem:[%s1649_s0 + $0xe8] sm:$0xf]  ;;  %v808_v39 = vld [vmem:[%s1649_s0 + $0x18c] sm:$0xf]  ;;  %v92_v47 = vmax.bf16 %v752_v31, %v59_v35  ;;  %v215_v49 = vmax.bf16 %v807_v34, %v182_v38  ;;  %v20_v59 = vld [vmem:[%s1649_s0 + $0x14] sm:$0xf] }
  0x16   :  { %v254_v26 = vmax.bf16 %v829_v5, %v221_v14  ;;  %926 = vmatprep.mubr.msk.bf16.mxu0 %vm374_vm0, %v854_v20  ;;  %v823_v40 = vld [vmem:[%s1649_s0 + $0x1c8] sm:$0xf]  ;;  %v768_v42 = vld [vmem:[%s1649_s0 + $0xec] sm:$0xf]  ;;  %v124_v51 = vmax.bf16 %v767_v36, %v91_v41  ;;  %v216_v56 = vmax.bf16 %v808_v39, %v183_v44  ;;  %v729_v60 = vld [vmem:[%s1649_s0 + $0x50] sm:$0xf] }
  0x17   :  { %v255_v32 = vmax.bf16 %v830_v10, %v222_v21  ;;  %v824_v45 = vld [vmem:[%s1649_s0 + $0x1cc] sm:$0xf]  ;;  %v839_v46 = vld [vmem:[%s1649_s0 + $0x208] sm:$0xf]  ;;  %v125_v57 = vmax.bf16 %v768_v42, %v92_v47  ;;  %v248_v61 = vmax.bf16 %v823_v40, %v215_v49  ;;  %v730_v63 = vld [vmem:[%s1649_s0 + $0x54] sm:$0xf]  ;;  %v52_v0 = vmax.bf16 %v729_v60, %v19_v58 }
  0x18   :  { %v287_v37 = vmax.bf16 %v845_v11, %v254_v26  ;;  %v783_v48 = vld [vmem:[%s1649_s0 + $0x128] sm:$0xf]  ;;  %v840_v50 = vld [vmem:[%s1649_s0 + $0x20c] sm:$0xf]  ;;  %v745_v1 = vld [vmem:[%s1649_s0 + $0x90] sm:$0xf]  ;;  %v249_v3 = vmax.bf16 %v824_v45, %v216_v56  ;;  %v53_v6 = vmax.bf16 %v730_v63, %v20_v59 }
  0x19   :  { %v288_v43 = vmax.bf16 %v846_v15, %v255_v32  ;;  %v784_v52 = vld [vmem:[%s1649_s0 + $0x12c] sm:$0xf]  ;;  %v799_v53 = vld [vmem:[%s1649_s0 + $0x168] sm:$0xf]  ;;  %v157_v62 = vmax.bf16 %v783_v48, %v124_v51  ;;  %v746_v2 = vld [vmem:[%s1649_s0 + $0x94] sm:$0xf]  ;;  %v281_v8 = vmax.bf16 %v839_v46, %v248_v61  ;;  %v85_v12 = vmax.bf16 %v745_v1, %v52_v0 }
  0x1a   :  { %v800_v54 = vld [vmem:[%s1649_s0 + $0x16c] sm:$0xf]  ;;  %v158_v4 = vmax.bf16 %v784_v52, %v125_v57  ;;  %v815_v5 = vld [vmem:[%s1649_s0 + $0x1a8] sm:$0xf]  ;;  %v761_v7 = vld [vmem:[%s1649_s0 + $0xd0] sm:$0xf]  ;;  %v282_v14 = vmax.bf16 %v840_v50, %v249_v3  ;;  %v86_v18 = vmax.bf16 %v746_v2, %v53_v6 }
  0x1b   :  { %v858_v55 = vcombine.low %v287_v37, %v288_v43  ;;  %v190_v9 = vmax.bf16 %v799_v53, %v157_v62  ;;  %v816_v10 = vld [vmem:[%s1649_s0 + $0x1ac] sm:$0xf]  ;;  %v831_v11 = vld [vmem:[%s1649_s0 + $0x1e8] sm:$0xf]  ;;  %v762_v13 = vld [vmem:[%s1649_s0 + $0xd4] sm:$0xf]  ;;  %v118_v22 = vmax.bf16 %v761_v7, %v85_v12 }
  0x1c   :  { %v191_v15 = vmax.bf16 %v800_v54, %v158_v4  ;;  %v832_v16 = vld [vmem:[%s1649_s0 + $0x1ec] sm:$0xf]  ;;  %v847_v17 = vld [vmem:[%s1649_s0 + $0x228] sm:$0xf]  ;;  %v777_v19 = vld [vmem:[%s1649_s0 + $0x110] sm:$0xf]  ;;  %v855_v26 = vcombine.low %v281_v8, %v282_v14  ;;  %v119_v28 = vmax.bf16 %v762_v13, %v86_v18 }
  0x1d   :  { %934 = vmatprep.mubr.msk.bf16.mxu1 %vm374_vm0, %v858_v55  ;;  %v223_v20 = vmax.bf16 %v815_v5, %v190_v9  ;;  %v848_v21 = vld [vmem:[%s1649_s0 + $0x22c] sm:$0xf]  ;;  %v778_v23 = vld [vmem:[%s1649_s0 + $0x114] sm:$0xf]  ;;  %v793_v24 = vld [vmem:[%s1649_s0 + $0x150] sm:$0xf]  ;;  %v151_v33 = vmax.bf16 %v777_v19, %v118_v22 }
  0x1e   :  { %v794_v25 = vld [vmem:[%s1649_s0 + $0x154] sm:$0xf]  ;;  %v224_v27 = vmax.bf16 %v816_v10, %v191_v15  ;;  %v27_v29 = vld [vmem:[%s1649_s0 + $0x30] sm:$0xf]  ;;  %927 = vmatmul.mubr.msk.bf16.vlgmr.msra.gmra.mrb[0].mxu0 %vm374_vm0, %v855_v26  ;;  %v152_v39 = vmax.bf16 %v778_v23, %v119_v28  ;;  %v21_v0 = vld [vmem:[%s1649_s0 + $0x18] sm:$0xf] }
  0x1f   :  { %v28_v30 = vld [vmem:[%s1649_s0 + $0x34] sm:$0xf]  ;;  %v737_v31 = vld [vmem:[%s1649_s0 + $0x70] sm:$0xf]  ;;  %v256_v32 = vmax.bf16 %v831_v11, %v223_v20  ;;  %v184_v44 = vmax.bf16 %v793_v24, %v151_v33  ;;  %v22_v1 = vld [vmem:[%s1649_s0 + $0x1c] sm:$0xf] }
  0x20   :  { %v738_v34 = vld [vmem:[%s1649_s0 + $0x74] sm:$0xf]  ;;  %v60_v35 = vmax.bf16 %v737_v31, %v27_v29  ;;  %v753_v36 = vld [vmem:[%s1649_s0 + $0xb0] sm:$0xf]  ;;  %v257_v38 = vmax.bf16 %v832_v16, %v224_v27  ;;  %v185_v50 = vmax.bf16 %v794_v25, %v152_v39  ;;  %v731_v2 = vld [vmem:[%s1649_s0 + $0x58] sm:$0xf] }
  0x21   :  { %v754_v37 = vld [vmem:[%s1649_s0 + $0xb4] sm:$0xf]  ;;  %v809_v40 = vld [vmem:[%s1649_s0 + $0x190] sm:$0xf]  ;;  %v61_v41 = vmax.bf16 %v738_v34, %v28_v30  ;;  %v289_v43 = vmax.bf16 %v847_v17, %v256_v32  ;;  %v732_v5 = vld [vmem:[%s1649_s0 + $0x5c] sm:$0xf]  ;;  %v54_v6 = vmax.bf16 %v731_v2, %v21_v0 }
  0x22   :  { %v769_v42 = vld [vmem:[%s1649_s0 + $0xf0] sm:$0xf]  ;;  %v810_v45 = vld [vmem:[%s1649_s0 + $0x194] sm:$0xf]  ;;  %v93_v47 = vmax.bf16 %v753_v36, %v60_v35  ;;  %v290_v49 = vmax.bf16 %v848_v21, %v257_v38  ;;  %v217_v55 = vmax.bf16 %v809_v40, %v184_v44  ;;  %v747_v7 = vld [vmem:[%s1649_s0 + $0x98] sm:$0xf]  ;;  %v55_v12 = vmax.bf16 %v732_v5, %v22_v1 }
  0x23   :  { %v825_v46 = vld [vmem:[%s1649_s0 + $0x1d0] sm:$0xf]  ;;  %v770_v48 = vld [vmem:[%s1649_s0 + $0xf4] sm:$0xf]  ;;  %v94_v53 = vmax.bf16 %v754_v37, %v61_v41  ;;  %v218_v62 = vmax.bf16 %v810_v45, %v185_v50  ;;  %v748_v8 = vld [vmem:[%s1649_s0 + $0x9c] sm:$0xf]  ;;  %v87_v18 = vmax.bf16 %v747_v7, %v54_v6 }
  0x24   :  { %v826_v51 = vld [vmem:[%s1649_s0 + $0x1d4] sm:$0xf]  ;;  %v841_v52 = vld [vmem:[%s1649_s0 + $0x210] sm:$0xf]  ;;  %v126_v57 = vmax.bf16 %v769_v42, %v93_v47  ;;  %v859_v61 = vcombine.low %v289_v43, %v290_v49  ;;  %v250_v3 = vmax.bf16 %v825_v46, %v217_v55  ;;  %v763_v13 = vld [vmem:[%s1649_s0 + $0xd8] sm:$0xf]  ;;  %v88_v24 = vmax.bf16 %v748_v8, %v55_v12 }
  0x25   :  { %v785_v54 = vld [vmem:[%s1649_s0 + $0x130] sm:$0xf]  ;;  %v842_v56 = vld [vmem:[%s1649_s0 + $0x214] sm:$0xf]  ;;  %v127_v63 = vmax.bf16 %v770_v48, %v94_v53  ;;  %v251_v9 = vmax.bf16 %v826_v51, %v218_v62  ;;  %v764_v19 = vld [vmem:[%s1649_s0 + $0xdc] sm:$0xf]  ;;  %v120_v28 = vmax.bf16 %v763_v13, %v87_v18 }
  0x26   :  { %v786_v58 = vld [vmem:[%s1649_s0 + $0x134] sm:$0xf]  ;;  %v801_v59 = vld [vmem:[%s1649_s0 + $0x170] sm:$0xf]  ;;  %v159_v4 = vmax.bf16 %v785_v54, %v126_v57  ;;  %935 = vmatmul.mubr.msk.bf16.vlgmr.msra.gmra.mrb[0].mxu1 %vm374_vm0, %v859_v61  ;;  %v283_v14 = vmax.bf16 %v841_v52, %v250_v3  ;;  %v779_v25 = vld [vmem:[%s1649_s0 + $0x118] sm:$0xf]  ;;  %v121_v34 = vmax.bf16 %v764_v19, %v88_v24 }
  0x27   :  { %v802_v60 = vld [vmem:[%s1649_s0 + $0x174] sm:$0xf]  ;;  %v160_v10 = vmax.bf16 %v786_v58, %v127_v63  ;;  %v817_v11 = vld [vmem:[%s1649_s0 + $0x1b0] sm:$0xf]  ;;  %v284_v20 = vmax.bf16 %v842_v56, %v251_v9  ;;  %v780_v29 = vld [vmem:[%s1649_s0 + $0x11c] sm:$0xf]  ;;  %v153_v39 = vmax.bf16 %v779_v25, %v120_v28 }
  0x28   :  { %v192_v15 = vmax.bf16 %v801_v59, %v159_v4  ;;  %v818_v16 = vld [vmem:[%s1649_s0 + $0x1b4] sm:$0xf]  ;;  %v833_v17 = vld [vmem:[%s1649_s0 + $0x1f0] sm:$0xf]  ;;  %v795_v30 = vld [vmem:[%s1649_s0 + $0x158] sm:$0xf]  ;;  %v154_v45 = vmax.bf16 %v780_v29, %v121_v34 }
  0x29   :  { %v193_v21 = vmax.bf16 %v802_v60, %v160_v10  ;;  %v834_v22 = vld [vmem:[%s1649_s0 + $0x1f4] sm:$0xf]  ;;  %v849_v23 = vld [vmem:[%s1649_s0 + $0x230] sm:$0xf]  ;;  %v796_v31 = vld [vmem:[%s1649_s0 + $0x15c] sm:$0xf]  ;;  %v856_v32 = vcombine.low %v283_v14, %v284_v20  ;;  %v186_v50 = vmax.bf16 %v795_v30, %v153_v39 }
  0x2a   :  { %v225_v26 = vmax.bf16 %v817_v11, %v192_v15  ;;  %v850_v27 = vld [vmem:[%s1649_s0 + $0x234] sm:$0xf]  ;;  %v29_v35 = vld [vmem:[%s1649_s0 + $0x38] sm:$0xf]  ;;  %v30_v36 = vld [vmem:[%s1649_s0 + $0x3c] sm:$0xf]  ;;  %v187_v55 = vmax.bf16 %v796_v31, %v154_v45 }
  0x2b   :  { %v226_v33 = vmax.bf16 %v818_v16, %v193_v21  ;;  %v739_v37 = vld [vmem:[%s1649_s0 + $0x78] sm:$0xf]  ;;  %v740_v40 = vld [vmem:[%s1649_s0 + $0x7c] sm:$0xf]  ;;  %930 = vmatprep.mubr.msk.bf16.mxu0 %vm374_vm0, %v856_v32  ;;  %v1461_v28 = vld [vmem:[%s1650_s2] ss:$0 sm:$0xff] }
  0x2c   :  { %v258_v38 = vmax.bf16 %v833_v17, %v225_v26  ;;  %v62_v41 = vmax.bf16 %v739_v37, %v29_v35  ;;  %v755_v42 = vld [vmem:[%s1649_s0 + $0xb8] sm:$0xf]  ;;  %v756_v43 = vld [vmem:[%s1649_s0 + $0xbc] sm:$0xf]  ;;  %v63_v47 = vmax.bf16 %v740_v40, %v30_v36 }
  0x2d   :  { %v259_v44 = vmax.bf16 %v834_v22, %v226_v33  ;;  %v811_v46 = vld [vmem:[%s1649_s0 + $0x198] sm:$0xf]  ;;  %v812_v51 = vld [vmem:[%s1649_s0 + $0x19c] sm:$0xf] }
  0x2e   :  { %v771_v48 = vld [vmem:[%s1649_s0 + $0xf8] sm:$0xf]  ;;  %v291_v49 = vmax.bf16 %v849_v23, %v258_v38  ;;  %v95_v52 = vmax.bf16 %v755_v42, %v62_v41  ;;  %v772_v53 = vld [vmem:[%s1649_s0 + $0xfc] sm:$0xf]  ;;  %v96_v57 = vmax.bf16 %v756_v43, %v63_v47  ;;  %v219_v59 = vmax.bf16 %v811_v46, %v186_v50 }
  0x2f   :  { %v292_v54 = vmax.bf16 %v850_v27, %v259_v44  ;;  %v827_v56 = vld [vmem:[%s1649_s0 + $0x1d8] sm:$0xf]  ;;  %v828_v60 = vld [vmem:[%s1649_s0 + $0x1dc] sm:$0xf]  ;;  %v220_v0 = vmax.bf16 %v812_v51, %v187_v55 }
  0x30   :  { %v787_v58 = vld [vmem:[%s1649_s0 + $0x138] sm:$0xf]  ;;  %v128_v61 = vmax.bf16 %v771_v48, %v95_v52  ;;  %v788_v62 = vld [vmem:[%s1649_s0 + $0x13c] sm:$0xf]  ;;  %v129_v2 = vmax.bf16 %v772_v53, %v96_v57  ;;  %v252_v4 = vmax.bf16 %v827_v56, %v219_v59 }
  0x31   :  { %v860_v63 = vcombine.low %v291_v49, %v292_v54  ;;  %v843_v1 = vld [vmem:[%s1649_s0 + $0x218] sm:$0xf]  ;;  %v844_v5 = vld [vmem:[%s1649_s0 + $0x21c] sm:$0xf]  ;;  %v253_v8 = vmax.bf16 %v828_v60, %v220_v0 }
  0x32   :  { %v803_v3 = vld [vmem:[%s1649_s0 + $0x178] sm:$0xf]  ;;  %v161_v6 = vmax.bf16 %v787_v58, %v128_v61  ;;  %v804_v7 = vld [vmem:[%s1649_s0 + $0x17c] sm:$0xf]  ;;  %v162_v9 = vmax.bf16 %v788_v62, %v129_v2  ;;  %v285_v11 = vmax.bf16 %v843_v1, %v252_v4 }
  0x33   :  { %938 = vmatprep.mubr.msk.bf16.mxu1 %vm374_vm0, %v860_v63  ;;  %v819_v10 = vld [vmem:[%s1649_s0 + $0x1b8] sm:$0xf]  ;;  %v820_v13 = vld [vmem:[%s1649_s0 + $0x1bc] sm:$0xf]  ;;  %v286_v14 = vmax.bf16 %v844_v5, %v253_v8 }
  0x34   :  { %v194_v12 = vmax.bf16 %v803_v3, %v161_v6  ;;  %v195_v15 = vmax.bf16 %v804_v7, %v162_v9  ;;  %v835_v16 = vld [vmem:[%s1649_s0 + $0x1f8] sm:$0xf]  ;;  %v836_v18 = vld [vmem:[%s1649_s0 + $0x1fc] sm:$0xf] }
  0x35   :  { %v857_v19 = vcombine.low %v285_v11, %v286_v14  ;;  %v851_v21 = vld [vmem:[%s1649_s0 + $0x238] sm:$0xf]  ;;  %v852_v23 = vld [vmem:[%s1649_s0 + $0x23c] sm:$0xf] }
  0x36   :  { %v227_v17 = vmax.bf16 %v819_v10, %v194_v12  ;;  %v228_v20 = vmax.bf16 %v820_v13, %v195_v15 }
  0x37   :  { %931 = vmatmul.mubr.msk.bf16.gmra.mrb[4].mxu0 %vm374_vm0, %v857_v19 }
  0x38   :  { %v260_v22 = vmax.bf16 %v835_v16, %v227_v17  ;;  %v261_v24 = vmax.bf16 %v836_v18, %v228_v20 }
  0x3a   :  { %v293_v25 = vmax.bf16 %v851_v21, %v260_v22  ;;  %v294_v26 = vmax.bf16 %v852_v23, %v261_v24 }
  0x3c   :  { %v861_v27 = vcombine.low %v293_v25, %v294_v26 }
  0x3e   :  { %939 = vmatmul.mubr.msk.bf16.gmra.mrb[4].mxu1 %vm374_vm0, %v861_v27 }
  0xf1   :  { %v928_v29 = vpop.f32.mrb[0].mxu0 }
  0xf2   :  { %v442_v30 = vadd.f32 %v928_v29, %v1461_v28  ;;  %v433_v31 = vpop.f32.mrb[1].mxu0 }
  0xf3   :  { %v1465_v32 = vadd.f32 %v1461_v28, %v433_v31  ;;  %v929_v33 = vpop.f32.mrb[2].mxu0 }
  0xf4   :  { %v514_v34 = vmul.f32 0.044715, %v442_v30  ;;  %v1468_v35 = vadd.f32 %v929_v33, %v1461_v28  ;;  %v436_v36 = vpop.f32.mrb[3].mxu0  ;;  %v498_v22 = vmul.f32 0.5, %v442_v30 }
  0xf5   :  { %v512_v37 = vmul.f32 0.044715, %v1465_v32  ;;  %v1472_v38 = vadd.f32 %v1461_v28, %v436_v36  ;;  %v496_v27 = vmul.f32 0.5, %v1465_v32 }
  0xf6   :  { %v530_v39 = vmul.f32 %v514_v34, %v442_v30  ;;  %v515_v40 = vmul.f32 0.044715, %v1468_v35  ;;  %v499_v31 = vmul.f32 0.5, %v1468_v35 }
  0xf7   :  { %v528_v42 = vmul.f32 %v512_v37, %v1465_v32  ;;  %v513_v43 = vmul.f32 0.044715, %v1472_v38 }
  0xf8   :  { %v546_v44 = vmul.f32 %v530_v39, %v442_v30  ;;  %v531_v47 = vmul.f32 %v515_v40, %v1468_v35 }
  0xf9   :  { %v936_v41 = vpop.f32.mrb[0].mxu1  ;;  %v544_v48 = vmul.f32 %v528_v42, %v1465_v32  ;;  %v529_v51 = vmul.f32 %v513_v43, %v1472_v38  ;;  %v497_v42 = vmul.f32 0.5, %v1472_v38 }
  0xfa   :  { %v1478_v45 = vadd.f32 %v936_v41, %v1461_v28  ;;  %v465_v46 = vpop.f32.mrb[1].mxu1  ;;  %v562_v52 = vadd.f32 %v546_v44, %v442_v30  ;;  %v547_v54 = vmul.f32 %v531_v47, %v1468_v35 }
  0xfb   :  { %v1483_v49 = vadd.f32 %v1461_v28, %v465_v46  ;;  %v937_v50 = vpop.f32.mrb[2].mxu1  ;;  %v560_v56 = vadd.f32 %v544_v48, %v1465_v32  ;;  %v545_v62 = vmul.f32 %v529_v51, %v1472_v38 }
  0xfc   :  { %v522_v53 = vmul.f32 0.044715, %v1478_v45  ;;  %v468_v55 = vpop.f32.mrb[3].mxu1  ;;  %v1491_v58 = vadd.f32 %v937_v50, %v1461_v28  ;;  %v578_v59 = vmul.f32 0.7978846, %v562_v52  ;;  %v563_v61 = vadd.f32 %v547_v54, %v1468_v35 }
  0xfd   :  { %v520_v57 = vmul.f32 0.044715, %v1483_v49  ;;  %v576_v63 = vmul.f32 0.7978846, %v560_v56  ;;  %v561_v4 = vadd.f32 %v545_v62, %v1472_v38  ;;  %v1503_v7 = vadd.f32 %v1461_v28, %v468_v55 }
  0xfe   :  { %v538_v60 = vmul.f32 %v522_v53, %v1478_v45  ;;  %v523_v1 = vmul.f32 0.044715, %v1491_v58  ;;  %954 = vtanh.f32 %v578_v59  ;;  %v579_v3 = vmul.f32 0.7978846, %v563_v61 }
  0xff   :  { %v536_v0 = vmul.f32 %v520_v57, %v1483_v49  ;;  %956 = vtanh.f32 %v576_v63  ;;  %v577_v9 = vmul.f32 0.7978846, %v561_v4  ;;  %v521_v12 = vmul.f32 0.044715, %v1503_v7 }
 0x100   :  { %v554_v2 = vmul.f32 %v538_v60, %v1478_v45  ;;  %v539_v6 = vmul.f32 %v523_v1, %v1491_v58  ;;  %958 = vtanh.f32 %v579_v3  ;;  %v506_v46 = vmul.f32 0.5, %v1478_v45 }
 0x101   :  { %v552_v5 = vmul.f32 %v536_v0, %v1483_v49  ;;  %960 = vtanh.f32 %v577_v9  ;;  %v537_v16 = vmul.f32 %v521_v12, %v1503_v7  ;;  %v504_v52 = vmul.f32 0.5, %v1483_v49 }
 0x102   :  { %v570_v8 = vadd.f32 %v554_v2, %v1478_v45  ;;  %v555_v11 = vmul.f32 %v539_v6, %v1491_v58 }
 0x103   :  { %v568_v10 = vadd.f32 %v552_v5, %v1483_v49  ;;  %v553_v18 = vmul.f32 %v537_v16, %v1503_v7 }
 0x104   :  { %v586_v13 = vmul.f32 0.7978846, %v570_v8  ;;  %v571_v15 = vadd.f32 %v555_v11, %v1491_v58  ;;  %v507_v8 = vmul.f32 0.5, %v1491_v58 }
 0x105   :  { %v584_v14 = vmul.f32 0.7978846, %v568_v10  ;;  %v569_v19 = vadd.f32 %v553_v18, %v1503_v7 }
 0x106   :  { %962 = vtanh.f32 %v586_v13  ;;  %v587_v17 = vmul.f32 0.7978846, %v571_v15  ;;  %v505_v13 = vmul.f32 0.5, %v1503_v7 }
 0x107   :  { %964 = vtanh.f32 %v584_v14  ;;  %v585_v24 = vmul.f32 0.7978846, %v569_v19 }
 0x108   :  { %966 = vtanh.f32 %v587_v17  ;;  %v955_v20 = vpop.eup %954 }
 0x109   :  { %v957_v21 = vpop.eup %956  ;;  %v610_v23 = vadd.f32 1.0, %v955_v20  ;;  %968 = vtanh.f32 %v585_v24 }
 0x10a   :  { %v932_v25 = vpop.f32.mrb[4].mxu0  ;;  %v959_v26 = vpop.eup %958  ;;  %v608_v29 = vadd.f32 1.0, %v957_v21 }
 0x10b   :  { %v1516_v33 = vadd.f32 %v932_v25, %v1461_v28  ;;  %v449_v34 = vpop.f32.mrb[5].mxu0  ;;  %v626_v36 = vmul.f32 %v610_v23, %v498_v22  ;;  %v611_v37 = vadd.f32 1.0, %v959_v26  ;;  %v961_v40 = vpop.eup %960 }
 0x10c   :  { %v1519_v39 = vadd.f32 %v1461_v28, %v449_v34  ;;  %v933_v30 = vpop.f32.mrb[6].mxu0  ;;  %v624_v41 = vmul.f32 %v608_v29, %v496_v27  ;;  %v609_v48 = vadd.f32 1.0, %v961_v40 }
 0x10d   :  { %v518_v32 = vmul.f32 0.044715, %v1516_v33  ;;  %v1524_v43 = vadd.f32 %v933_v30, %v1461_v28  ;;  %v452_v35 = vpop.f32.mrb[7].mxu0  ;;  %v892_v44 = vpack.c.bf16 %v626_v36, %v626_v36  ;;  %v627_v47 = vmul.f32 %v611_v37, %v499_v31 }
 0x10e   :  { %v890_v51 = vpack.c.bf16 %v624_v41, %v624_v41  ;;  %v516_v54 = vmul.f32 0.044715, %v1519_v39  ;;  %v625_v57 = vmul.f32 %v609_v48, %v497_v42  ;;  %v1586_v37 = vadd.f32 %v1461_v28, %v452_v35 }
 0x10f   :  { %v534_v53 = vmul.f32 %v518_v32, %v1516_v33  ;;  %707 = vst.msk [vmem:[%s1651_s3 + $0x8] sm:$0xf] %vm704_vm1, %v892_v44  ;;  %v893_v56 = vpack.c.bf16 %v627_v47, %v627_v47  ;;  %v519_v59 = vmul.f32 0.044715, %v1524_v43 }
 0x110   :  { %v963_v50 = vpop.eup %962  ;;  %705 = vst.msk [vmem:[%s1651_s3] sm:$0xf] %vm704_vm1, %v890_v51  ;;  %v532_v62 = vmul.f32 %v516_v54, %v1519_v39  ;;  %v891_v2 = vpack.c.bf16 %v625_v57, %v625_v57  ;;  %v517_v47 = vmul.f32 0.044715, %v1586_v37 }
 0x111   :  { %v965_v38 = vpop.eup %964  ;;  %v618_v55 = vadd.f32 1.0, %v963_v50  ;;  %v940_v45 = vpop.f32.mrb[4].mxu1  ;;  %v550_v60 = vmul.f32 %v534_v53, %v1516_v33  ;;  %708 = vst.msk [vmem:[%s1651_s3 + $0xc] sm:$0xf] %vm704_vm1, %v893_v56  ;;  %v535_v4 = vmul.f32 %v519_v59, %v1524_v43  ;;  %v502_v56 = vmul.f32 0.5, %v1516_v33 }
 0x112   :  { %v616_v49 = vadd.f32 1.0, %v965_v38  ;;  %v1541_v61 = vadd.f32 %v940_v45, %v1461_v28  ;;  %v481_v63 = vpop.f32.mrb[5].mxu1  ;;  %v967_v0 = vpop.eup %966  ;;  %706 = vst.msk [vmem:[%s1651_s3 + $0x4] sm:$0xf] %vm704_vm1, %v891_v2  ;;  %v548_v15 = vmul.f32 %v532_v62, %v1519_v39  ;;  %v533_v50 = vmul.f32 %v517_v47, %v1586_v37 }
 0x113   :  { %v634_v1 = vmul.f32 %v618_v55, %v506_v46  ;;  %v1549_v3 = vadd.f32 %v1461_v28, %v481_v63  ;;  %v941_v5 = vpop.f32.mrb[6].mxu1  ;;  %v619_v9 = vadd.f32 1.0, %v967_v0  ;;  %v566_v10 = vadd.f32 %v550_v60, %v1516_v33  ;;  %v969_v19 = vpop.eup %968 }
 0x114   :  { %v632_v6 = vmul.f32 %v616_v49, %v504_v52  ;;  %v484_v11 = vpop.f32.mrb[7].mxu1  ;;  %v526_v14 = vmul.f32 0.044715, %v1541_v61  ;;  %v564_v21 = vadd.f32 %v548_v15, %v1519_v39  ;;  %v551_v7 = vmul.f32 %v535_v4, %v1524_v43 }
 0x115   :  { %v900_v12 = vpack.c.bf16 %v634_v1, %v634_v1  ;;  %v635_v17 = vmul.f32 %v619_v9, %v507_v8  ;;  %v582_v18 = vmul.f32 0.7978846, %v566_v10  ;;  %v524_v58 = vmul.f32 0.044715, %v1549_v3 }
 0x116   :  { %v898_v16 = vpack.c.bf16 %v632_v6, %v632_v6  ;;  %v542_v20 = vmul.f32 %v526_v14, %v1541_v61  ;;  %v1570_v22 = vadd.f32 %v941_v5, %v1461_v28  ;;  %v617_v24 = vadd.f32 1.0, %v969_v19 }
 0x117   :  { %715 = vst.msk [vmem:[%s1651_s3 + $0x28] sm:$0xf] %vm704_vm1, %v900_v12  ;;  %v901_v23 = vpack.c.bf16 %v635_v17, %v635_v17  ;;  %970 = vtanh.f32 %v582_v18  ;;  %v540_v25 = vmul.f32 %v524_v58, %v1549_v3  ;;  %v580_v27 = vmul.f32 0.7978846, %v564_v21 }
 0x118   :  { %713 = vst.msk [vmem:[%s1651_s3 + $0x20] sm:$0xf] %vm704_vm1, %v898_v16  ;;  %v558_v26 = vmul.f32 %v542_v20, %v1541_v61  ;;  %v567_v29 = vadd.f32 %v551_v7, %v1524_v43  ;;  %v633_v31 = vmul.f32 %v617_v24, %v505_v13  ;;  %v527_v36 = vmul.f32 0.044715, %v1570_v22 }
 0x119   :  { %716 = vst.msk [vmem:[%s1651_s3 + $0x2c] sm:$0xf] %vm704_vm1, %v901_v23  ;;  %v556_v34 = vmul.f32 %v540_v25, %v1549_v3  ;;  %972 = vtanh.f32 %v580_v27  ;;  %v1590_v41 = vadd.f32 %v1461_v28, %v484_v11  ;;  %v549_v53 = vmul.f32 %v533_v50, %v1586_v37 }
 0x11a   :  { %v574_v30 = vadd.f32 %v558_v26, %v1541_v61  ;;  %v583_v40 = vmul.f32 0.7978846, %v567_v29  ;;  %v899_v42 = vpack.c.bf16 %v633_v31, %v633_v31  ;;  %v543_v44 = vmul.f32 %v527_v36, %v1570_v22 }
 0x11b   :  { %v572_v32 = vadd.f32 %v556_v34, %v1549_v3  ;;  %v525_v28 = vmul.f32 0.044715, %v1590_v41  ;;  %v565_v45 = vadd.f32 %v549_v53, %v1586_v37  ;;  %v500_v63 = vmul.f32 0.5, %v1519_v39 }
 0x11c   :  { %v590_v46 = vmul.f32 0.7978846, %v574_v30  ;;  %974 = vtanh.f32 %v583_v40  ;;  %714 = vst.msk [vmem:[%s1651_s3 + $0x24] sm:$0xf] %vm704_vm1, %v899_v42  ;;  %v559_v48 = vmul.f32 %v543_v44, %v1570_v22  ;;  %v503_v6 = vmul.f32 0.5, %v1524_v43 }
 0x11d   :  { %v588_v35 = vmul.f32 0.7978846, %v572_v32  ;;  %v541_v52 = vmul.f32 %v525_v28, %v1590_v41  ;;  %v581_v62 = vmul.f32 0.7978846, %v565_v45  ;;  %v510_v10 = vmul.f32 0.5, %v1541_v61 }
 0x11e   :  { %976 = vtanh.f32 %v590_v46  ;;  %v575_v51 = vadd.f32 %v559_v48, %v1570_v22  ;;  %v508_v13 = vmul.f32 0.5, %v1549_v3  ;;  %v511_v58 = vmul.f32 0.5, %v1570_v22 }
 0x11f   :  { %978 = vtanh.f32 %v588_v35  ;;  %v557_v55 = vmul.f32 %v541_v52, %v1590_v41  ;;  %v501_v7 = vmul.f32 0.5, %v1586_v37  ;;  %v509_v22 = vmul.f32 0.5, %v1590_v41 }
 0x120   :  { %v591_v38 = vmul.f32 0.7978846, %v575_v51 }
 0x121   :  { %v971_v54 = vpop.eup %970  ;;  %v573_v59 = vadd.f32 %v557_v55, %v1590_v41 }
 0x122   :  { %v614_v57 = vadd.f32 1.0, %v971_v54  ;;  %980 = vtanh.f32 %v591_v38 }
 0x123   :  { %v973_v49 = vpop.eup %972  ;;  %v589_v1 = vmul.f32 0.7978846, %v573_v59  ;;  %982 = vtanh.f32 %v581_v62 }
 0x124   :  { %v630_v60 = vmul.f32 %v614_v57, %v502_v56  ;;  %v612_v0 = vadd.f32 1.0, %v973_v49 }
 0x125   :  { %984 = vtanh.f32 %v589_v1 }
 0x126   :  { %v975_v2 = vpop.eup %974  ;;  %v896_v4 = vpack.c.bf16 %v630_v60, %v630_v60  ;;  %v628_v5 = vmul.f32 %v612_v0, %v500_v63 }
 0x127   :  { %v615_v33 = vadd.f32 1.0, %v975_v2 }
 0x128   :  { %v977_v8 = vpop.eup %976  ;;  %711 = vst.msk [vmem:[%s1651_s3 + $0x18] sm:$0xf] %vm704_vm1, %v896_v4  ;;  %v894_v11 = vpack.c.bf16 %v628_v5, %v628_v5 }
 0x129   :  { %v979_v9 = vpop.eup %978  ;;  %v622_v39 = vadd.f32 1.0, %v977_v8  ;;  %v631_v12 = vmul.f32 %v615_v33, %v503_v6 }
 0x12a   :  { %v620_v14 = vadd.f32 1.0, %v979_v9  ;;  %709 = vst.msk [vmem:[%s1651_s3 + $0x10] sm:$0xf] %vm704_vm1, %v894_v11 }
 0x12b   :  { %v638_v15 = vmul.f32 %v622_v39, %v510_v10  ;;  %v897_v43 = vpack.c.bf16 %v631_v12, %v631_v12 }
 0x12c   :  { %v636_v16 = vmul.f32 %v620_v14, %v508_v13  ;;  %v981_v17 = vpop.eup %980 }
 0x12d   :  { %v904_v18 = vpack.c.bf16 %v638_v15, %v638_v15  ;;  %712 = vst.msk [vmem:[%s1651_s3 + $0x1c] sm:$0xf] %vm704_vm1, %v897_v43  ;;  %v623_v3 = vadd.f32 1.0, %v981_v17  ;;  %v983_v19 = vpop.eup %982 }
 0x12e   :  { %v902_v61 = vpack.c.bf16 %v636_v16, %v636_v16  ;;  %v613_v23 = vadd.f32 1.0, %v983_v19 }
 0x12f   :  { %719 = vst.msk [vmem:[%s1651_s3 + $0x38] sm:$0xf] %vm704_vm1, %v904_v18  ;;  %v639_v20 = vmul.f32 %v623_v3, %v511_v58  ;;  %v985_v21 = vpop.eup %984 }
 0x130   :  { %717 = vst.msk [vmem:[%s1651_s3 + $0x30] sm:$0xf] %vm704_vm1, %v902_v61  ;;  %v621_v25 = vadd.f32 1.0, %v985_v21  ;;  %v629_v26 = vmul.f32 %v613_v23, %v501_v7 }
 0x131   :  { %v905_v24 = vpack.c.bf16 %v639_v20, %v639_v20 }
 0x132   :  { %v637_v27 = vmul.f32 %v621_v25, %v509_v22  ;;  %v895_v29 = vpack.c.bf16 %v629_v26, %v629_v26 }
 0x133   :  { %720 = vst.msk [vmem:[%s1651_s3 + $0x3c] sm:$0xf] %vm704_vm1, %v905_v24 }
 0x134   :  { %v903_v31 = vpack.c.bf16 %v637_v27, %v637_v27  ;;  %710 = vst.msk [vmem:[%s1651_s3 + $0x14] sm:$0xf] %vm704_vm1, %v895_v29 }
 0x136   :  { %718 = vst.msk [vmem:[%s1651_s3 + $0x34] sm:$0xf] %vm704_vm1, %v903_v31 }

// kernel: _lambda_.10
= control target key start
LH: loop header
LB: loop body
LE: loop exit
PB: predicated region body
PF: predicated region fallthrough
CT: control target
= control target key end

     0   :  { %vm730_vm0 = vcmask 654336   ;;  %vm1207_vm1 = vcmask 1043456   ;;  %vm1208_vm2 = vcmask 523268   ;;  %s2288_s1 = inlined_call_operand.vmem [shape: bf16[720,192], index: 1, kind: input, shape index: {}]   ;;  %s2289_s0 = inlined_call_operand.vmem [shape: bf16[72,720], index: 0, kind: input, shape index: {}]   ;;  %s2290_s2 = inlined_call_operand.vmem [shape: f32[1,192], index: 2, kind: input, shape index: {}]   ;;  %s2291_s3 = inlined_call_operand.vmem [shape: bf16[72,192], index: 3, kind: output, shape index: {}]  }
   0x1   :  { %v1446_v0 = vld [vmem:[%s2288_s1 + $0x4] ss:$8 sps:$4 sm:$0xff]   ;;  %v1450_v2 = vld [vmem:[%s2288_s1] ss:$8 sps:$4 sm:$0xff]   ;;  %v1452_v4 = vld [vmem:[%s2288_s1 + $0x14] ss:$8 sps:$4 sm:$0xff]  }
   0x2   :  { %v1448_v1 = vld [vmem:[%s2288_s1 + $0x104] ss:$8 sps:$4 sm:$0xff]   ;;  %746 = vmatprep.subr.bf16.mxu1 %v1446_v0  ;;  %v1451_v3 = vld [vmem:[%s2288_s1 + $0x100] ss:$8 sps:$4 sm:$0xff]   ;;  %v1454_v5 = vld [vmem:[%s2288_s1 + $0x114] ss:$8 sps:$4 sm:$0xff]  }
   0x3   :  { %827 = vmatprep.subr.bf16.mxu0 %v1448_v1  ;;  %747 = vmatpush1.bf16.msra.mxu1 %v1450_v2  ;;  %v1456_v6 = vld [vmem:[%s2288_s1 + $0x10] ss:$8 sps:$4 sm:$0xff]   ;;  %v1458_v8 = vld [vmem:[%s2288_s1 + $0x24] ss:$8 sps:$4 sm:$0xff]   ;;  %v1462_v10 = vld [vmem:[%s2288_s1 + $0x20] ss:$8 sps:$4 sm:$0xff]  }
   0x4   :  { %828 = vmatpush1.bf16.msra.mxu0 %v1451_v3  ;;  %748 = vmatprep.subr.bf16.mxu1 %v1452_v4  ;;  %v1457_v7 = vld [vmem:[%s2288_s1 + $0x110] ss:$8 sps:$4 sm:$0xff]   ;;  %v1460_v9 = vld [vmem:[%s2288_s1 + $0x124] ss:$8 sps:$4 sm:$0xff]   ;;  %v1463_v11 = vld [vmem:[%s2288_s1 + $0x120] ss:$8 sps:$4 sm:$0xff]  }
   0x5   :  { %829 = vmatprep.subr.bf16.mxu0 %v1454_v5  ;;  %v1464_v12 = vld [vmem:[%s2288_s1 + $0x34] ss:$8 sps:$4 sm:$0xff]   ;;  %v1468_v14 = vld [vmem:[%s2288_s1 + $0x30] ss:$8 sps:$4 sm:$0xff]   ;;  %v1470_v16 = vld [vmem:[%s2288_s1 + $0x44] ss:$8 sps:$4 sm:$0xff]  }
   0x6   :  { %v1466_v13 = vld [vmem:[%s2288_s1 + $0x134] ss:$8 sps:$4 sm:$0xff]   ;;  %v1469_v15 = vld [vmem:[%s2288_s1 + $0x130] ss:$8 sps:$4 sm:$0xff]   ;;  %v1472_v17 = vld [vmem:[%s2288_s1 + $0x144] ss:$8 sps:$4 sm:$0xff]  }
   0x7   :  { %749 = vmatpush1.bf16.msra.mxu1 %v1456_v6  ;;  %v1474_v18 = vld [vmem:[%s2288_s1 + $0x40] ss:$8 sps:$4 sm:$0xff]   ;;  %v1476_v20 = vld [vmem:[%s2288_s1 + $0x54] ss:$8 sps:$4 sm:$0xff]   ;;  %v1480_v22 = vld [vmem:[%s2288_s1 + $0x50] ss:$8 sps:$4 sm:$0xff]  }
   0x8   :  { %830 = vmatpush1.bf16.msra.mxu0 %v1457_v7  ;;  %750 = vmatprep.subr.bf16.mxu1 %v1458_v8  ;;  %v1475_v19 = vld [vmem:[%s2288_s1 + $0x140] ss:$8 sps:$4 sm:$0xff]   ;;  %v1478_v21 = vld [vmem:[%s2288_s1 + $0x154] ss:$8 sps:$4 sm:$0xff]   ;;  %v1481_v23 = vld [vmem:[%s2288_s1 + $0x150] ss:$8 sps:$4 sm:$0xff]  }
   0x9   :  { %831 = vmatprep.subr.bf16.mxu0 %v1460_v9  ;;  %v1482_v24 = vld [vmem:[%s2288_s1 + $0x64] ss:$8 sps:$4 sm:$0xff]   ;;  %v1486_v26 = vld [vmem:[%s2288_s1 + $0x60] ss:$8 sps:$4 sm:$0xff]   ;;  %v1488_v28 = vld [vmem:[%s2288_s1 + $0x74] ss:$8 sps:$4 sm:$0xff]  }
   0xa   :  { %v1484_v25 = vld [vmem:[%s2288_s1 + $0x164] ss:$8 sps:$4 sm:$0xff]   ;;  %v1487_v27 = vld [vmem:[%s2288_s1 + $0x160] ss:$8 sps:$4 sm:$0xff]   ;;  %v1490_v29 = vld [vmem:[%s2288_s1 + $0x174] ss:$8 sps:$4 sm:$0xff]  }
   0xb   :  { %751 = vmatpush1.bf16.msra.mxu1 %v1462_v10  ;;  %v1492_v30 = vld [vmem:[%s2288_s1 + $0x70] ss:$8 sps:$4 sm:$0xff]   ;;  %v1494_v32 = vld [vmem:[%s2288_s1 + $0x84] ss:$8 sps:$4 sm:$0xff]   ;;  %v1498_v34 = vld [vmem:[%s2288_s1 + $0x80] ss:$8 sps:$4 sm:$0xff]  }
   0xc   :  { %832 = vmatpush1.bf16.msra.mxu0 %v1463_v11  ;;  %752 = vmatprep.subr.bf16.mxu1 %v1464_v12  ;;  %v1493_v31 = vld [vmem:[%s2288_s1 + $0x170] ss:$8 sps:$4 sm:$0xff]   ;;  %v1496_v33 = vld [vmem:[%s2288_s1 + $0x184] ss:$8 sps:$4 sm:$0xff]   ;;  %v1499_v35 = vld [vmem:[%s2288_s1 + $0x180] ss:$8 sps:$4 sm:$0xff]  }
   0xd   :  { %833 = vmatprep.subr.bf16.mxu0 %v1466_v13  ;;  %v1500_v36 = vld [vmem:[%s2288_s1 + $0x94] ss:$8 sps:$4 sm:$0xff]   ;;  %v1504_v38 = vld [vmem:[%s2288_s1 + $0x90] ss:$8 sps:$4 sm:$0xff]   ;;  %v1506_v40 = vld [vmem:[%s2288_s1 + $0xa4] ss:$8 sps:$4 sm:$0xff]  }
   0xe   :  { %v1502_v37 = vld [vmem:[%s2288_s1 + $0x194] ss:$8 sps:$4 sm:$0xff]   ;;  %v1505_v39 = vld [vmem:[%s2288_s1 + $0x190] ss:$8 sps:$4 sm:$0xff]   ;;  %v1508_v41 = vld [vmem:[%s2288_s1 + $0x1a4] ss:$8 sps:$4 sm:$0xff]  }
   0xf   :  { %753 = vmatpush1.bf16.msra.mxu1 %v1468_v14  ;;  %v1510_v42 = vld [vmem:[%s2288_s1 + $0xa0] ss:$8 sps:$4 sm:$0xff]   ;;  %v1512_v44 = vld [vmem:[%s2288_s1 + $0xb4] ss:$8 sps:$4 sm:$0xff]   ;;  %v1516_v46 = vld [vmem:[%s2288_s1 + $0xb0] ss:$8 sps:$4 sm:$0xff]  }
  0x10   :  { %834 = vmatpush1.bf16.msra.mxu0 %v1469_v15  ;;  %754 = vmatprep.subr.bf16.mxu1 %v1470_v16  ;;  %v1511_v43 = vld [vmem:[%s2288_s1 + $0x1a0] ss:$8 sps:$4 sm:$0xff]   ;;  %v1514_v45 = vld [vmem:[%s2288_s1 + $0x1b4] ss:$8 sps:$4 sm:$0xff]   ;;  %v1517_v47 = vld [vmem:[%s2288_s1 + $0x1b0] ss:$8 sps:$4 sm:$0xff]  }
  0x11   :  { %835 = vmatprep.subr.bf16.mxu0 %v1472_v17  ;;  %v1518_v48 = vld [vmem:[%s2288_s1 + $0xc4] ss:$8 sps:$4 sm:$0xff]   ;;  %v1522_v52 = vld [vmem:[%s2288_s1 + $0xc0] ss:$8 sps:$4 sm:$0xff]   ;;  %v1524_v54 = vld [vmem:[%s2288_s1 + $0xd4] ss:$8 sps:$4 sm:$0xff]  }
  0x12   :  { %v1544_v49 = vld [vmem:[%s2289_s0 + $0x4] ss:$24 sps:$4 sm:$0xff]   ;;  %v1523_v53 = vld [vmem:[%s2288_s1 + $0x1c0] ss:$8 sps:$4 sm:$0xff]   ;;  %v1528_v56 = vld [vmem:[%s2288_s1 + $0xd0] ss:$8 sps:$4 sm:$0xff]  }
  0x13   :  { %755 = vmatpush1.bf16.msra.mxu1 %v1474_v18  ;;  %v1520_v50 = vld [vmem:[%s2288_s1 + $0x1c4] ss:$8 sps:$4 sm:$0xff]   ;;  %778 = vmatprep.mubr.bf16.mxu1 %v1544_v49  ;;  %v1526_v55 = vld [vmem:[%s2288_s1 + $0x1d4] ss:$8 sps:$4 sm:$0xff]   ;;  %v1529_v57 = vld [vmem:[%s2288_s1 + $0x1d0] ss:$8 sps:$4 sm:$0xff]  }
  0x14   :  { %836 = vmatpush1.bf16.msra.mxu0 %v1475_v19  ;;  %756 = vmatprep.subr.bf16.mxu1 %v1476_v20  ;;  %v1547_v51 = vld [vmem:[%s2289_s0 + $0xc] ss:$24 sps:$4 sm:$0xff]   ;;  %v1534_v60 = vld [vmem:[%s2288_s1 + $0xe0] ss:$8 sps:$4 sm:$0xff]   ;;  %v1536_v62 = vld [vmem:[%s2288_s1 + $0xf4] ss:$8 sps:$4 sm:$0xff]  }
  0x15   :  { %837 = vmatprep.subr.bf16.mxu0 %v1478_v21  ;;  %859 = vmatprep.mubr.bf16.mxu0 %v1547_v51  ;;  %v1530_v58 = vld [vmem:[%s2288_s1 + $0xe4] ss:$8 sps:$4 sm:$0xff]   ;;  %v1535_v61 = vld [vmem:[%s2288_s1 + $0x1e0] ss:$8 sps:$4 sm:$0xff]   ;;  %v1538_v63 = vld [vmem:[%s2288_s1 + $0x1f4] ss:$8 sps:$4 sm:$0xff]  }
  0x16   :  { %v1532_v59 = vld [vmem:[%s2288_s1 + $0x1e4] ss:$8 sps:$4 sm:$0xff]   ;;  %v1540_v0 = vld [vmem:[%s2288_s1 + $0xf0] ss:$8 sps:$4 sm:$0xff]   ;;  %v1545_v4 = vld [vmem:[%s2289_s0 + $0x8] ss:$24 sps:$4 sm:$0xff]  }
  0x17   :  { %757 = vmatpush1.bf16.msra.mxu1 %v1480_v22  ;;  %v1541_v1 = vld [vmem:[%s2288_s1 + $0x1f0] ss:$8 sps:$4 sm:$0xff]   ;;  %v1550_v2 = vld [vmem:[%s2288_s1 + $0x204] ss:$8 sps:$4 sm:$0xff]   ;;  %v1548_v5 = vld [vmem:[%s2288_s1 + $0x200] ss:$8 sps:$4 sm:$0xff]  }
  0x18   :  { %838 = vmatpush1.bf16.msra.mxu0 %v1481_v23  ;;  %758 = vmatprep.subr.bf16.mxu1 %v1482_v24  ;;  %v1542_v3 = vld [vmem:[%s2289_s0] ss:$24 sps:$4 sm:$0xff]   ;;  %v1553_v6 = vld [vmem:[%s2288_s1 + $0x214] ss:$8 sps:$4 sm:$0xff]   ;;  %v1556_v10 = vld [vmem:[%s2288_s1 + $0x224] ss:$8 sps:$4 sm:$0xff]  }
  0x19   :  { %839 = vmatprep.subr.bf16.mxu0 %v1484_v25  ;;  %v1560_v7 = vld [vmem:[%s2289_s0 + $0x34] ss:$24 sps:$4 sm:$0xff]   ;;  %v1551_v9 = vld [vmem:[%s2288_s1 + $0x210] ss:$8 sps:$4 sm:$0xff]   ;;  %v1554_v13 = vld [vmem:[%s2288_s1 + $0x220] ss:$8 sps:$4 sm:$0xff]  }
  0x1a   :  { %v1563_v8 = vld [vmem:[%s2289_s0 + $0x3c] ss:$24 sps:$4 sm:$0xff]   ;;  %v1562_v11 = vld [vmem:[%s2289_s0 + $0x30] ss:$24 sps:$4 sm:$0xff]   ;;  %v1575_v16 = vld [vmem:[%s2289_s0 + $0x6c] ss:$24 sps:$4 sm:$0xff]  }
  0x1b   :  { %759 = vmatpush1.bf16.msra.mxu1 %v1486_v26  ;;  %v1568_v12 = vld [vmem:[%s2289_s0 + $0x38] ss:$24 sps:$4 sm:$0xff]   ;;  %v1559_v14 = vld [vmem:[%s2288_s1 + $0x234] ss:$8 sps:$4 sm:$0xff]   ;;  %v1567_v18 = vld [vmem:[%s2288_s1 + $0x244] ss:$8 sps:$4 sm:$0xff]  }
  0x1c   :  { %840 = vmatpush1.bf16.msra.mxu0 %v1487_v27  ;;  %760 = vmatprep.subr.bf16.mxu1 %v1488_v28  ;;  %v1572_v15 = vld [vmem:[%s2289_s0 + $0x64] ss:$24 sps:$4 sm:$0xff]   ;;  %v1557_v17 = vld [vmem:[%s2288_s1 + $0x230] ss:$8 sps:$4 sm:$0xff]   ;;  %v1580_v20 = vld [vmem:[%s2289_s0 + $0x68] ss:$24 sps:$4 sm:$0xff]  }
  0x1d   :  { %841 = vmatprep.subr.bf16.mxu0 %v1490_v29  ;;  %v1574_v19 = vld [vmem:[%s2289_s0 + $0x60] ss:$24 sps:$4 sm:$0xff]   ;;  %v1571_v22 = vld [vmem:[%s2288_s1 + $0x254] ss:$8 sps:$4 sm:$0xff]   ;;  %v1579_v26 = vld [vmem:[%s2288_s1 + $0x264] ss:$8 sps:$4 sm:$0xff]  }
  0x1e   :  { %v1565_v21 = vld [vmem:[%s2288_s1 + $0x240] ss:$8 sps:$4 sm:$0xff]   ;;  %v1584_v23 = vld [vmem:[%s2289_s0 + $0x94] ss:$24 sps:$4 sm:$0xff]   ;;  %v1569_v25 = vld [vmem:[%s2288_s1 + $0x250] ss:$8 sps:$4 sm:$0xff]  }
  0x1f   :  { %761 = vmatpush1.bf16.msra.mxu1 %v1492_v30  ;;  %v1587_v24 = vld [vmem:[%s2289_s0 + $0x9c] ss:$24 sps:$4 sm:$0xff]   ;;  %v1586_v27 = vld [vmem:[%s2289_s0 + $0x90] ss:$24 sps:$4 sm:$0xff]   ;;  %v39_v29 = vld [vmem:[%s2289_s0 + $0xc0] sm:$0xff] }
  0x20   :  { %842 = vmatpush1.bf16.msra.mxu0 %v1493_v31  ;;  %762 = vmatprep.subr.bf16.mxu1 %v1494_v32  ;;  %v1592_v28 = vld [vmem:[%s2289_s0 + $0x98] ss:$24 sps:$4 sm:$0xff]   ;;  %v40_v30 = vld [vmem:[%s2289_s0 + $0xc8] sm:$0xff]  ;;  %v1583_v32 = vld [vmem:[%s2288_s1 + $0x274] ss:$8 sps:$4 sm:$0xff]  }
  0x21   :  { %843 = vmatprep.subr.bf16.mxu0 %v1496_v33  ;;  %v1577_v31 = vld [vmem:[%s2288_s1 + $0x260] ss:$8 sps:$4 sm:$0xff]   ;;  %v1248_v33 = vcombine.high %v39_v29, %v39_v29  ;;  %vm2190_vm3 = vmor %vm1208_vm2, %vm1207_vm1 }
  0x22   :  { %v1606_v49 = vld [vmem:[%s2288_s1 + $0x2c0] ss:$8 sps:$4 sm:$0xff]  }
  0x23   :  { %763 = vmatpush1.bf16.msra.mxu1 %v1498_v34  ;;  %v1250_v34 = vcombine.high %v40_v30, %v40_v30  ;;  %v1609_v51 = vld [vmem:[%s2289_s0 + $0x10] ss:$24 sps:$4 sm:$0xff]  }
  0x24   :  { %844 = vmatpush1.bf16.msra.mxu0 %v1499_v35  ;;  %764 = vmatprep.subr.bf16.mxu1 %v1500_v36  ;;  %v1581_v35 = vld [vmem:[%s2288_s1 + $0x270] ss:$8 sps:$4 sm:$0xff]   ;;  %v1591_v36 = vld [vmem:[%s2288_s1 + $0x284] ss:$8 sps:$4 sm:$0xff]  }
  0x25   :  { %845 = vmatprep.subr.bf16.mxu0 %v1502_v37  ;;  %v1247_v37 = vcombine.low %v39_v29, %v39_v29 }
  0x27   :  { %765 = vmatpush1.bf16.msra.mxu1 %v1504_v38  ;;  %v1249_v38 = vcombine.low %v40_v30, %v40_v30 }
  0x28   :  { %846 = vmatpush1.bf16.msra.mxu0 %v1505_v39  ;;  %766 = vmatprep.subr.bf16.mxu1 %v1506_v40  ;;  %v1589_v39 = vld [vmem:[%s2288_s1 + $0x280] ss:$8 sps:$4 sm:$0xff]   ;;  %v1595_v40 = vld [vmem:[%s2288_s1 + $0x294] ss:$8 sps:$4 sm:$0xff]  }
  0x29   :  { %847 = vmatprep.subr.bf16.mxu0 %v1508_v41  ;;  %v1611_v41 = vld [vmem:[%s2289_s0 + $0x14] ss:$24 sps:$4 sm:$0xff]  }
  0x2b   :  { %767 = vmatpush1.bf16.msra.mxu1 %v1510_v42  ;;  %v1614_v42 = vld [vmem:[%s2289_s0 + $0xa4] ss:$24 sps:$4 sm:$0xff]  }
  0x2c   :  { %848 = vmatpush1.bf16.msra.mxu0 %v1511_v43  ;;  %768 = vmatprep.subr.bf16.mxu1 %v1512_v44  ;;  %v1593_v43 = vld [vmem:[%s2288_s1 + $0x290] ss:$8 sps:$4 sm:$0xff]   ;;  %v1600_v44 = vld [vmem:[%s2288_s1 + $0x2a4] ss:$8 sps:$4 sm:$0xff]  }
  0x2d   :  { %849 = vmatprep.subr.bf16.mxu0 %v1514_v45  ;;  %v1598_v45 = vld [vmem:[%s2288_s1 + $0x2a0] ss:$8 sps:$4 sm:$0xff]  }
  0x2f   :  { %769 = vmatpush1.bf16.msra.mxu1 %v1516_v46  ;;  %v1605_v46 = vld [vmem:[%s2288_s1 + $0x2b4] ss:$8 sps:$4 sm:$0xff]  }
  0x30   :  { %850 = vmatpush1.bf16.msra.mxu0 %v1517_v47  ;;  %770 = vmatprep.subr.bf16.mxu1 %v1518_v48  ;;  %v1603_v47 = vld [vmem:[%s2288_s1 + $0x2b0] ss:$8 sps:$4 sm:$0xff]   ;;  %v1608_v48 = vld [vmem:[%s2288_s1 + $0x2c4] ss:$8 sps:$4 sm:$0xff]  }
  0x31   :  { %851 = vmatprep.subr.bf16.mxu0 %v1520_v50  ;;  %v41_v50 = vld [vmem:[%s2289_s0 + $0xd0] sm:$0xff] }
  0x33   :  { %771 = vmatpush1.bf16.msra.mxu1 %v1522_v52  ;;  %v1612_v52 = vld [vmem:[%s2289_s0 + $0xa0] ss:$24 sps:$4 sm:$0xff]  }
  0x34   :  { %852 = vmatpush1.bf16.msra.mxu0 %v1523_v53  ;;  %772 = vmatprep.subr.bf16.mxu1 %v1524_v54  ;;  %v1615_v53 = vld [vmem:[%s2289_s0 + $0x44] ss:$24 sps:$4 sm:$0xff]   ;;  %v1252_v54 = vcombine.high %v41_v50, %v41_v50 }
  0x35   :  { %853 = vmatprep.subr.bf16.mxu0 %v1526_v55  ;;  %v1618_v55 = vld [vmem:[%s2289_s0 + $0x40] ss:$24 sps:$4 sm:$0xff]  }
  0x37   :  { %773 = vmatpush1.bf16.msra.mxu1 %v1528_v56  ;;  %v1251_v56 = vcombine.low %v41_v50, %v41_v50 }
  0x38   :  { %854 = vmatpush1.bf16.msra.mxu0 %v1529_v57  ;;  %774 = vmatprep.subr.bf16.mxu1 %v1530_v58  ;;  %v1620_v57 = vld [vmem:[%s2289_s0 + $0x74] ss:$24 sps:$4 sm:$0xff]   ;;  %v1622_v58 = vld [vmem:[%s2289_s0 + $0x70] ss:$24 sps:$4 sm:$0xff]  }
  0x39   :  { %855 = vmatprep.subr.bf16.mxu0 %v1532_v59 }
  0x3b   :  { %775 = vmatpush1.bf16.msra.mxu1 %v1534_v60 }
  0x3c   :  { %856 = vmatpush1.bf16.msra.mxu0 %v1535_v61  ;;  %776 = vmatprep.subr.bf16.mxu1 %v1536_v62 }
  0x3d   :  { %857 = vmatprep.subr.bf16.mxu0 %v1538_v63 }
  0x3f   :  { %777 = vmatpush1.bf16.msra.mxu1 %v1540_v0 }
  0x40   :  { %858 = vmatpush1.bf16.msra.mxu0 %v1541_v1  ;;  %1366 = vmatprep.subr.bf16.mxu1 %v1550_v2 }
  0x41   :  { %908 = vmatprep.subr.bf16.mxu0 %v1550_v2  ;;  %v134_v2 = vlaneseq }
  0x42   :  { %779 = vmatmul.mubr.bf16.vlgmr.msra.gmra.mrb[0].mxu1 %v1542_v3 }
  0x43   :  { %860 = vmatmul.mubr.bf16.vlgmr.msra.gmra.mrb[0].mxu0 %v1545_v4  ;;  %1379 = vmatpush1.bf16.msra.mxu1 %v1548_v5  ;;  %v135_v4 = vshrl.u32 %v134_v2, 7 }
  0x44   :  { %909 = vmatpush1.bf16.msra.mxu0 %v1548_v5  ;;  %1367 = vmatprep.subr.bf16.mxu1 %v1553_v6 }
  0x45   :  { %910 = vmatprep.subr.bf16.mxu0 %v1553_v6  ;;  %788 = vmatprep.mubr.bf16.mxu1 %v1560_v7 }
  0x46   :  { %869 = vmatprep.mubr.bf16.mxu0 %v1563_v8  ;;  %v136_v8 = vsub.s32 0, %v135_v4 }
  0x47   :  { %1380 = vmatpush1.bf16.msra.mxu1 %v1551_v9 }
  0x48   :  { %911 = vmatpush1.bf16.msra.mxu0 %v1551_v9  ;;  %1368 = vmatprep.subr.bf16.mxu1 %v1556_v10 }
  0x49   :  { %912 = vmatprep.subr.bf16.mxu0 %v1556_v10  ;;  %v132_v10 = vld [vmem:[%s2290_s2] sm:$0x3] }
  0x4a   :  { %789 = vmatmul.mubr.bf16.gmra.mrb[4].mxu1 %v1562_v11  ;;  %v140_v11 = vsub.s32 1, %v135_v4 }
  0x4b   :  { %870 = vmatmul.mubr.bf16.gmra.mrb[4].mxu0 %v1568_v12  ;;  %1381 = vmatpush1.bf16.msra.mxu1 %v1554_v13  ;;  %v2046_v12 = vrot.slane %v132_v10, %v136_v8 }
  0x4c   :  { %913 = vmatpush1.bf16.msra.mxu0 %v1554_v13  ;;  %1369 = vmatprep.subr.bf16.mxu1 %v1559_v14  ;;  %v2048_v13 = vrot.slane %v132_v10, %v140_v11 }
  0x4d   :  { %914 = vmatprep.subr.bf16.mxu0 %v1559_v14  ;;  %798 = vmatprep.mubr.bf16.mxu1 %v1572_v15 }
  0x4e   :  { %879 = vmatprep.mubr.bf16.mxu0 %v1575_v16 }
  0x4f   :  { %1382 = vmatpush1.bf16.msra.mxu1 %v1557_v17 }
  0x50   :  { %915 = vmatpush1.bf16.msra.mxu0 %v1557_v17  ;;  %1370 = vmatprep.subr.bf16.mxu1 %v1567_v18 }
  0x51   :  { %916 = vmatprep.subr.bf16.mxu0 %v1567_v18 }
  0x52   :  { %799 = vmatmul.mubr.bf16.gmra.mrb[8].mxu1 %v1574_v19 }
  0x53   :  { %880 = vmatmul.mubr.bf16.gmra.mrb[8].mxu0 %v1580_v20  ;;  %1383 = vmatpush1.bf16.msra.mxu1 %v1565_v21 }
  0x54   :  { %917 = vmatpush1.bf16.msra.mxu0 %v1565_v21  ;;  %1371 = vmatprep.subr.bf16.mxu1 %v1571_v22 }
  0x55   :  { %918 = vmatprep.subr.bf16.mxu0 %v1571_v22  ;;  %808 = vmatprep.mubr.bf16.mxu1 %v1584_v23 }
  0x56   :  { %889 = vmatprep.mubr.bf16.mxu0 %v1587_v24 }
  0x57   :  { %1384 = vmatpush1.bf16.msra.mxu1 %v1569_v25 }
  0x58   :  { %919 = vmatpush1.bf16.msra.mxu0 %v1569_v25  ;;  %1372 = vmatprep.subr.bf16.mxu1 %v1579_v26 }
  0x59   :  { %920 = vmatprep.subr.bf16.mxu0 %v1579_v26 }
  0x5a   :  { %809 = vmatmul.mubr.bf16.gmra.mrb[12].mxu1 %v1586_v27 }
  0x5b   :  { %890 = vmatmul.mubr.bf16.gmra.mrb[12].mxu0 %v1592_v28  ;;  %1385 = vmatpush1.bf16.msra.mxu1 %v1577_v31 }
  0x5c   :  { %921 = vmatpush1.bf16.msra.mxu0 %v1577_v31  ;;  %1373 = vmatprep.subr.bf16.mxu1 %v1583_v32 }
  0x5d   :  { %922 = vmatprep.subr.bf16.mxu0 %v1583_v32  ;;  %818 = vmatprep.mubr.bf16.mxu1 %v1248_v33 }
  0x5e   :  { %899 = vmatprep.mubr.bf16.mxu0 %v1250_v34 }
  0x5f   :  { %1386 = vmatpush1.bf16.msra.mxu1 %v1581_v35 }
  0x60   :  { %923 = vmatpush1.bf16.msra.mxu0 %v1581_v35  ;;  %1374 = vmatprep.subr.bf16.mxu1 %v1591_v36 }
  0x61   :  { %924 = vmatprep.subr.bf16.mxu0 %v1591_v36 }
  0x62   :  { %819 = vmatmul.mubr.bf16.gmra.mrb[16].mxu1 %v1247_v37 }
  0x63   :  { %900 = vmatmul.mubr.bf16.gmra.mrb[16].mxu0 %v1249_v38  ;;  %1387 = vmatpush1.bf16.msra.mxu1 %v1589_v39 }
  0x64   :  { %925 = vmatpush1.bf16.msra.mxu0 %v1589_v39  ;;  %1375 = vmatprep.subr.bf16.mxu1 %v1595_v40 }
  0x65   :  { %926 = vmatprep.subr.bf16.mxu0 %v1595_v40  ;;  %1343 = vmatprep.mubr.msk.bf16.mxu0 %vm730_vm0, %v1611_v41 }
  0x66   :  { %1346 = vmatprep.mubr.msk.bf16.mxu1 %vm730_vm0, %v1614_v42 }
  0x67   :  { %1388 = vmatpush1.bf16.msra.mxu1 %v1593_v43 }
  0x68   :  { %927 = vmatpush1.bf16.msra.mxu0 %v1593_v43  ;;  %1376 = vmatprep.subr.bf16.mxu1 %v1600_v44 }
  0x69   :  { %928 = vmatprep.subr.bf16.mxu0 %v1600_v44 }
  0x6b   :  { %1389 = vmatpush1.bf16.msra.mxu1 %v1598_v45 }
  0x6c   :  { %929 = vmatpush1.bf16.msra.mxu0 %v1598_v45  ;;  %1377 = vmatprep.subr.bf16.mxu1 %v1605_v46 }
  0x6d   :  { %930 = vmatprep.subr.bf16.mxu0 %v1605_v46 }
  0x6f   :  { %1390 = vmatpush1.bf16.msra.mxu1 %v1603_v47 }
  0x70   :  { %931 = vmatpush1.bf16.msra.mxu0 %v1603_v47  ;;  %1378 = vmatprep.subr.bf16.mxu1 %v1608_v48 }
  0x71   :  { %932 = vmatprep.subr.bf16.mxu0 %v1608_v48 }
  0x73   :  { %1391 = vmatpush1.bf16.msra.mxu1 %v1606_v49 }
  0x74   :  { %933 = vmatpush1.bf16.msra.mxu0 %v1606_v49 }
  0x76   :  { %971 = vmatmul.mubr.bf16.vlgmr.msra.gmra.mrb[20].mxu1 %v1612_v52 }
  0x77   :  { %941 = vmatmul.mubr.bf16.vlgmr.msra.gmra.mrb[0].mxu0 %v1609_v51  ;;  %1347 = vmatprep.mubr.msk.bf16.mxu1 %vm730_vm0, %v1252_v54 }
  0x78   :  { %1344 = vmatprep.mubr.msk.bf16.mxu0 %vm730_vm0, %v1615_v53 }
  0x7e   :  { %981 = vmatmul.mubr.bf16.gmra.mrb[24].mxu1 %v1251_v56 }
  0x7f   :  { %951 = vmatmul.mubr.bf16.gmra.mrb[4].mxu0 %v1618_v55 }
  0x80   :  { %1345 = vmatprep.mubr.msk.bf16.mxu0 %vm730_vm0, %v1620_v57 }
  0x87   :  { %961 = vmatmul.mubr.bf16.gmra.mrb[8].mxu0 %v1622_v58 }
 0x115   :  { %v780_v59 = vpop.f32.mrb[0].mxu1 }
 0x116   :  { %v782_v60 = vpop.f32.mrb[1].mxu1  ;;  %v781_v42 = vadd.f32 %v780_v59, %v2046_v12 }
 0x117   :  { %v784_v61 = vpop.f32.mrb[2].mxu1  ;;  %v783_v43 = vadd.f32 %v782_v60, %v2048_v13 }
 0x118   :  { %v786_v62 = vpop.f32.mrb[3].mxu1  ;;  %v785_v50 = vadd.f32 %v784_v61, %v2046_v12 }
 0x119   :  { %v787_v51 = vadd.f32 %v786_v62, %v2048_v13 }
 0x11d   :  { %v790_v63 = vpop.f32.mrb[4].mxu1 }
 0x11e   :  { %v792_v0 = vpop.f32.mrb[5].mxu1  ;;  %v791_v56 = vadd.f32 %v790_v63, %v2046_v12 }
 0x11f   :  { %v794_v1 = vpop.f32.mrb[6].mxu1  ;;  %v2074_v57 = vadd.f32 %v792_v0, %v2048_v13 }
 0x120   :  { %v796_v3 = vpop.f32.mrb[7].mxu1  ;;  %v2079_v60 = vadd.f32 %v794_v1, %v2046_v12 }
 0x121   :  { %v2082_v61 = vadd.f32 %v796_v3, %v2048_v13 }
 0x125   :  { %v2035_v5 = vpop.f32.mrb[8].mxu1 }
 0x126   :  { %v2037_v6 = vpop.f32.mrb[9].mxu1 }
 0x127   :  { %v2039_v7 = vpop.f32.mrb[10].mxu1 }
 0x128   :  { %v2041_v9 = vpop.f32.mrb[11].mxu1 }
 0x12d   :  { %v810_v14 = vpop.f32.mrb[12].mxu1 }
 0x12e   :  { %v891_v15 = vpop.f32.mrb[12].mxu0  ;;  %v811_v16 = vadd.f32 %v810_v14, %v2046_v12  ;;  %v812_v17 = vpop.f32.mrb[13].mxu1 }
 0x12f   :  { %v893_v18 = vpop.f32.mrb[13].mxu0  ;;  %v813_v19 = vadd.f32 %v812_v17, %v2048_v13  ;;  %v814_v20 = vpop.f32.mrb[14].mxu1 }
 0x130   :  { %v895_v21 = vpop.f32.mrb[14].mxu0  ;;  %v815_v22 = vadd.f32 %v814_v20, %v2046_v12  ;;  %v892_v23 = vadd.f32 %v891_v15, %v811_v16  ;;  %v816_v24 = vpop.f32.mrb[15].mxu1  ;;  %v2100_v16 = vadd.f32 %v2035_v5, %v2046_v12  ;;  %v2107_v20 = vadd.f32 %v2037_v6, %v2048_v13 }
 0x131   :  { %v897_v25 = vpop.f32.mrb[15].mxu0  ;;  %v817_v26 = vadd.f32 %v816_v24, %v2048_v13  ;;  %v894_v27 = vadd.f32 %v893_v18, %v813_v19  ;;  %v2114_v5 = vadd.f32 %v2039_v7, %v2046_v12  ;;  %v2125_v7 = vadd.f32 %v2041_v9, %v2048_v13 }
 0x132   :  { %v896_v28 = vadd.f32 %v895_v21, %v815_v22 }
 0x133   :  { %v898_v29 = vadd.f32 %v897_v25, %v817_v26 }
 0x135   :  { %v820_v30 = vpop.f32.mrb[16].mxu1 }
 0x136   :  { %v901_v31 = vpop.f32.mrb[16].mxu0  ;;  %v821_v32 = vadd.f32 %v820_v30, %v2046_v12  ;;  %v822_v33 = vpop.f32.mrb[17].mxu1 }
 0x137   :  { %v903_v34 = vpop.f32.mrb[17].mxu0  ;;  %v823_v35 = vadd.f32 %v822_v33, %v2048_v13  ;;  %v824_v37 = vpop.f32.mrb[18].mxu1 }
 0x138   :  { %v905_v36 = vpop.f32.mrb[18].mxu0  ;;  %v2056_v38 = vadd.f32 %v901_v31, %v821_v32  ;;  %v825_v40 = vpop.f32.mrb[19].mxu1 }
 0x139   :  { %v906_v39 = vpop.f32.mrb[19].mxu0  ;;  %v2058_v41 = vadd.f32 %v903_v34, %v823_v35 }
 0x149   :  { %v972_v45 = vpop.f32.mrb[20].mxu1 }
 0x14a   :  { %v942_v44 = vpop.f32.mrb[0].mxu0  ;;  %v2064_v47 = vadd.f32 %v972_v45, %v892_v23  ;;  %v974_v49 = vpop.f32.mrb[21].mxu1 }
 0x14b   :  { %v2062_v46 = vadd.f32 %v942_v44, %v781_v42  ;;  %v944_v48 = vpop.f32.mrb[1].mxu0  ;;  %v2070_v53 = vadd.f32 %v974_v49, %v894_v27  ;;  %v976_v55 = vpop.f32.mrb[22].mxu1 }
 0x14c   :  { %v2068_v52 = vadd.f32 %v944_v48, %v783_v43  ;;  %v946_v54 = vpop.f32.mrb[2].mxu0  ;;  %v1019_v59 = vmul.f32 0.044715, %v2064_v47  ;;  %v2090_v8 = vadd.f32 %v976_v55, %v896_v28  ;;  %v978_v11 = vpop.f32.mrb[23].mxu1 }
 0x14d   :  { %v1007_v58 = vmul.f32 0.044715, %v2062_v46  ;;  %v1020_v2 = vmul.f32 0.044715, %v2070_v53  ;;  %v2088_v0 = vadd.f32 %v946_v54, %v785_v50  ;;  %v948_v10 = vpop.f32.mrb[3].mxu0  ;;  %v2096_v15 = vadd.f32 %v978_v11, %v898_v29 }
 0x14e   :  { %v1008_v62 = vmul.f32 0.044715, %v2068_v52  ;;  %v1037_v63 = vmul.f32 %v1019_v59, %v2064_v47  ;;  %v2094_v3 = vadd.f32 %v948_v10, %v787_v51  ;;  %v1021_v23 = vmul.f32 0.044715, %v2090_v8 }
 0x14f   :  { %v1025_v4 = vmul.f32 %v2062_v46, %v1007_v58  ;;  %v1038_v14 = vmul.f32 %v1020_v2, %v2070_v53  ;;  %v1009_v19 = vmul.f32 0.044715, %v2088_v0  ;;  %v1022_v49 = vmul.f32 0.044715, %v2096_v15 }
 0x150   :  { %v1026_v1 = vmul.f32 %v2068_v52, %v1008_v62  ;;  %v1055_v18 = vmul.f32 %v1037_v63, %v2064_v47  ;;  %v1039_v32 = vmul.f32 %v1021_v23, %v2090_v8  ;;  %v1010_v33 = vmul.f32 0.044715, %v2094_v3 }
 0x151   :  { %v1043_v17 = vmul.f32 %v2062_v46, %v1025_v4  ;;  %v1056_v22 = vmul.f32 %v1038_v14, %v2070_v53  ;;  %v982_v25 = vpop.f32.mrb[24].mxu1  ;;  %v1027_v28 = vmul.f32 %v2088_v0, %v1009_v19  ;;  %v989_v54 = vmul.f32 0.5, %v2062_v46 }
 0x152   :  { %v1044_v21 = vmul.f32 %v2068_v52, %v1026_v1  ;;  %v952_v24 = vpop.f32.mrb[4].mxu0  ;;  %v1073_v27 = vadd.f32 %v1055_v18, %v2064_v47  ;;  %v984_v29 = vpop.f32.mrb[25].mxu1  ;;  %v1057_v43 = vmul.f32 %v1039_v32, %v2090_v8  ;;  %v1028_v44 = vmul.f32 %v2094_v3, %v1010_v33 }
 0x153   :  { %v1061_v26 = vadd.f32 %v2062_v46, %v1043_v17  ;;  %v954_v6 = vpop.f32.mrb[5].mxu0  ;;  %v1074_v31 = vadd.f32 %v1056_v22, %v2070_v53  ;;  %v986_v35 = vpop.f32.mrb[26].mxu1  ;;  %v1045_v37 = vmul.f32 %v2088_v0, %v1027_v28  ;;  %v2132_v50 = vadd.f32 %v952_v24, %v791_v56 }
 0x154   :  { %v1062_v30 = vadd.f32 %v2068_v52, %v1044_v21  ;;  %v956_v34 = vpop.f32.mrb[6].mxu0  ;;  %v1091_v36 = vmul.f32 0.7978846, %v1073_v27  ;;  %v987_v45 = vpop.f32.mrb[27].mxu1  ;;  %v1075_v9 = vadd.f32 %v1057_v43, %v2090_v8  ;;  %v1046_v13 = vmul.f32 %v2094_v3, %v1028_v44 }
 0x155   :  { %v1079_v12 = vmul.f32 0.7978846, %v1061_v26  ;;  %v958_v39 = vpop.f32.mrb[7].mxu0  ;;  %v1092_v42 = vmul.f32 0.7978846, %v1074_v31  ;;  %v1063_v48 = vadd.f32 %v2088_v0, %v1045_v37  ;;  %v2137_v51 = vadd.f32 %v982_v25, %v2056_v38 }
 0x156   :  { %v1080_v40 = vmul.f32 0.7978846, %v1062_v30  ;;  %v1040_v58 = vmul.f32 %v1022_v49, %v2096_v15  ;;  %v1093_v59 = vmul.f32 0.7978846, %v1075_v9  ;;  %v1064_v62 = vadd.f32 %v2094_v3, %v1046_v13 }
 0x157   :  { %1623 = vtanh.f32 %v1079_v12  ;;  %v1081_v55 = vmul.f32 0.7978846, %v1063_v48  ;;  %v1011_v56 = vmul.f32 0.044715, %v2132_v50  ;;  %v1001_v4 = vmul.f32 0.5, %v2064_v47 }
 0x158   :  { %1625 = vtanh.f32 %v1091_v36  ;;  %v1058_v38 = vmul.f32 %v1040_v58, %v2096_v15  ;;  %v1023_v63 = vmul.f32 0.044715, %v2137_v51  ;;  %v1082_v10 = vmul.f32 0.7978846, %v1064_v62 }
 0x159   :  { %1627 = vtanh.f32 %v1080_v40  ;;  %v1029_v11 = vmul.f32 %v2132_v50, %v1011_v56  ;;  %v2152_v1 = vadd.f32 %v954_v6, %v2074_v57  ;;  %v2159_v18 = vadd.f32 %v984_v29, %v2058_v41 }
 0x15a   :  { %1629 = vtanh.f32 %v1092_v42  ;;  %v2143_v2 = vpop.f32.mrb[8].mxu0  ;;  %v1076_v47 = vadd.f32 %v1058_v38, %v2096_v15  ;;  %v1041_v17 = vmul.f32 %v1023_v63, %v2137_v51  ;;  %v2162_v19 = vadd.f32 %v956_v34, %v2079_v60 }
 0x15b   :  { %1631 = vtanh.f32 %v1081_v55  ;;  %v2148_v46 = vpop.f32.mrb[9].mxu0  ;;  %v990_v22 = vmul.f32 0.5, %v2068_v52  ;;  %v1047_v57 = vmul.f32 %v2132_v50, %v1029_v11  ;;  %v1012_v23 = vmul.f32 0.044715, %v2152_v1 }
 0x15c   :  { %1633 = vtanh.f32 %v1093_v59  ;;  %v2154_v14 = vpop.f32.mrb[10].mxu0  ;;  %v1002_v24 = vmul.f32 0.5, %v2070_v53  ;;  %v1094_v25 = vmul.f32 0.7978846, %v1076_v47  ;;  %v1059_v26 = vmul.f32 %v1041_v17, %v2137_v51 }
 0x15d   :  { %v2164_v21 = vpop.f32.mrb[11].mxu0  ;;  %1635 = vtanh.f32 %v1082_v10  ;;  %v1024_v41 = vmul.f32 0.044715, %v2159_v18  ;;  %v991_v27 = vmul.f32 0.5, %v2088_v0  ;;  %v1065_v60 = vadd.f32 %v2132_v50, %v1047_v57 }
 0x15e   :  { %v1030_v28 = vmul.f32 %v2152_v1, %v1012_v23  ;;  %v1013_v52 = vmul.f32 0.044715, %v2162_v19  ;;  %1637 = vtanh.f32 %v1094_v25  ;;  %v1077_v29 = vadd.f32 %v1059_v26, %v2137_v51 }
 0x15f   :  { %v1042_v30 = vmul.f32 %v1024_v41, %v2159_v18  ;;  %v2179_v53 = vadd.f32 %v958_v39, %v2082_v61  ;;  %v1083_v33 = vmul.f32 0.7978846, %v1065_v60  ;;  %v1003_v36 = vmul.f32 0.5, %v2090_v8 }
 0x160   :  { %v1048_v0 = vmul.f32 %v2152_v1, %v1030_v28  ;;  %v1031_v34 = vmul.f32 %v2162_v19, %v1013_v52  ;;  %v1095_v37 = vmul.f32 0.7978846, %v1077_v29  ;;  %v992_v62 = vmul.f32 0.5, %v2094_v3 }
 0x161   :  { %v1624_v6 = vpop.eup %1623  ;;  %v1060_v40 = vmul.f32 %v1042_v30, %v2159_v18  ;;  %1639 = vtanh.f32 %v1083_v33  ;;  %v2205_v23 = vadd.f32 %v2143_v2, %v2100_v16  ;;  %v1004_v41 = vmul.f32 0.5, %v2096_v15 }
 0x162   :  { %v1626_v31 = vpop.eup %1625  ;;  %v1115_v32 = vadd.f32 1.0, %v1624_v6  ;;  %v1066_v61 = vadd.f32 %v2152_v1, %v1048_v0  ;;  %1641 = vtanh.f32 %v1095_v37  ;;  %v1049_v8 = vmul.f32 %v2162_v19, %v1031_v34 }
 0x163   :  { %v1628_v35 = vpop.eup %1627  ;;  %v1127_v12 = vadd.f32 1.0, %v1626_v31  ;;  %v1078_v49 = vadd.f32 %v1060_v40, %v2159_v18  ;;  %v2223_v16 = vadd.f32 %v2164_v21, %v2125_v7  ;;  %v1015_v28 = vmul.f32 0.044715, %v2205_v23 }
 0x164   :  { %v1630_v42 = vpop.eup %1629  ;;  %v1133_v43 = vmul.f32 %v1115_v32, %v989_v54  ;;  %v1116_v44 = vadd.f32 1.0, %v1628_v35  ;;  %v1084_v58 = vmul.f32 0.7978846, %v1066_v61  ;;  %v1067_v11 = vadd.f32 %v2162_v19, %v1049_v8 }
 0x165   :  { %v1632_v39 = vpop.eup %1631  ;;  %v1145_v45 = vmul.f32 %v1127_v12, %v1001_v4  ;;  %v1128_v48 = vadd.f32 1.0, %v1630_v42  ;;  %v1096_v56 = vmul.f32 0.7978846, %v1078_v49  ;;  %v1014_v4 = vmul.f32 0.044715, %v2179_v53 }
 0x166   :  { %v1634_v9 = vpop.eup %1633  ;;  %v1134_v13 = vmul.f32 %v1116_v44, %v990_v22  ;;  %v1117_v55 = vadd.f32 1.0, %v1632_v39  ;;  %1643 = vtanh.f32 %v1084_v58  ;;  %v1085_v3 = vmul.f32 0.7978846, %v1067_v11 }
 0x167   :  { %v1146_v59 = vmul.f32 %v1128_v48, %v1002_v24  ;;  %v1636_v38 = vpop.eup %1635  ;;  %v1129_v10 = vadd.f32 1.0, %v1634_v9  ;;  %1645 = vtanh.f32 %v1096_v56  ;;  %v1032_v57 = vmul.f32 %v2179_v53, %v1014_v4 }
 0x168   :  { %v1357_v63 = vpack.c.bf16 %v1134_v13, %v1133_v43  ;;  %v1135_v17 = vmul.f32 %v1117_v55, %v991_v27  ;;  %v1118_v22 = vadd.f32 1.0, %v1636_v38  ;;  %v2209_v24 = vadd.f32 %v2148_v46, %v2107_v20  ;;  %v1638_v25 = vpop.eup %1637 }
 0x169   :  { %v1363_v47 = vpack.c.bf16 %v1146_v59, %v1145_v45  ;;  %v2219_v27 = vadd.f32 %v2154_v14, %v2114_v5  ;;  %v1147_v20 = vmul.f32 %v1129_v10, %v1003_v36  ;;  %v1130_v2 = vadd.f32 1.0, %v1638_v25 }
 0x16a   :  { %1210 = vst.msk [vmem:[%s2291_s3] sm:$0xff] %vm2190_vm3, %v1357_v63  ;;  %v1136_v26 = vmul.f32 %v1118_v22, %v992_v62  ;;  %1647 = vtanh.f32 %v1085_v3  ;;  %v1050_v46 = vmul.f32 %v2179_v53, %v1032_v57  ;;  %v1016_v52 = vmul.f32 0.044715, %v2209_v24 }
 0x16b   :  { %1216 = vst.msk [vmem:[%s2291_s3 + $0x30] sm:$0xff] %vm2190_vm3, %v1363_v47  ;;  %v1640_v6 = vpop.eup %1639  ;;  %v1148_v15 = vmul.f32 %v1130_v2, %v1004_v41  ;;  %v1017_v5 = vmul.f32 0.044715, %v2219_v27  ;;  %v993_v7 = vmul.f32 0.5, %v2132_v50  ;;  %v1033_v30 = vmul.f32 %v2205_v23, %v1015_v28 }
 0x16c   :  { %v1358_v60 = vpack.c.bf16 %v1136_v26, %v1135_v17  ;;  %v1068_v29 = vadd.f32 %v2179_v53, %v1050_v46  ;;  %v1642_v14 = vpop.eup %1641  ;;  %v1119_v21 = vadd.f32 1.0, %v1640_v6  ;;  %v1034_v31 = vmul.f32 %v2209_v24, %v1016_v52 }
 0x16d   :  { %v1364_v32 = vpack.c.bf16 %v1148_v15, %v1147_v20  ;;  %v1131_v33 = vadd.f32 1.0, %v1642_v14  ;;  %v1035_v34 = vmul.f32 %v2219_v27, %v1017_v5  ;;  %v1005_v35 = vmul.f32 0.5, %v2137_v51 }
 0x16e   :  { %1211 = vst.msk [vmem:[%s2291_s3 + $0x8] sm:$0xff] %vm2190_vm3, %v1358_v60  ;;  %v1086_v0 = vmul.f32 0.7978846, %v1068_v29  ;;  %v1051_v12 = vmul.f32 %v2205_v23, %v1033_v30  ;;  %v1052_v36 = vmul.f32 %v2209_v24, %v1034_v31  ;;  %v1018_v37 = vmul.f32 0.044715, %v2223_v16 }
 0x16f   :  { %1217 = vst.msk [vmem:[%s2291_s3 + $0x38] sm:$0xff] %vm2190_vm3, %v1364_v32  ;;  %v1137_v50 = vmul.f32 %v1119_v21, %v993_v7  ;;  %v994_v42 = vmul.f32 0.5, %v2152_v1  ;;  %v1053_v43 = vmul.f32 %v2219_v27, %v1035_v34  ;;  %v1149_v48 = vmul.f32 %v1131_v33, %v1005_v35 }
 0x170   :  { %v1644_v40 = vpop.eup %1643  ;;  %1649 = vtanh.f32 %v1086_v0  ;;  %v1069_v61 = vadd.f32 %v2205_v23, %v1051_v12  ;;  %v1070_v39 = vadd.f32 %v2209_v24, %v1052_v36  ;;  %v1036_v45 = vmul.f32 %v2223_v16, %v1018_v37 }
 0x171   :  { %v1646_v51 = vpop.eup %1645  ;;  %v1120_v44 = vadd.f32 1.0, %v1644_v40  ;;  %v1006_v49 = vmul.f32 0.5, %v2159_v18  ;;  %v1071_v13 = vadd.f32 %v2219_v27, %v1053_v43  ;;  %v995_v11 = vmul.f32 0.5, %v2162_v19 }
 0x172   :  { %v1132_v9 = vadd.f32 1.0, %v1646_v51  ;;  %v1087_v58 = vmul.f32 0.7978846, %v1069_v61  ;;  %v1088_v1 = vmul.f32 0.7978846, %v1070_v39  ;;  %v1054_v8 = vmul.f32 %v2223_v16, %v1036_v45 }
 0x173   :  { %v1138_v55 = vmul.f32 %v1120_v44, %v994_v42  ;;  %v1089_v56 = vmul.f32 0.7978846, %v1071_v13  ;;  %v996_v22 = vmul.f32 0.5, %v2179_v53  ;;  %v997_v20 = vmul.f32 0.5, %v2205_v23 }
 0x174   :  { %v1648_v59 = vpop.eup %1647  ;;  %v1150_v62 = vmul.f32 %v1132_v9, %v1006_v49  ;;  %1651 = vtanh.f32 %v1087_v58  ;;  %v1072_v38 = vadd.f32 %v2223_v16, %v1054_v8  ;;  %v998_v19 = vmul.f32 0.5, %v2209_v24 }
 0x175   :  { %v1359_v4 = vpack.c.bf16 %v1138_v55, %v1137_v50  ;;  %1653 = vtanh.f32 %v1088_v1  ;;  %v1121_v18 = vadd.f32 1.0, %v1648_v59  ;;  %v999_v53 = vmul.f32 0.5, %v2219_v27 }
 0x176   :  { %v1365_v63 = vpack.c.bf16 %v1150_v62, %v1149_v48  ;;  %1655 = vtanh.f32 %v1089_v56  ;;  %v1090_v10 = vmul.f32 0.7978846, %v1072_v38  ;;  %v1000_v23 = vmul.f32 0.5, %v2223_v16 }
 0x177   :  { %1212 = vst.msk [vmem:[%s2291_s3 + $0x10] sm:$0xff] %vm2190_vm3, %v1359_v4  ;;  %v1139_v17 = vmul.f32 %v1121_v18, %v995_v11 }
 0x178   :  { %1218 = vst.msk [vmem:[%s2291_s3 + $0x40] sm:$0xff] %vm2190_vm3, %v1365_v63  ;;  %1657 = vtanh.f32 %v1090_v10 }
 0x17a   :  { %v1650_v47 = vpop.eup %1649 }
 0x17b   :  { %v1122_v3 = vadd.f32 1.0, %v1650_v47 }
 0x17d   :  { %v1140_v57 = vmul.f32 %v1122_v3, %v996_v22 }
 0x17e   :  { %v1652_v25 = vpop.eup %1651 }
 0x17f   :  { %v1360_v26 = vpack.c.bf16 %v1140_v57, %v1139_v17  ;;  %v1654_v41 = vpop.eup %1653  ;;  %v1123_v2 = vadd.f32 1.0, %v1652_v25 }
 0x180   :  { %v1656_v46 = vpop.eup %1655  ;;  %v1124_v60 = vadd.f32 1.0, %v1654_v41 }
 0x181   :  { %1213 = vst.msk [vmem:[%s2291_s3 + $0x18] sm:$0xff] %vm2190_vm3, %v1360_v26  ;;  %v1141_v28 = vmul.f32 %v1123_v2, %v997_v20  ;;  %v1125_v52 = vadd.f32 1.0, %v1656_v46 }
 0x182   :  { %v1658_v6 = vpop.eup %1657  ;;  %v1142_v15 = vmul.f32 %v1124_v60, %v998_v19 }
 0x183   :  { %v1143_v29 = vmul.f32 %v1125_v52, %v999_v53  ;;  %v1126_v5 = vadd.f32 1.0, %v1658_v6 }
 0x184   :  { %v1361_v14 = vpack.c.bf16 %v1142_v15, %v1141_v28 }
 0x185   :  { %v1144_v7 = vmul.f32 %v1126_v5, %v1000_v23 }
 0x186   :  { %1214 = vst.msk [vmem:[%s2291_s3 + $0x20] sm:$0xff] %vm2190_vm3, %v1361_v14 }
 0x187   :  { %v1362_v24 = vpack.c.bf16 %v1144_v7, %v1143_v29 }
 0x189   :  { %1215 = vst.msk [vmem:[%s2291_s3 + $0x28] sm:$0xff] %vm2190_vm3, %v1362_v24 }

// kernel: _lambda_.11
= control target key start
LH: loop header
LB: loop body
LE: loop exit
PB: predicated region body
PF: predicated region fallthrough
CT: control target
= control target key end

     0   :  { %v2614_v50 = vmov 1966171168   ;;  %v173_v52 = vlaneseq  ;;  %vm433_vm0 = vcmask 523264   ;;  %s3547_s0 = inlined_call_operand.vmem [shape: bf16[36,2,192], index: 0, kind: input, shape index: {}]   ;;  %s3548_s1 = inlined_call_operand.vmem [shape: bf16[768,400], index: 1, kind: input, shape index: {}]   ;;  %s3549_s2 = inlined_call_operand.vmem [shape: f32[1,400], index: 2, kind: input, shape index: {}]   ;;  %s3550_s3 = inlined_call_operand.vmem [shape: f32[400,128], index: 3, kind: input, shape index: {}]   ;;  %s3551_s4 = inlined_call_operand.vmem [shape: f32[1,128], index: 4, kind: input, shape index: {}]   ;;  %s3552_s5 = inlined_call_operand.hbm [shape: f32[2,128], index: 5, kind: output, shape index: {}]  }
   0x1   :  { %v2302_v0 = vld [vmem:[%s3548_s1 + $0x184] ss:$16 sps:$4 sm:$0xff]   ;;  %v2304_v1 = vld [vmem:[%s3548_s1 + $0x18c] ss:$16 sps:$4 sm:$0xff]   ;;  %v2306_v2 = vld [vmem:[%s3548_s1 + $0x180] ss:$16 sps:$4 sm:$0xff]   ;;  %v171_v51 = vunpack.c.l.s4 %v2614_v50 }
   0x2   :  { %437 = vmatprep.subr.bf16.mxu0 %v2302_v0  ;;  %v2307_v3 = vld [vmem:[%s3548_s1 + $0x188] ss:$16 sps:$4 sm:$0xff]   ;;  %478 = vmatprep.subr.bf16.mxu1 %v2304_v1  ;;  %v2308_v4 = vld [vmem:[%s3548_s1 + $0x1a4] ss:$16 sps:$4 sm:$0xff]   ;;  %v2310_v5 = vld [vmem:[%s3548_s1 + $0x1ac] ss:$16 sps:$4 sm:$0xff]  }
   0x3   :  { %438 = vmatpush1.bf16.msra.mxu0 %v2306_v2  ;;  %479 = vmatpush1.bf16.msra.mxu1 %v2307_v3  ;;  %v2312_v6 = vld [vmem:[%s3548_s1 + $0x1a0] ss:$16 sps:$4 sm:$0xff]   ;;  %v2313_v7 = vld [vmem:[%s3548_s1 + $0x1a8] ss:$16 sps:$4 sm:$0xff]   ;;  %v2314_v8 = vld [vmem:[%s3548_s1 + $0x1c4] ss:$16 sps:$4 sm:$0xff]   ;;  %v172_v61 = vunpack.c.0.s8 %v171_v51 }
   0x4   :  { %439 = vmatprep.subr.bf16.mxu0 %v2308_v4  ;;  %480 = vmatprep.subr.bf16.mxu1 %v2310_v5  ;;  %v2316_v9 = vld [vmem:[%s3548_s1 + $0x1cc] ss:$16 sps:$4 sm:$0xff]   ;;  %v2318_v10 = vld [vmem:[%s3548_s1 + $0x1c0] ss:$16 sps:$4 sm:$0xff]   ;;  %v2319_v11 = vld [vmem:[%s3548_s1 + $0x1c8] ss:$16 sps:$4 sm:$0xff]  }
   0x5   :  { %v2320_v12 = vld [vmem:[%s3548_s1 + $0x1e4] ss:$16 sps:$4 sm:$0xff]   ;;  %v2322_v13 = vld [vmem:[%s3548_s1 + $0x1ec] ss:$16 sps:$4 sm:$0xff]   ;;  %v2324_v14 = vld [vmem:[%s3548_s1 + $0x1e0] ss:$16 sps:$4 sm:$0xff]  }
   0x6   :  { %v2325_v15 = vld [vmem:[%s3548_s1 + $0x1e8] ss:$16 sps:$4 sm:$0xff]   ;;  %v2326_v16 = vld [vmem:[%s3548_s1 + $0x204] ss:$16 sps:$4 sm:$0xff]   ;;  %v2328_v17 = vld [vmem:[%s3548_s1 + $0x20c] ss:$16 sps:$4 sm:$0xff]  }
   0x7   :  { %440 = vmatpush1.bf16.msra.mxu0 %v2312_v6  ;;  %481 = vmatpush1.bf16.msra.mxu1 %v2313_v7  ;;  %v2330_v18 = vld [vmem:[%s3548_s1 + $0x200] ss:$16 sps:$4 sm:$0xff]   ;;  %v2331_v19 = vld [vmem:[%s3548_s1 + $0x208] ss:$16 sps:$4 sm:$0xff]   ;;  %v2332_v20 = vld [vmem:[%s3548_s1 + $0x224] ss:$16 sps:$4 sm:$0xff]  }
   0x8   :  { %441 = vmatprep.subr.bf16.mxu0 %v2314_v8  ;;  %482 = vmatprep.subr.bf16.mxu1 %v2316_v9  ;;  %v2334_v21 = vld [vmem:[%s3548_s1 + $0x22c] ss:$16 sps:$4 sm:$0xff]   ;;  %v2336_v22 = vld [vmem:[%s3548_s1 + $0x220] ss:$16 sps:$4 sm:$0xff]   ;;  %v2337_v23 = vld [vmem:[%s3548_s1 + $0x228] ss:$16 sps:$4 sm:$0xff]  }
   0x9   :  { %v2338_v24 = vld [vmem:[%s3548_s1 + $0x244] ss:$16 sps:$4 sm:$0xff]   ;;  %v2340_v25 = vld [vmem:[%s3548_s1 + $0x24c] ss:$16 sps:$4 sm:$0xff]   ;;  %v2342_v26 = vld [vmem:[%s3548_s1 + $0x240] ss:$16 sps:$4 sm:$0xff]  }
   0xa   :  { %v2343_v27 = vld [vmem:[%s3548_s1 + $0x248] ss:$16 sps:$4 sm:$0xff]   ;;  %v2344_v28 = vld [vmem:[%s3548_s1 + $0x264] ss:$16 sps:$4 sm:$0xff]   ;;  %v2346_v29 = vld [vmem:[%s3548_s1 + $0x26c] ss:$16 sps:$4 sm:$0xff]  }
   0xb   :  { %442 = vmatpush1.bf16.msra.mxu0 %v2318_v10  ;;  %483 = vmatpush1.bf16.msra.mxu1 %v2319_v11  ;;  %v2348_v30 = vld [vmem:[%s3548_s1 + $0x260] ss:$16 sps:$4 sm:$0xff]   ;;  %v2349_v31 = vld [vmem:[%s3548_s1 + $0x268] ss:$16 sps:$4 sm:$0xff]   ;;  %v2350_v32 = vld [vmem:[%s3548_s1 + $0x284] ss:$16 sps:$4 sm:$0xff]  }
   0xc   :  { %443 = vmatprep.subr.bf16.mxu0 %v2320_v12  ;;  %484 = vmatprep.subr.bf16.mxu1 %v2322_v13  ;;  %v2352_v33 = vld [vmem:[%s3548_s1 + $0x28c] ss:$16 sps:$4 sm:$0xff]   ;;  %v2354_v34 = vld [vmem:[%s3548_s1 + $0x280] ss:$16 sps:$4 sm:$0xff]   ;;  %v2355_v35 = vld [vmem:[%s3548_s1 + $0x288] ss:$16 sps:$4 sm:$0xff]  }
   0xd   :  { %v1976_v36 = vld [vmem:[%s3547_s0 + $0x12] sm:$0x3]  ;;  %v1977_v37 = vld [vmem:[%s3547_s0 + $0x14] sm:$0x3]  ;;  %v1978_v38 = vld [vmem:[%s3547_s0 + $0x16] sm:$0x3] }
   0xe   :  { %v2356_v39 = vld [vmem:[%s3548_s1 + $0x2a4] ss:$16 sps:$4 sm:$0xff]   ;;  %v2358_v40 = vld [vmem:[%s3548_s1 + $0x2ac] ss:$16 sps:$4 sm:$0xff]   ;;  %v99_v41 = vmax.bf16 %v1977_v37, %v1976_v36  ;;  %v2360_v42 = vld [vmem:[%s3548_s1 + $0x2a0] ss:$16 sps:$4 sm:$0xff]  }
   0xf   :  { %444 = vmatpush1.bf16.msra.mxu0 %v2324_v14  ;;  %485 = vmatpush1.bf16.msra.mxu1 %v2325_v15  ;;  %v1979_v43 = vld [vmem:[%s3547_s0 + $0x18] sm:$0x3]  ;;  %v1980_v46 = vld [vmem:[%s3547_s0 + $0x1a] sm:$0x3]  ;;  %v2362_v47 = vld [vmem:[%s3548_s1 + $0x2c4] ss:$16 sps:$4 sm:$0xff]  }
  0x10   :  { %445 = vmatprep.subr.bf16.mxu0 %v2326_v16  ;;  %486 = vmatprep.subr.bf16.mxu1 %v2328_v17  ;;  %v2361_v44 = vld [vmem:[%s3548_s1 + $0x2a8] ss:$16 sps:$4 sm:$0xff]   ;;  %v102_v45 = vmax.bf16 %v1978_v38, %v99_v41  ;;  %v2364_v48 = vld [vmem:[%s3548_s1 + $0x2cc] ss:$16 sps:$4 sm:$0xff]   ;;  %v2366_v53 = vld [vmem:[%s3548_s1 + $0x2c0] ss:$16 sps:$4 sm:$0xff]  }
  0x11   :  { %v1981_v54 = vld [vmem:[%s3547_s0 + $0x1c] sm:$0x3]  ;;  %v2367_v55 = vld [vmem:[%s3548_s1 + $0x2c8] ss:$16 sps:$4 sm:$0xff]   ;;  %v1982_v57 = vld [vmem:[%s3547_s0 + $0x1e] sm:$0x3] }
  0x12   :  { %v105_v49 = vmax.bf16 %v1979_v43, %v102_v45  ;;  %v2368_v58 = vld [vmem:[%s3548_s1 + $0x2e4] ss:$16 sps:$4 sm:$0xff]   ;;  %v2370_v59 = vld [vmem:[%s3548_s1 + $0x2ec] ss:$16 sps:$4 sm:$0xff]   ;;  %v2806_v62 = vshrl.u32 %v173_v52, 7 }
  0x13   :  { %446 = vmatpush1.bf16.msra.mxu0 %v2330_v18  ;;  %487 = vmatpush1.bf16.msra.mxu1 %v2331_v19  ;;  %v2372_v63 = vld [vmem:[%s3548_s1 + $0x2e0] ss:$16 sps:$4 sm:$0xff]   ;;  %v2373_v1 = vld [vmem:[%s3548_s1 + $0x2e8] ss:$16 sps:$4 sm:$0xff]   ;;  %v2376_v6 = vld [vmem:[%s3548_s1 + $0x4] ss:$16 sps:$4 sm:$0xff]  }
  0x14   :  { %447 = vmatprep.subr.bf16.mxu0 %v2332_v20  ;;  %488 = vmatprep.subr.bf16.mxu1 %v2334_v21  ;;  %v108_v56 = vmax.bf16 %v1980_v46, %v105_v49  ;;  %v1983_v0 = vld [vmem:[%s3547_s0 + $0x20] sm:$0x3]  ;;  %v1984_v3 = vld [vmem:[%s3547_s0 + $0x22] sm:$0x3]  ;;  %v2821_v5 = vsub.s32 %v172_v61, %v2806_v62  ;;  %v2379_v7 = vld [vmem:[%s3548_s1 + $0xc] ss:$16 sps:$4 sm:$0xff]  }
  0x15   :  { %v2374_v13 = vld [vmem:[%s3548_s1] ss:$16 sps:$4 sm:$0xff]   ;;  %v2377_v14 = vld [vmem:[%s3548_s1 + $0x8] ss:$16 sps:$4 sm:$0xff]   ;;  %v2382_v15 = vld [vmem:[%s3548_s1 + $0x24] ss:$16 sps:$4 sm:$0xff]  }
  0x16   :  { %v111_v60 = vmax.bf16 %v1981_v54, %v108_v56  ;;  %v2385_v16 = vld [vmem:[%s3548_s1 + $0x2c] ss:$16 sps:$4 sm:$0xff]   ;;  %v2380_v17 = vld [vmem:[%s3548_s1 + $0x20] ss:$16 sps:$4 sm:$0xff]   ;;  %v2383_v18 = vld [vmem:[%s3548_s1 + $0x28] ss:$16 sps:$4 sm:$0xff]  }
  0x17   :  { %448 = vmatpush1.bf16.msra.mxu0 %v2336_v22  ;;  %489 = vmatpush1.bf16.msra.mxu1 %v2337_v23  ;;  %v2388_v19 = vld [vmem:[%s3548_s1 + $0x44] ss:$16 sps:$4 sm:$0xff]   ;;  %v2391_v20 = vld [vmem:[%s3548_s1 + $0x4c] ss:$16 sps:$4 sm:$0xff]   ;;  %v2386_v21 = vld [vmem:[%s3548_s1 + $0x40] ss:$16 sps:$4 sm:$0xff]  }
  0x18   :  { %449 = vmatprep.subr.bf16.mxu0 %v2338_v24  ;;  %490 = vmatprep.subr.bf16.mxu1 %v2340_v25  ;;  %v114_v2 = vmax.bf16 %v1982_v57, %v111_v60  ;;  %v2389_v22 = vld [vmem:[%s3548_s1 + $0x48] ss:$16 sps:$4 sm:$0xff]   ;;  %v2394_v23 = vld [vmem:[%s3548_s1 + $0x64] ss:$16 sps:$4 sm:$0xff]   ;;  %v2397_v24 = vld [vmem:[%s3548_s1 + $0x6c] ss:$16 sps:$4 sm:$0xff]  }
  0x19   :  { %v2392_v25 = vld [vmem:[%s3548_s1 + $0x60] ss:$16 sps:$4 sm:$0xff]   ;;  %v1970_v36 = vld [vmem:[%s3547_s0 + $0x6] sm:$0x3]  ;;  %v2409_v37 = vld [vmem:[%s3548_s1 + $0xac] ss:$16 sps:$4 sm:$0xff]  }
  0x1a   :  { %v117_v4 = vmax.bf16 %v1983_v0, %v114_v2  ;;  %v2407_v41 = vld [vmem:[%s3548_s1 + $0xa8] ss:$16 sps:$4 sm:$0xff]   ;;  %v2412_v43 = vld [vmem:[%s3548_s1 + $0xc4] ss:$16 sps:$4 sm:$0xff]   ;;  %v2415_v45 = vld [vmem:[%s3548_s1 + $0xcc] ss:$16 sps:$4 sm:$0xff]  }
  0x1b   :  { %450 = vmatpush1.bf16.msra.mxu0 %v2342_v26  ;;  %491 = vmatpush1.bf16.msra.mxu1 %v2343_v27  ;;  %v2395_v26 = vld [vmem:[%s3548_s1 + $0x68] ss:$16 sps:$4 sm:$0xff]   ;;  %v2400_v27 = vld [vmem:[%s3548_s1 + $0x84] ss:$16 sps:$4 sm:$0xff]   ;;  %v1974_v52 = vld [vmem:[%s3547_s0 + $0xe] sm:$0x3] }
  0x1c   :  { %451 = vmatprep.subr.bf16.mxu0 %v2344_v28  ;;  %492 = vmatprep.subr.bf16.mxu1 %v2346_v29  ;;  %v120_v8 = vmax.bf16 %v1984_v3, %v117_v4  ;;  %v2403_v28 = vld [vmem:[%s3548_s1 + $0x8c] ss:$16 sps:$4 sm:$0xff]   ;;  %v22_v29 = vld [vmem:[%s3547_s0] sm:$0x3]  ;;  %v2413_v49 = vld [vmem:[%s3548_s1 + $0xc8] ss:$16 sps:$4 sm:$0xff]  }
  0x1d   :  { %v2418_v51 = vld [vmem:[%s3548_s1 + $0xe4] ss:$16 sps:$4 sm:$0xff]   ;;  %v2416_v56 = vld [vmem:[%s3548_s1 + $0xe0] ss:$16 sps:$4 sm:$0xff]   ;;  %v2427_v60 = vld [vmem:[%s3548_s1 + $0x10c] ss:$16 sps:$4 sm:$0xff]  }
  0x1e   :  { %v176_v9 = vrot.slane %v120_v8, %v2821_v5  ;;  %v2430_v2 = vld [vmem:[%s3548_s1 + $0x124] ss:$16 sps:$4 sm:$0xff]   ;;  %v2433_v3 = vld [vmem:[%s3548_s1 + $0x12c] ss:$16 sps:$4 sm:$0xff]   ;;  %v2431_v8 = vld [vmem:[%s3548_s1 + $0x128] ss:$16 sps:$4 sm:$0xff]  }
  0x1f   :  { %452 = vmatpush1.bf16.msra.mxu0 %v2348_v30  ;;  %493 = vmatpush1.bf16.msra.mxu1 %v2349_v31  ;;  %v1968_v30 = vld [vmem:[%s3547_s0 + $0x2] sm:$0x3]  ;;  %v1969_v31 = vld [vmem:[%s3547_s0 + $0x4] sm:$0x3] }
  0x20   :  { %453 = vmatprep.subr.bf16.mxu0 %v2350_v32  ;;  %494 = vmatprep.subr.bf16.mxu1 %v2352_v33  ;;  %v177_v10 = vcombine.high %v176_v9, %v176_v9  ;;  %v184_v11 = vrot.slane %v176_v9, %v2821_v5  ;;  %v2398_v32 = vld [vmem:[%s3548_s1 + $0x80] ss:$16 sps:$4 sm:$0xff]   ;;  %v25_v33 = vmax.bf16 %v1968_v30, %v22_v29  ;;  %v2436_v9 = vld [vmem:[%s3548_s1 + $0x144] ss:$16 sps:$4 sm:$0xff]   ;;  %v2455_v29 = vld [vmem:[%s3548_s1 + $0x328] ss:$16 sps:$4 sm:$0xff]  }
  0x21   :  { %v2460_v30 = vld [vmem:[%s3548_s1 + $0x344] ss:$16 sps:$4 sm:$0xff]  }
  0x22   :  { %v191_v12 = vrot.slane %v177_v10, %v2821_v5  ;;  %v28_v38 = vmax.bf16 %v1969_v31, %v25_v33  ;;  %v2439_v10 = vld [vmem:[%s3548_s1 + $0x14c] ss:$16 sps:$4 sm:$0xff]   ;;  %v2088_v31 = vld [vmem:[%s3547_s0 + $0x2a] sm:$0x3] }
  0x23   :  { %454 = vmatpush1.bf16.msra.mxu0 %v2354_v34  ;;  %495 = vmatpush1.bf16.msra.mxu1 %v2355_v35  ;;  %v2401_v34 = vld [vmem:[%s3548_s1 + $0x88] ss:$16 sps:$4 sm:$0xff]   ;;  %v2406_v35 = vld [vmem:[%s3548_s1 + $0xa4] ss:$16 sps:$4 sm:$0xff]  }
  0x24   :  { %455 = vmatprep.subr.bf16.mxu0 %v2356_v39  ;;  %496 = vmatprep.subr.bf16.mxu1 %v2358_v40  ;;  %v1971_v39 = vld [vmem:[%s3547_s0 + $0x8] sm:$0x3]  ;;  %v2404_v40 = vld [vmem:[%s3548_s1 + $0xa0] ss:$16 sps:$4 sm:$0xff]  }
  0x25   :  { %2033 = vmatprep.mubr.msk.bf16.mxu0 %vm433_vm0, %v191_v12  ;;  %2034 = vmatprep.mubr.msk.bf16.mxu1 %vm433_vm0, %v191_v12  ;;  %v2437_v12 = vld [vmem:[%s3548_s1 + $0x148] ss:$16 sps:$4 sm:$0xff]  }
  0x27   :  { %456 = vmatpush1.bf16.msra.mxu0 %v2360_v42  ;;  %497 = vmatpush1.bf16.msra.mxu1 %v2361_v44  ;;  %v31_v42 = vmax.bf16 %v1970_v36, %v28_v38  ;;  %v1972_v44 = vld [vmem:[%s3547_s0 + $0xa] sm:$0x3]  ;;  %v2466_v38 = vld [vmem:[%s3548_s1 + $0x364] ss:$16 sps:$4 sm:$0xff]  }
  0x28   :  { %457 = vmatprep.subr.bf16.mxu0 %v2362_v47  ;;  %498 = vmatprep.subr.bf16.mxu1 %v2364_v48  ;;  %v1973_v47 = vld [vmem:[%s3547_s0 + $0xc] sm:$0x3]  ;;  %v2410_v48 = vld [vmem:[%s3548_s1 + $0xc0] ss:$16 sps:$4 sm:$0xff]   ;;  %v2461_v36 = vld [vmem:[%s3548_s1 + $0x348] ss:$16 sps:$4 sm:$0xff]  }
  0x29   :  { %v34_v46 = vmax.bf16 %v1971_v39, %v31_v42  ;;  %v2090_v39 = vld [vmem:[%s3547_s0 + $0x2e] sm:$0x3]  ;;  %v2091_v42 = vld [vmem:[%s3547_s0 + $0x30] sm:$0x3] }
  0x2b   :  { %458 = vmatpush1.bf16.msra.mxu0 %v2366_v53  ;;  %499 = vmatpush1.bf16.msra.mxu1 %v2367_v55  ;;  %v37_v50 = vmax.bf16 %v1972_v44, %v34_v46  ;;  %v2421_v53 = vld [vmem:[%s3548_s1 + $0xec] ss:$16 sps:$4 sm:$0xff]   ;;  %v1975_v55 = vld [vmem:[%s3547_s0 + $0x10] sm:$0x3]  ;;  %v2467_v44 = vld [vmem:[%s3548_s1 + $0x368] ss:$16 sps:$4 sm:$0xff]  }
  0x2c   :  { %459 = vmatprep.subr.bf16.mxu0 %v2368_v58  ;;  %500 = vmatprep.subr.bf16.mxu1 %v2370_v59  ;;  %v2419_v58 = vld [vmem:[%s3548_s1 + $0xe8] ss:$16 sps:$4 sm:$0xff]   ;;  %v2424_v59 = vld [vmem:[%s3548_s1 + $0x104] ss:$16 sps:$4 sm:$0xff]  }
  0x2d   :  { %v40_v54 = vmax.bf16 %v1973_v47, %v37_v50  ;;  %v2472_v46 = vld [vmem:[%s3548_s1 + $0x384] ss:$16 sps:$4 sm:$0xff]   ;;  %v2092_v47 = vld [vmem:[%s3547_s0 + $0x32] sm:$0x3] }
  0x2e   :  { %v2093_v50 = vld [vmem:[%s3547_s0 + $0x34] sm:$0x3] }
  0x2f   :  { %460 = vmatpush1.bf16.msra.mxu0 %v2372_v63  ;;  %501 = vmatpush1.bf16.msra.mxu1 %v2373_v1  ;;  %v43_v57 = vmax.bf16 %v1974_v52, %v40_v54  ;;  %v2422_v63 = vld [vmem:[%s3548_s1 + $0x100] ss:$16 sps:$4 sm:$0xff]   ;;  %v2425_v1 = vld [vmem:[%s3548_s1 + $0x108] ss:$16 sps:$4 sm:$0xff]   ;;  %v2478_v54 = vld [vmem:[%s3548_s1 + $0x3a4] ss:$16 sps:$4 sm:$0xff]  }
  0x30   :  { %786 = vmatprep.subr.bf16.mxu0 %v2376_v6  ;;  %827 = vmatprep.subr.bf16.mxu1 %v2379_v7  ;;  %v2428_v6 = vld [vmem:[%s3548_s1 + $0x120] ss:$16 sps:$4 sm:$0xff]  }
  0x31   :  { %v46_v61 = vmax.bf16 %v1975_v55, %v43_v57  ;;  %v2470_v52 = vld [vmem:[%s3548_s1 + $0x380] ss:$16 sps:$4 sm:$0xff]  }
  0x32   :  { %470 = vmatmul.mubr.bf16.vlgmr.msra.gmra.mrb[0].mxu0 %v184_v11  ;;  %511 = vmatmul.mubr.bf16.vlgmr.msra.gmra.mrb[0].mxu1 %v184_v11  ;;  %v2434_v11 = vld [vmem:[%s3548_s1 + $0x140] ss:$16 sps:$4 sm:$0xff]  }
  0x33   :  { %787 = vmatpush1.bf16.msra.mxu0 %v2374_v13  ;;  %828 = vmatpush1.bf16.msra.mxu1 %v2377_v14  ;;  %v526_v0 = vrot.slane %v46_v61, %v2821_v5  ;;  %v2442_v13 = vld [vmem:[%s3548_s1 + $0x164] ss:$16 sps:$4 sm:$0xff]   ;;  %v2445_v14 = vld [vmem:[%s3548_s1 + $0x16c] ss:$16 sps:$4 sm:$0xff]  }
  0x34   :  { %788 = vmatprep.subr.bf16.mxu0 %v2382_v15  ;;  %829 = vmatprep.subr.bf16.mxu1 %v2385_v16  ;;  %v2440_v15 = vld [vmem:[%s3548_s1 + $0x160] ss:$16 sps:$4 sm:$0xff]   ;;  %v2443_v16 = vld [vmem:[%s3548_s1 + $0x168] ss:$16 sps:$4 sm:$0xff]  }
  0x35   :  { %v527_v4 = vcombine.high %v526_v0, %v526_v0 }
  0x37   :  { %789 = vmatpush1.bf16.msra.mxu0 %v2380_v17  ;;  %830 = vmatpush1.bf16.msra.mxu1 %v2383_v18  ;;  %v541_v7 = vrot.slane %v527_v4, %v2821_v5  ;;  %v2448_v17 = vld [vmem:[%s3548_s1 + $0x304] ss:$16 sps:$4 sm:$0xff]   ;;  %v2451_v18 = vld [vmem:[%s3548_s1 + $0x30c] ss:$16 sps:$4 sm:$0xff]  }
  0x38   :  { %790 = vmatprep.subr.bf16.mxu0 %v2388_v19  ;;  %831 = vmatprep.subr.bf16.mxu1 %v2391_v20  ;;  %v534_v19 = vrot.slane %v526_v0, %v2821_v5  ;;  %v2446_v20 = vld [vmem:[%s3548_s1 + $0x300] ss:$16 sps:$4 sm:$0xff]   ;;  %v2493_v4 = vld [vmem:[%s3548_s1 + $0x3ec] ss:$16 sps:$4 sm:$0xff]  }
  0x39   :  { %2083 = vmatprep.mubr.msk.bf16.mxu0 %vm433_vm0, %v541_v7  ;;  %2084 = vmatprep.mubr.msk.bf16.mxu1 %vm433_vm0, %v541_v7  ;;  %v2491_v7 = vld [vmem:[%s3548_s1 + $0x3e8] ss:$16 sps:$4 sm:$0xff]  }
  0x3b   :  { %791 = vmatpush1.bf16.msra.mxu0 %v2386_v21  ;;  %832 = vmatpush1.bf16.msra.mxu1 %v2389_v22  ;;  %v2449_v21 = vld [vmem:[%s3548_s1 + $0x308] ss:$16 sps:$4 sm:$0xff]   ;;  %v2454_v22 = vld [vmem:[%s3548_s1 + $0x324] ss:$16 sps:$4 sm:$0xff]  }
  0x3c   :  { %792 = vmatprep.subr.bf16.mxu0 %v2394_v23  ;;  %833 = vmatprep.subr.bf16.mxu1 %v2397_v24  ;;  %v2457_v23 = vld [vmem:[%s3548_s1 + $0x32c] ss:$16 sps:$4 sm:$0xff]   ;;  %v2085_v24 = vld [vmem:[%s3547_s0 + $0x24] sm:$0x3] }
  0x3f   :  { %793 = vmatpush1.bf16.msra.mxu0 %v2392_v25  ;;  %834 = vmatpush1.bf16.msra.mxu1 %v2395_v26  ;;  %v2086_v25 = vld [vmem:[%s3547_s0 + $0x26] sm:$0x3]  ;;  %v2087_v26 = vld [vmem:[%s3547_s0 + $0x28] sm:$0x3] }
  0x40   :  { %794 = vmatprep.subr.bf16.mxu0 %v2400_v27  ;;  %835 = vmatprep.subr.bf16.mxu1 %v2403_v28  ;;  %v2452_v27 = vld [vmem:[%s3548_s1 + $0x320] ss:$16 sps:$4 sm:$0xff]   ;;  %v872_v28 = vmax.bf16 %v2086_v25, %v2085_v24 }
  0x42   :  { %v875_v33 = vmax.bf16 %v2087_v26, %v872_v28 }
  0x43   :  { %795 = vmatpush1.bf16.msra.mxu0 %v2398_v32  ;;  %836 = vmatpush1.bf16.msra.mxu1 %v2401_v34  ;;  %v2463_v32 = vld [vmem:[%s3548_s1 + $0x34c] ss:$16 sps:$4 sm:$0xff]  }
  0x44   :  { %796 = vmatprep.subr.bf16.mxu0 %v2406_v35  ;;  %837 = vmatprep.subr.bf16.mxu1 %v2409_v37  ;;  %v2089_v34 = vld [vmem:[%s3547_s0 + $0x2c] sm:$0x3]  ;;  %v2458_v35 = vld [vmem:[%s3548_s1 + $0x340] ss:$16 sps:$4 sm:$0xff]   ;;  %v878_v37 = vmax.bf16 %v2088_v31, %v875_v33 }
  0x47   :  { %797 = vmatpush1.bf16.msra.mxu0 %v2404_v40  ;;  %838 = vmatpush1.bf16.msra.mxu1 %v2407_v41  ;;  %v2469_v40 = vld [vmem:[%s3548_s1 + $0x36c] ss:$16 sps:$4 sm:$0xff]   ;;  %v881_v41 = vmax.bf16 %v2089_v34, %v878_v37 }
  0x48   :  { %798 = vmatprep.subr.bf16.mxu0 %v2412_v43  ;;  %839 = vmatprep.subr.bf16.mxu1 %v2415_v45  ;;  %v2464_v43 = vld [vmem:[%s3548_s1 + $0x360] ss:$16 sps:$4 sm:$0xff]  }
  0x49   :  { %v884_v45 = vmax.bf16 %v2090_v39, %v881_v41 }
  0x4b   :  { %799 = vmatpush1.bf16.msra.mxu0 %v2410_v48  ;;  %840 = vmatpush1.bf16.msra.mxu1 %v2413_v49  ;;  %v2475_v48 = vld [vmem:[%s3548_s1 + $0x38c] ss:$16 sps:$4 sm:$0xff]   ;;  %v887_v49 = vmax.bf16 %v2091_v42, %v884_v45 }
  0x4c   :  { %800 = vmatprep.subr.bf16.mxu0 %v2418_v51  ;;  %841 = vmatprep.subr.bf16.mxu1 %v2421_v53  ;;  %v2473_v53 = vld [vmem:[%s3548_s1 + $0x388] ss:$16 sps:$4 sm:$0xff]  }
  0x4d   :  { %v890_v51 = vmax.bf16 %v2092_v47, %v887_v49 }
  0x4f   :  { %801 = vmatpush1.bf16.msra.mxu0 %v2416_v56  ;;  %842 = vmatpush1.bf16.msra.mxu1 %v2419_v58  ;;  %v893_v55 = vmax.bf16 %v2093_v50, %v890_v51  ;;  %v2481_v56 = vld [vmem:[%s3548_s1 + $0x3ac] ss:$16 sps:$4 sm:$0xff]   ;;  %v2476_v58 = vld [vmem:[%s3548_s1 + $0x3a0] ss:$16 sps:$4 sm:$0xff]  }
  0x50   :  { %802 = vmatprep.subr.bf16.mxu0 %v2424_v59  ;;  %843 = vmatprep.subr.bf16.mxu1 %v2427_v60  ;;  %v2479_v59 = vld [vmem:[%s3548_s1 + $0x3a8] ss:$16 sps:$4 sm:$0xff]   ;;  %v2484_v60 = vld [vmem:[%s3548_s1 + $0x3c4] ss:$16 sps:$4 sm:$0xff]  }
  0x51   :  { %v3098_v57 = vrot.slane %v893_v55, %v2821_v5 }
  0x53   :  { %803 = vmatpush1.bf16.msra.mxu0 %v2422_v63  ;;  %844 = vmatpush1.bf16.msra.mxu1 %v2425_v1  ;;  %v950_v61 = vcombine.high %v3098_v57, %v3098_v57  ;;  %v2487_v63 = vld [vmem:[%s3548_s1 + $0x3cc] ss:$16 sps:$4 sm:$0xff]   ;;  %v2482_v1 = vld [vmem:[%s3548_s1 + $0x3c0] ss:$16 sps:$4 sm:$0xff]  }
  0x54   :  { %804 = vmatprep.subr.bf16.mxu0 %v2430_v2  ;;  %845 = vmatprep.subr.bf16.mxu1 %v2433_v3  ;;  %v2485_v2 = vld [vmem:[%s3548_s1 + $0x3c8] ss:$16 sps:$4 sm:$0xff]   ;;  %v2490_v3 = vld [vmem:[%s3548_s1 + $0x3e4] ss:$16 sps:$4 sm:$0xff]  }
  0x55   :  { %v964_v0 = vrot.slane %v950_v61, %v2821_v5 }
  0x57   :  { %805 = vmatpush1.bf16.msra.mxu0 %v2428_v6  ;;  %846 = vmatpush1.bf16.msra.mxu1 %v2431_v8  ;;  %v2488_v6 = vld [vmem:[%s3548_s1 + $0x3e0] ss:$16 sps:$4 sm:$0xff]   ;;  %v2496_v8 = vld [vmem:[%s3548_s1 + $0x404] ss:$16 sps:$4 sm:$0xff]  }
  0x58   :  { %806 = vmatprep.subr.bf16.mxu0 %v2436_v9  ;;  %847 = vmatprep.subr.bf16.mxu1 %v2439_v10  ;;  %v2499_v9 = vld [vmem:[%s3548_s1 + $0x40c] ss:$16 sps:$4 sm:$0xff]   ;;  %v2494_v10 = vld [vmem:[%s3548_s1 + $0x400] ss:$16 sps:$4 sm:$0xff]  }
  0x5b   :  { %807 = vmatpush1.bf16.msra.mxu0 %v2434_v11  ;;  %848 = vmatpush1.bf16.msra.mxu1 %v2437_v12  ;;  %v2497_v11 = vld [vmem:[%s3548_s1 + $0x408] ss:$16 sps:$4 sm:$0xff]   ;;  %v2502_v12 = vld [vmem:[%s3548_s1 + $0x424] ss:$16 sps:$4 sm:$0xff]  }
  0x5c   :  { %808 = vmatprep.subr.bf16.mxu0 %v2442_v13  ;;  %849 = vmatprep.subr.bf16.mxu1 %v2445_v14  ;;  %v2505_v13 = vld [vmem:[%s3548_s1 + $0x42c] ss:$16 sps:$4 sm:$0xff]   ;;  %v2500_v14 = vld [vmem:[%s3548_s1 + $0x420] ss:$16 sps:$4 sm:$0xff]  }
  0x5f   :  { %809 = vmatpush1.bf16.msra.mxu0 %v2440_v15  ;;  %850 = vmatpush1.bf16.msra.mxu1 %v2443_v16  ;;  %v2503_v15 = vld [vmem:[%s3548_s1 + $0x428] ss:$16 sps:$4 sm:$0xff]   ;;  %v2144_v16 = vld [vmem:[%s3547_s0 + $0x36] sm:$0x3] }
  0x60   :  { %1209 = vmatprep.subr.bf16.mxu0 %v2448_v17  ;;  %1250 = vmatprep.subr.bf16.mxu1 %v2451_v18  ;;  %v2145_v17 = vld [vmem:[%s3547_s0 + $0x38] sm:$0x3]  ;;  %v2146_v18 = vld [vmem:[%s3547_s0 + $0x3a] sm:$0x3] }
  0x62   :  { %819 = vmatmul.mubr.bf16.vlgmr.msra.gmra.mrb[4].mxu0 %v534_v19  ;;  %860 = vmatmul.mubr.bf16.vlgmr.msra.gmra.mrb[4].mxu1 %v534_v19  ;;  %v2508_v19 = vld [vmem:[%s3548_s1 + $0x444] ss:$16 sps:$4 sm:$0xff]  }
  0x63   :  { %1210 = vmatpush1.bf16.msra.mxu0 %v2446_v20  ;;  %1251 = vmatpush1.bf16.msra.mxu1 %v2449_v21  ;;  %v2511_v20 = vld [vmem:[%s3548_s1 + $0x44c] ss:$16 sps:$4 sm:$0xff]   ;;  %v1299_v21 = vmax.bf16 %v2145_v17, %v2144_v16 }
  0x64   :  { %1211 = vmatprep.subr.bf16.mxu0 %v2454_v22  ;;  %1252 = vmatprep.subr.bf16.mxu1 %v2457_v23  ;;  %v2147_v22 = vld [vmem:[%s3547_s0 + $0x3c] sm:$0x3] }
  0x65   :  { %2142 = vmatprep.mubr.msk.bf16.mxu0 %vm433_vm0, %v964_v0  ;;  %2143 = vmatprep.mubr.msk.bf16.mxu1 %vm433_vm0, %v964_v0  ;;  %v1302_v23 = vmax.bf16 %v2146_v18, %v1299_v21 }
  0x67   :  { %1212 = vmatpush1.bf16.msra.mxu0 %v2452_v27  ;;  %1253 = vmatpush1.bf16.msra.mxu1 %v2455_v29 }
  0x68   :  { %1213 = vmatprep.subr.bf16.mxu0 %v2460_v30  ;;  %1254 = vmatprep.subr.bf16.mxu1 %v2463_v32 }
  0x6b   :  { %1214 = vmatpush1.bf16.msra.mxu0 %v2458_v35  ;;  %1255 = vmatpush1.bf16.msra.mxu1 %v2461_v36 }
  0x6c   :  { %1215 = vmatprep.subr.bf16.mxu0 %v2466_v38  ;;  %1256 = vmatprep.subr.bf16.mxu1 %v2469_v40 }
  0x6f   :  { %1216 = vmatpush1.bf16.msra.mxu0 %v2464_v43  ;;  %1257 = vmatpush1.bf16.msra.mxu1 %v2467_v44 }
  0x70   :  { %1217 = vmatprep.subr.bf16.mxu0 %v2472_v46  ;;  %1258 = vmatprep.subr.bf16.mxu1 %v2475_v48 }
  0x73   :  { %1218 = vmatpush1.bf16.msra.mxu0 %v2470_v52  ;;  %1259 = vmatpush1.bf16.msra.mxu1 %v2473_v53 }
  0x74   :  { %1219 = vmatprep.subr.bf16.mxu0 %v2478_v54  ;;  %1260 = vmatprep.subr.bf16.mxu1 %v2481_v56 }
  0x77   :  { %1220 = vmatpush1.bf16.msra.mxu0 %v2476_v58  ;;  %1261 = vmatpush1.bf16.msra.mxu1 %v2479_v59 }
  0x78   :  { %1221 = vmatprep.subr.bf16.mxu0 %v2484_v60  ;;  %1262 = vmatprep.subr.bf16.mxu1 %v2487_v63 }
  0x7b   :  { %1222 = vmatpush1.bf16.msra.mxu0 %v2482_v1  ;;  %1263 = vmatpush1.bf16.msra.mxu1 %v2485_v2 }
  0x7c   :  { %1223 = vmatprep.subr.bf16.mxu0 %v2490_v3  ;;  %1264 = vmatprep.subr.bf16.mxu1 %v2493_v4 }
  0x7f   :  { %1224 = vmatpush1.bf16.msra.mxu0 %v2488_v6  ;;  %1265 = vmatpush1.bf16.msra.mxu1 %v2491_v7 }
  0x80   :  { %1225 = vmatprep.subr.bf16.mxu0 %v2496_v8  ;;  %1266 = vmatprep.subr.bf16.mxu1 %v2499_v9 }
  0x83   :  { %1226 = vmatpush1.bf16.msra.mxu0 %v2494_v10  ;;  %1267 = vmatpush1.bf16.msra.mxu1 %v2497_v11 }
  0x84   :  { %1227 = vmatprep.subr.bf16.mxu0 %v2502_v12  ;;  %1268 = vmatprep.subr.bf16.mxu1 %v2505_v13 }
  0x85   :  { %10 = vsyncpa [#allocation3], 0  ;;  %v2506_v24 = vld [vmem:[%s3548_s1 + $0x440] ss:$16 sps:$4 sm:$0xff]   ;;  %v2509_v25 = vld [vmem:[%s3548_s1 + $0x448] ss:$16 sps:$4 sm:$0xff]   ;;  %v1305_v29 = vmax.bf16 %v2147_v22, %v1302_v23  ;;  %v957_v39 = vrot.slane %v3098_v57, %v2821_v5 }
  0x86   :  { %v2148_v26 = vld [vmem:[%s3547_s0 + $0x3e] sm:$0x3]  ;;  %v2514_v27 = vld [vmem:[%s3548_s1 + $0x464] ss:$16 sps:$4 sm:$0xff]   ;;  %v2149_v30 = vld [vmem:[%s3547_s0 + $0x40] sm:$0x3] }
  0x87   :  { %1228 = vmatpush1.bf16.msra.mxu0 %v2500_v14  ;;  %1269 = vmatpush1.bf16.msra.mxu1 %v2503_v15  ;;  %v2517_v28 = vld [vmem:[%s3548_s1 + $0x46c] ss:$16 sps:$4 sm:$0xff]   ;;  %v1308_v31 = vmax.bf16 %v2148_v26, %v1305_v29  ;;  %v2512_v32 = vld [vmem:[%s3548_s1 + $0x460] ss:$16 sps:$4 sm:$0xff]   ;;  %v2515_v33 = vld [vmem:[%s3548_s1 + $0x468] ss:$16 sps:$4 sm:$0xff]  }
  0x88   :  { %1229 = vmatprep.subr.bf16.mxu0 %v2508_v19  ;;  %1270 = vmatprep.subr.bf16.mxu1 %v2511_v20  ;;  %v2150_v34 = vld [vmem:[%s3547_s0 + $0x42] sm:$0x3]  ;;  %v2520_v35 = vld [vmem:[%s3548_s1 + $0x484] ss:$16 sps:$4 sm:$0xff]   ;;  %v2523_v36 = vld [vmem:[%s3548_s1 + $0x48c] ss:$16 sps:$4 sm:$0xff]  }
  0x89   :  { %v1311_v37 = vmax.bf16 %v2149_v30, %v1308_v31  ;;  %v2151_v38 = vld [vmem:[%s3547_s0 + $0x44] sm:$0x3]  ;;  %v2518_v41 = vld [vmem:[%s3548_s1 + $0x480] ss:$16 sps:$4 sm:$0xff]   ;;  %v2521_v42 = vld [vmem:[%s3548_s1 + $0x488] ss:$16 sps:$4 sm:$0xff]  }
  0x8a   :  { %v2152_v43 = vld [vmem:[%s3547_s0 + $0x46] sm:$0x3]  ;;  %v2529_v45 = vld [vmem:[%s3548_s1 + $0x4ac] ss:$16 sps:$4 sm:$0xff]   ;;  %v2524_v48 = vld [vmem:[%s3548_s1 + $0x4a0] ss:$16 sps:$4 sm:$0xff]  }
  0x8b   :  { %1230 = vmatpush1.bf16.msra.mxu0 %v2506_v24  ;;  %1271 = vmatpush1.bf16.msra.mxu1 %v2509_v25  ;;  %v1314_v40 = vmax.bf16 %v2150_v34, %v1311_v37  ;;  %v2526_v44 = vld [vmem:[%s3548_s1 + $0x4a4] ss:$16 sps:$4 sm:$0xff]   ;;  %v2527_v49 = vld [vmem:[%s3548_s1 + $0x4a8] ss:$16 sps:$4 sm:$0xff]   ;;  %v2535_v51 = vld [vmem:[%s3548_s1 + $0x4cc] ss:$16 sps:$4 sm:$0xff]  }
  0x8c   :  { %1231 = vmatprep.subr.bf16.mxu0 %v2514_v27  ;;  %1272 = vmatprep.subr.bf16.mxu1 %v2517_v28  ;;  %v2532_v50 = vld [vmem:[%s3548_s1 + $0x4c4] ss:$16 sps:$4 sm:$0xff]   ;;  %v2530_v54 = vld [vmem:[%s3548_s1 + $0x4c0] ss:$16 sps:$4 sm:$0xff]   ;;  %v2533_v55 = vld [vmem:[%s3548_s1 + $0x4c8] ss:$16 sps:$4 sm:$0xff]  }
  0x8d   :  { %v1317_v46 = vmax.bf16 %v2151_v38, %v1314_v40  ;;  %v2538_v56 = vld [vmem:[%s3548_s1 + $0x4e4] ss:$16 sps:$4 sm:$0xff]   ;;  %v2541_v57 = vld [vmem:[%s3548_s1 + $0x4ec] ss:$16 sps:$4 sm:$0xff]   ;;  %v2536_v59 = vld [vmem:[%s3548_s1 + $0x4e0] ss:$16 sps:$4 sm:$0xff]  }
  0x8e   :  { %v2539_v60 = vld [vmem:[%s3548_s1 + $0x4e8] ss:$16 sps:$4 sm:$0xff]   ;;  %v2544_v61 = vld [vmem:[%s3548_s1 + $0x504] ss:$16 sps:$4 sm:$0xff]   ;;  %v2547_v63 = vld [vmem:[%s3548_s1 + $0x50c] ss:$16 sps:$4 sm:$0xff]  }
  0x8f   :  { %1232 = vmatpush1.bf16.msra.mxu0 %v2512_v32  ;;  %1273 = vmatpush1.bf16.msra.mxu1 %v2515_v33  ;;  %v1320_v47 = vmax.bf16 %v2152_v43, %v1317_v46  ;;  %v2542_v0 = vld [vmem:[%s3548_s1 + $0x500] ss:$16 sps:$4 sm:$0xff]   ;;  %v2545_v1 = vld [vmem:[%s3548_s1 + $0x508] ss:$16 sps:$4 sm:$0xff]   ;;  %v2550_v2 = vld [vmem:[%s3548_s1 + $0x524] ss:$16 sps:$4 sm:$0xff]  }
  0x90   :  { %1636 = vmatprep.subr.bf16.mxu0 %v2520_v35  ;;  %1677 = vmatprep.subr.bf16.mxu1 %v2523_v36  ;;  %v2553_v3 = vld [vmem:[%s3548_s1 + $0x52c] ss:$16 sps:$4 sm:$0xff]   ;;  %v2548_v4 = vld [vmem:[%s3548_s1 + $0x520] ss:$16 sps:$4 sm:$0xff]   ;;  %v2551_v6 = vld [vmem:[%s3548_s1 + $0x528] ss:$16 sps:$4 sm:$0xff]  }
  0x91   :  { %v3243_v52 = vrot.slane %v1320_v47, %v2821_v5  ;;  %v2556_v7 = vld [vmem:[%s3548_s1 + $0x544] ss:$16 sps:$4 sm:$0xff]   ;;  %v2559_v8 = vld [vmem:[%s3548_s1 + $0x54c] ss:$16 sps:$4 sm:$0xff]   ;;  %v2554_v9 = vld [vmem:[%s3548_s1 + $0x540] ss:$16 sps:$4 sm:$0xff]  }
  0x92   :  { %1242 = vmatmul.mubr.bf16.vlgmr.msra.gmra.mrb[8].mxu0 %v957_v39  ;;  %1283 = vmatmul.mubr.bf16.vlgmr.msra.gmra.mrb[8].mxu1 %v957_v39  ;;  %v2557_v10 = vld [vmem:[%s3548_s1 + $0x548] ss:$16 sps:$4 sm:$0xff]   ;;  %v2562_v11 = vld [vmem:[%s3548_s1 + $0x564] ss:$16 sps:$4 sm:$0xff]   ;;  %v2565_v12 = vld [vmem:[%s3548_s1 + $0x56c] ss:$16 sps:$4 sm:$0xff]  }
  0x93   :  { %1637 = vmatpush1.bf16.msra.mxu0 %v2518_v41  ;;  %1678 = vmatpush1.bf16.msra.mxu1 %v2521_v42  ;;  %v1377_v53 = vcombine.high %v3243_v52, %v3243_v52  ;;  %v2560_v13 = vld [vmem:[%s3548_s1 + $0x560] ss:$16 sps:$4 sm:$0xff]   ;;  %v2563_v14 = vld [vmem:[%s3548_s1 + $0x568] ss:$16 sps:$4 sm:$0xff]   ;;  %v2568_v15 = vld [vmem:[%s3548_s1 + $0x584] ss:$16 sps:$4 sm:$0xff]   ;;  %v1384_v31 = vrot.slane %v3243_v52, %v2821_v5 }
  0x94   :  { %1638 = vmatprep.subr.bf16.mxu0 %v2526_v44  ;;  %1679 = vmatprep.subr.bf16.mxu1 %v2529_v45  ;;  %v2571_v16 = vld [vmem:[%s3548_s1 + $0x58c] ss:$16 sps:$4 sm:$0xff]   ;;  %v2566_v17 = vld [vmem:[%s3548_s1 + $0x580] ss:$16 sps:$4 sm:$0xff]   ;;  %v2569_v18 = vld [vmem:[%s3548_s1 + $0x588] ss:$16 sps:$4 sm:$0xff]  }
  0x95   :  { %v1391_v58 = vrot.slane %v1377_v53, %v2821_v5  ;;  %v2574_v19 = vld [vmem:[%s3548_s1 + $0x5a4] ss:$16 sps:$4 sm:$0xff]   ;;  %v2577_v20 = vld [vmem:[%s3548_s1 + $0x5ac] ss:$16 sps:$4 sm:$0xff]   ;;  %v2572_v21 = vld [vmem:[%s3548_s1 + $0x5a0] ss:$16 sps:$4 sm:$0xff]  }
  0x96   :  { %v2575_v22 = vld [vmem:[%s3548_s1 + $0x5a8] ss:$16 sps:$4 sm:$0xff]   ;;  %v2580_v23 = vld [vmem:[%s3548_s1 + $0x5c4] ss:$16 sps:$4 sm:$0xff]   ;;  %v2583_v24 = vld [vmem:[%s3548_s1 + $0x5cc] ss:$16 sps:$4 sm:$0xff]  }
  0x97   :  { %1639 = vmatpush1.bf16.msra.mxu0 %v2524_v48  ;;  %1680 = vmatpush1.bf16.msra.mxu1 %v2527_v49  ;;  %v2578_v25 = vld [vmem:[%s3548_s1 + $0x5c0] ss:$16 sps:$4 sm:$0xff]   ;;  %v2581_v26 = vld [vmem:[%s3548_s1 + $0x5c8] ss:$16 sps:$4 sm:$0xff]   ;;  %v2586_v27 = vld [vmem:[%s3548_s1 + $0x5e4] ss:$16 sps:$4 sm:$0xff]  }
  0x98   :  { %1640 = vmatprep.subr.bf16.mxu0 %v2532_v50  ;;  %1681 = vmatprep.subr.bf16.mxu1 %v2535_v51  ;;  %v2589_v28 = vld [vmem:[%s3548_s1 + $0x5ec] ss:$16 sps:$4 sm:$0xff]   ;;  %v2584_v29 = vld [vmem:[%s3548_s1 + $0x5e0] ss:$16 sps:$4 sm:$0xff]   ;;  %v2587_v30 = vld [vmem:[%s3548_s1 + $0x5e8] ss:$16 sps:$4 sm:$0xff]  }
  0x99   :  { %2201 = vmatprep.mubr.msk.bf16.mxu0 %vm433_vm0, %v1391_v58  ;;  %2202 = vmatprep.mubr.msk.bf16.mxu1 %vm433_vm0, %v1391_v58  ;;  %v1784_v32 = vld [vmem:[%s3550_s3 + $0x100] sm:$0xff]  ;;  %v1785_v33 = vld [vmem:[%s3550_s3 + $0x108] sm:$0xff]  ;;  %v2615_v35 = vmov 0.0|0.0   ;;  %v1786_v41 = vld [vmem:[%s3550_s3 + $0x110] sm:$0xff]  ;;  %vm1809_vm1 = vcmask 130048   ;;  %s2616_s15 = smov [#allocation2]  }
  0x9a   :  { %v1768_v34 = vld [vmem:[%s3550_s3 + $0x80] sm:$0xff]  ;;  %v2273_v5 = vpack.c.bf16 %v1785_v33, %v1784_v32  ;;  %v1769_v36 = vld [vmem:[%s3550_s3 + $0x88] sm:$0xff]  ;;  %v1787_v42 = vld [vmem:[%s3550_s3 + $0x118] sm:$0xff]  ;;  %s1960_s16 = sshll.u32 %s2616_s15, 4  ;;  %s1961_s16 = int_to_ptr.vmem [resolvable:$true] %s1960_s16 }
  0x9b   :  { %1641 = vmatpush1.bf16.msra.mxu0 %v2530_v54  ;;  %1682 = vmatpush1.bf16.msra.mxu1 %v2533_v55  ;;  %v1752_v37 = vld [vmem:[%s3550_s3] sm:$0xff]  ;;  %v1753_v38 = vld [vmem:[%s3550_s3 + $0x8] sm:$0xff]  ;;  %v2240_v39 = vpack.c.bf16 %v1769_v36, %v1768_v34  ;;  %v1770_v43 = vld [vmem:[%s3550_s3 + $0x90] sm:$0xff]  ;;  %v2276_v44 = vpack.c.bf16 %v1787_v42, %v1786_v41  ;;  %s2590_s0 = scalar_lea.vmem %s1961_s16, 32  ;;  %p2595_p1 = scmp.lt.s32.totalorder %s1961_s16, %s1961_s16 }
  0x9c   :  { %1642 = vmatprep.subr.bf16.mxu0 %v2538_v56  ;;  %1683 = vmatprep.subr.bf16.mxu1 %v2541_v57  ;;  %v2242_v40 = vpack.c.bf16 %v1753_v38, %v1752_v37  ;;  %v1771_v45 = vld [vmem:[%s3550_s3 + $0x98] sm:$0xff]  ;;  %v1754_v46 = vld [vmem:[%s3550_s3 + $0x10] sm:$0xff]  ;;  %v1788_v49 = vld [vmem:[%s3550_s3 + $0x120] sm:$0xff]  ;;  %p2591_p0 = scmp.ne.s32.totalorder %s1961_s16, %s2590_s0  ;;  %p2596_p2 = scmp.lt.s32.totalorder %s2590_s0, %s2590_s0 }
  0x9d   :  { %v1755_v47 = vld [vmem:[%s3550_s3 + $0x18] sm:$0xff]  ;;  %v2244_v48 = vpack.c.bf16 %v1771_v45, %v1770_v43  ;;  %v1789_v50 = vld [vmem:[%s3550_s3 + $0x128] sm:$0xff]  ;;  %v1772_v51 = vld [vmem:[%s3550_s3 + $0xa0] sm:$0xff] }
  0x9e   :  { %v2246_v52 = vpack.c.bf16 %v1755_v47, %v1754_v46  ;;  %v1773_v53 = vld [vmem:[%s3550_s3 + $0xa8] sm:$0xff]  ;;  %v1756_v55 = vld [vmem:[%s3550_s3 + $0x20] sm:$0xff]  ;;  %v2279_v57 = vpack.c.bf16 %v1789_v50, %v1788_v49  ;;  %v1774_v58 = vld [vmem:[%s3550_s3 + $0xb0] sm:$0xff]  ;;  %p2597_p3 = por %p2596_p2, %p2595_p1 }
  0x9f   :  { %1643 = vmatpush1.bf16.msra.mxu0 %v2536_v59  ;;  %1684 = vmatpush1.bf16.msra.mxu1 %v2539_v60  ;;  %v2248_v54 = vpack.c.bf16 %v1773_v53, %v1772_v51  ;;  %v1757_v56 = vld [vmem:[%s3550_s3 + $0x28] sm:$0xff]  ;;  %v1775_v59 = vld [vmem:[%s3550_s3 + $0xb8] sm:$0xff]  ;;  %v1790_v60 = vld [vmem:[%s3550_s3 + $0x130] sm:$0xff] }
  0xa0   :  { %1644 = vmatprep.subr.bf16.mxu0 %v2544_v61  ;;  %1685 = vmatprep.subr.bf16.mxu1 %v2547_v63  ;;  %v1791_v61 = vld [vmem:[%s3550_s3 + $0x138] sm:$0xff]  ;;  %v2250_v63 = vpack.c.bf16 %v1757_v56, %v1756_v55  ;;  %v1781_v36 = vld [vmem:[%s3550_s3 + $0xe8] sm:$0xff]  ;;  %v1764_v38 = vld [vmem:[%s3550_s3 + $0x60] sm:$0xff]  ;;  %p2598_p4 = pnand %p2597_p3, %p2591_p0 }
  0xa1   :  { %v1799_v42 = vld [vmem:[%s3550_s3 + $0x178] sm:$0xff]  ;;  %v1766_v47 = vld [vmem:[%s3550_s3 + $0x70] sm:$0xff]  ;;  %v1800_v49 = vld [vmem:[%s3550_s3 + $0x180] sm:$0xff] }
  0xa2   :  { %v1783_v45 = vld [vmem:[%s3550_s3 + $0xf8] sm:$0xff]  ;;  %v1801_v51 = vld [vmem:[%s3550_s3 + $0x188] sm:$0xff] }
  0xa3   :  { %1645 = vmatpush1.bf16.msra.mxu0 %v2542_v0  ;;  %1686 = vmatpush1.bf16.msra.mxu1 %v2545_v1  ;;  %v2252_v0 = vpack.c.bf16 %v1775_v59, %v1774_v58  ;;  %v1758_v1 = vld [vmem:[%s3550_s3 + $0x30] sm:$0xff] }
  0xa4   :  { %1646 = vmatprep.subr.bf16.mxu0 %v2550_v2  ;;  %1687 = vmatprep.subr.bf16.mxu1 %v2553_v3  ;;  %v1759_v2 = vld [vmem:[%s3550_s3 + $0x38] sm:$0xff]  ;;  %v2282_v3 = vpack.c.bf16 %v1791_v61, %v1790_v60 }
  0xa7   :  { %1647 = vmatpush1.bf16.msra.mxu0 %v2548_v4  ;;  %1688 = vmatpush1.bf16.msra.mxu1 %v2551_v6  ;;  %v1776_v4 = vld [vmem:[%s3550_s3 + $0xc0] sm:$0xff]  ;;  %v1777_v6 = vld [vmem:[%s3550_s3 + $0xc8] sm:$0xff] }
  0xa8   :  { %1648 = vmatprep.subr.bf16.mxu0 %v2556_v7  ;;  %1689 = vmatprep.subr.bf16.mxu1 %v2559_v8  ;;  %v1792_v7 = vld [vmem:[%s3550_s3 + $0x140] sm:$0xff]  ;;  %v1793_v8 = vld [vmem:[%s3550_s3 + $0x148] sm:$0xff] }
  0xab   :  { %1649 = vmatpush1.bf16.msra.mxu0 %v2554_v9  ;;  %1690 = vmatpush1.bf16.msra.mxu1 %v2557_v10  ;;  %v2254_v9 = vpack.c.bf16 %v1759_v2, %v1758_v1  ;;  %v2256_v10 = vpack.c.bf16 %v1777_v6, %v1776_v4 }
  0xac   :  { %1650 = vmatprep.subr.bf16.mxu0 %v2562_v11  ;;  %1691 = vmatprep.subr.bf16.mxu1 %v2565_v12  ;;  %v1760_v11 = vld [vmem:[%s3550_s3 + $0x40] sm:$0xff]  ;;  %v1761_v12 = vld [vmem:[%s3550_s3 + $0x48] sm:$0xff] }
  0xaf   :  { %1651 = vmatpush1.bf16.msra.mxu0 %v2560_v13  ;;  %1692 = vmatpush1.bf16.msra.mxu1 %v2563_v14  ;;  %v2285_v13 = vpack.c.bf16 %v1793_v8, %v1792_v7  ;;  %v1778_v14 = vld [vmem:[%s3550_s3 + $0xd0] sm:$0xff] }
  0xb0   :  { %1652 = vmatprep.subr.bf16.mxu0 %v2568_v15  ;;  %1693 = vmatprep.subr.bf16.mxu1 %v2571_v16  ;;  %v1779_v15 = vld [vmem:[%s3550_s3 + $0xd8] sm:$0xff]  ;;  %v1794_v16 = vld [vmem:[%s3550_s3 + $0x150] sm:$0xff] }
  0xb3   :  { %1653 = vmatpush1.bf16.msra.mxu0 %v2566_v17  ;;  %1694 = vmatpush1.bf16.msra.mxu1 %v2569_v18  ;;  %v1795_v17 = vld [vmem:[%s3550_s3 + $0x158] sm:$0xff]  ;;  %v2258_v18 = vpack.c.bf16 %v1761_v12, %v1760_v11 }
  0xb4   :  { %1654 = vmatprep.subr.bf16.mxu0 %v2574_v19  ;;  %1695 = vmatprep.subr.bf16.mxu1 %v2577_v20  ;;  %v2260_v19 = vpack.c.bf16 %v1779_v15, %v1778_v14  ;;  %v1762_v20 = vld [vmem:[%s3550_s3 + $0x50] sm:$0xff]  ;;  %v1726_v14 = vsub.s32 0, %v2806_v62  ;;  %v1734_v15 = vsub.s32 2, %v2806_v62 }
  0xb7   :  { %1655 = vmatpush1.bf16.msra.mxu0 %v2572_v21  ;;  %1696 = vmatpush1.bf16.msra.mxu1 %v2575_v22  ;;  %v1763_v21 = vld [vmem:[%s3550_s3 + $0x58] sm:$0xff]  ;;  %v2288_v22 = vpack.c.bf16 %v1795_v17, %v1794_v16  ;;  %v1722_v16 = vld [vmem:[%s3549_s2] sm:$0xf]  ;;  %v1730_v17 = vsub.s32 1, %v2806_v62 }
  0xb8   :  { %1656 = vmatprep.subr.bf16.mxu0 %v2580_v23  ;;  %1697 = vmatprep.subr.bf16.mxu1 %v2583_v24  ;;  %v1796_v23 = vld [vmem:[%s3550_s3 + $0x160] sm:$0xff]  ;;  %v1797_v24 = vld [vmem:[%s3550_s3 + $0x168] sm:$0xff] }
  0xbb   :  { %1657 = vmatpush1.bf16.msra.mxu0 %v2578_v25  ;;  %1698 = vmatpush1.bf16.msra.mxu1 %v2581_v26  ;;  %v2262_v25 = vpack.c.bf16 %v1763_v21, %v1762_v20  ;;  %v2291_v26 = vpack.c.bf16 %v1797_v24, %v1796_v23  ;;  %v1735_v20 = vrot.slane %v1722_v16, %v1734_v15 }
  0xbc   :  { %1658 = vmatprep.subr.bf16.mxu0 %v2586_v27  ;;  %1699 = vmatprep.subr.bf16.mxu1 %v2589_v28  ;;  %v1731_v23 = vrot.slane %v1722_v16, %v1730_v17 }
  0xbf   :  { %1659 = vmatpush1.bf16.msra.mxu0 %v2584_v29  ;;  %1700 = vmatpush1.bf16.msra.mxu1 %v2587_v30 }
  0xc0   :  { %2272 = vmatprep.subr.bf16.mxu1 %v2615_v35  ;;  %2241 = vmatprep.subr.bf16.mxu0 %v2240_v39  ;;  %v1765_v39 = vld [vmem:[%s3550_s3 + $0x68] sm:$0xff] }
  0xc1   :  { %v2266_v41 = vpack.c.bf16 %v1765_v39, %v1764_v38 }
  0xc2   :  { %1669 = vmatmul.mubr.bf16.vlgmr.msra.gmra.mrb[12].mxu0 %v1384_v31  ;;  %1710 = vmatmul.mubr.bf16.vlgmr.msra.gmra.mrb[12].mxu1 %v1384_v31 }
  0xc3   :  { %2274 = vmatpush1.bf16.msra.mxu1 %v2273_v5  ;;  %2243 = vmatpush3.bf16.msra.mxu0 %v2242_v40  ;;  %v1780_v5 = vld [vmem:[%s3550_s3 + $0xe0] sm:$0xff]  ;;  %v1798_v40 = vld [vmem:[%s3550_s3 + $0x170] sm:$0xff] }
  0xc4   :  { %2275 = vmatprep.subr.bf16.mxu1 %v2615_v35  ;;  %2245 = vmatprep.subr.bf16.mxu0 %v2244_v48  ;;  %v2264_v37 = vpack.c.bf16 %v1781_v36, %v1780_v5  ;;  %v2294_v43 = vpack.c.bf16 %v1799_v42, %v1798_v40  ;;  %v1767_v48 = vld [vmem:[%s3550_s3 + $0x78] sm:$0xff] }
  0xc5   :  { %v2270_v50 = vpack.c.bf16 %v1767_v48, %v1766_v47 }
  0xc7   :  { %2277 = vmatpush1.bf16.msra.mxu1 %v2276_v44  ;;  %2247 = vmatpush3.bf16.msra.mxu0 %v2246_v52  ;;  %v1782_v44 = vld [vmem:[%s3550_s3 + $0xf0] sm:$0xff]  ;;  %v2297_v52 = vpack.c.bf16 %v1801_v51, %v1800_v49 }
  0xc8   :  { %2278 = vmatprep.subr.bf16.mxu1 %v2615_v35  ;;  %2249 = vmatprep.subr.bf16.mxu0 %v2248_v54  ;;  %v2268_v46 = vpack.c.bf16 %v1783_v45, %v1782_v44  ;;  %v2203_v44 = vld [vmem:[%s3551_s4] ss:$0 sm:$0xff] }
  0xcb   :  { %2280 = vmatpush1.bf16.msra.mxu1 %v2279_v57  ;;  %2251 = vmatpush3.bf16.msra.mxu0 %v2250_v63 }
  0xcc   :  { %2281 = vmatprep.subr.bf16.mxu1 %v2615_v35  ;;  %2253 = vmatprep.subr.bf16.mxu0 %v2252_v0 }
  0xcf   :  { %2283 = vmatpush1.bf16.msra.mxu1 %v2282_v3  ;;  %2255 = vmatpush3.bf16.msra.mxu0 %v2254_v9 }
  0xd0   :  { %2284 = vmatprep.subr.bf16.mxu1 %v2615_v35  ;;  %2257 = vmatprep.subr.bf16.mxu0 %v2256_v10 }
  0xd3   :  { %2286 = vmatpush1.bf16.msra.mxu1 %v2285_v13  ;;  %2259 = vmatpush3.bf16.msra.mxu0 %v2258_v18  ;;  %v1738_v18 = vsub.s32 3, %v2806_v62 }
  0xd4   :  { %2287 = vmatprep.subr.bf16.mxu1 %v2615_v35  ;;  %2261 = vmatprep.subr.bf16.mxu0 %v2260_v19  ;;  %v1727_v19 = vrot.slane %v1722_v16, %v1726_v14 }
  0xd5   :  { %v1739_v24 = vrot.slane %v1722_v16, %v1738_v18 }
  0xd7   :  { %2289 = vmatpush1.bf16.msra.mxu1 %v2288_v22  ;;  %2263 = vmatpush3.bf16.msra.mxu0 %v2262_v25 }
  0xd8   :  { %2290 = vmatprep.subr.bf16.mxu1 %v2615_v35  ;;  %2265 = vmatprep.subr.bf16.mxu0 %v2264_v37 }
  0xdb   :  { %2292 = vmatpush1.bf16.msra.mxu1 %v2291_v26  ;;  %2267 = vmatpush3.bf16.msra.mxu0 %v2266_v41 }
  0xdc   :  { %2293 = vmatprep.subr.bf16.mxu1 %v2615_v35  ;;  %2269 = vmatprep.subr.bf16.mxu0 %v2268_v46 }
  0xdf   :  { %2295 = vmatpush1.bf16.msra.mxu1 %v2294_v43  ;;  %2271 = vmatpush3.bf16.msra.mxu0 %v2270_v50 }
  0xe0   :  { %2296 = vmatprep.subr.bf16.mxu1 %v2615_v35 }
  0xe3   :  { %2298 = vmatpush1.bf16.msra.mxu1 %v2297_v52 }
 0x105   :  { %v471_v27 = vpop.f32.mrb[0].mxu0  ;;  %v512_v28 = vpop.f32.mrb[0].mxu1 }
 0x106   :  { %v473_v29 = vpop.f32.mrb[1].mxu0  ;;  %v514_v30 = vpop.f32.mrb[1].mxu1 }
 0x107   :  { %v475_v31 = vpop.f32.mrb[2].mxu0  ;;  %v516_v32 = vpop.f32.mrb[2].mxu1 }
 0x108   :  { %v476_v33 = vpop.f32.mrb[3].mxu0  ;;  %v517_v34 = vpop.f32.mrb[3].mxu1 }
 0x135   :  { %v820_v53 = vpop.f32.mrb[4].mxu0  ;;  %v861_v54 = vpop.f32.mrb[4].mxu1 }
 0x136   :  { %v821_v55 = vadd.f32 %v820_v53, %v471_v27  ;;  %v862_v56 = vadd.f32 %v861_v54, %v512_v28  ;;  %v822_v57 = vpop.f32.mrb[5].mxu0  ;;  %v863_v58 = vpop.f32.mrb[5].mxu1 }
 0x137   :  { %v823_v59 = vadd.f32 %v822_v57, %v473_v29  ;;  %v864_v60 = vadd.f32 %v863_v58, %v514_v30  ;;  %v824_v61 = vpop.f32.mrb[6].mxu0  ;;  %v865_v63 = vpop.f32.mrb[6].mxu1 }
 0x138   :  { %v825_v35 = vpop.f32.mrb[7].mxu0  ;;  %v866_v0 = vpop.f32.mrb[7].mxu1 }
 0x165   :  { %v1243_v1 = vpop.f32.mrb[8].mxu0  ;;  %v1284_v2 = vpop.f32.mrb[8].mxu1 }
 0x166   :  { %v1291_v3 = vadd.f32 %v1243_v1, %v821_v55  ;;  %v1293_v4 = vadd.f32 %v1284_v2, %v862_v56  ;;  %v1245_v6 = vpop.f32.mrb[9].mxu0  ;;  %v1286_v7 = vpop.f32.mrb[9].mxu1 }
 0x167   :  { %v1292_v8 = vadd.f32 %v1245_v6, %v823_v59  ;;  %v1294_v9 = vadd.f32 %v1286_v7, %v864_v60  ;;  %v1247_v10 = vpop.f32.mrb[10].mxu0  ;;  %v1288_v11 = vpop.f32.mrb[10].mxu1 }
 0x168   :  { %v1248_v12 = vpop.f32.mrb[11].mxu0  ;;  %v1289_v13 = vpop.f32.mrb[11].mxu1 }
 0x195   :  { %v1670_v21 = vpop.f32.mrb[12].mxu0  ;;  %v1711_v22 = vpop.f32.mrb[12].mxu1 }
 0x196   :  { %v1718_v25 = vadd.f32 %v1670_v21, %v1291_v3  ;;  %v1720_v26 = vadd.f32 %v1711_v22, %v1293_v4  ;;  %v1672_v27 = vpop.f32.mrb[13].mxu0  ;;  %v1713_v28 = vpop.f32.mrb[13].mxu1 }
 0x197   :  { %v1719_v29 = vadd.f32 %v1672_v27, %v1292_v8  ;;  %v1721_v30 = vadd.f32 %v1713_v28, %v1294_v9  ;;  %v1674_v31 = vpop.f32.mrb[14].mxu0  ;;  %v1715_v32 = vpop.f32.mrb[14].mxu1 }
 0x198   :  { %v1744_v33 = vadd.f32 %v1727_v19, %v1718_v25  ;;  %v1746_v34 = vadd.f32 %v1735_v20, %v1720_v26  ;;  %v1675_v5 = vpop.f32.mrb[15].mxu0  ;;  %v1716_v36 = vpop.f32.mrb[15].mxu1 }
 0x199   :  { %v1745_v37 = vadd.f32 %v1731_v23, %v1719_v29  ;;  %v1747_v62 = vadd.f32 %v1739_v24, %v1721_v30 }
 0x19a   :  { %v1748_v40 = vmax.f32 %v1744_v33, 0.0  ;;  %v1750_v41 = vmax.f32 %v1746_v34, 0.0 }
 0x19b   :  { %v1749_v38 = vmax.f32 %v1745_v37, 0.0  ;;  %v1751_v39 = vmax.f32 %v1747_v62, 0.0 }
 0x19d   :  { %1877 = vmatprep.mubr.f32.mxu0 %v1749_v38  ;;  %2204 = vmatprep.mubr.msk.f32.mxu1 %vm1809_vm1, %v1751_v39 }
 0x19e   :  { %1878 = vmatmul.mubr.f32.vlgmr.msra.gmra.mrb[16].mxu0 %v1748_v40  ;;  %1948 = vmatmul.mubr.f32.vlgmr.msra.gmra.mrb[16].mxu1 %v1750_v41 }
 0x271   :  { %v2237_v42 = vpop.f32.mrb[16].mxu0  ;;  %v1949_v43 = vpop.f32.mrb[16].mxu1 }
 0x272   :  { %v2238_v45 = vpop.f32.mrb[17].mxu0  ;;  %v1951_v46 = vpop.f32.mrb[17].mxu1 }
 0x273   :  { %v2239_v47 = vadd.f32 %v2238_v45, %v2237_v42 }
 0x275   :  { %v1880_v48 = vadd.f32 %v2239_v47, %v2203_v44 }
 0x277   :  { %v1950_v49 = vadd.f32 %v1949_v43, %v1880_v48 }
 0x279   :  { %1953 = vst [vmem:[#allocation2] sm:$0x3] %v1950_v49 }
 0x27a   :  { %2601 = shalt.err (!%p2598_p4)
}
 0x27b   :  { %s2602_s4 = scalar_lea.hbm %s3552_s5, 32 }
 0x27c   :  { %p2603_p5 = scmp.ne.s32.totalorder %s3552_s5, %s2602_s4  ;;  %p2606_p6 = scmp.lt.u32.totalorder %s2602_s4, %s3552_s5 }
 0x27e   :  { %p2608_p7 = pnand %p2606_p6, %p2603_p5 }
 0x280   :  { %2611 = shalt.err (!%p2608_p7)
}
 0x281   :  { %1963 = dma.vmem_to_hbm [thread:$0]  %s1961_s16, 32, %s3552_s5, [#allocation3]  }
 0x282   :  { %2612 = dma.done.wait [#allocation3], 32  }
 0x283   :  { %2613 = vsyncadd [#allocation3], 4294967264 }
 0x284   :  { %1967 = vsyncpa [#allocation3], 1 }

</bundles_post_ra>
